<compile_context>
chip_gen: v5e
topology: v5e:2x2
jax: 0.10.0
libtpu: 0.0.40
codegen_flags: <defaults>
</compile_context>

<pallas_src>
import functools

import jax
import jax.numpy as jnp
from jax.experimental import pallas as pl
from jax.experimental.pallas import tpu as pltpu

_IGNORE_INDEX = -100


def _amp_ce_kernel(logits_ref, tgt_ref, nll_ref, m_ref, l_ref, pick_ref, *,
                   tile_v, ignore_index):
    """Online-softmax cross-entropy under autocast-bf16 semantics.

    logits_ref : (TM, TV) bf16 tile of the (N, V) logits
    tgt_ref    : (TM, 1)  int32 targets (resident across the vocab axis)
    nll_ref    : (TM, 1)  f32 per-row NLL output (written on last vocab step)
    m_ref/l_ref/pick_ref : (TM, 1) f32 scratch (running max / sum-exp / pick)
    """
    j = pl.program_id(1)
    nv = pl.num_programs(1)

    @pl.when(j == 0)
    def _():
        m_ref[...] = jnp.full_like(m_ref, -jnp.inf)
        l_ref[...] = jnp.zeros_like(l_ref)
        pick_ref[...] = jnp.zeros_like(pick_ref)

    # autocast: cross_entropy promotes its inputs to float32.
    x = logits_ref[...].astype(jnp.float32)                      # (TM, TV)
    tgt = tgt_ref[...]                                           # (TM, 1)

    # --- online logsumexp update -----------------------------------------
    m_prev = m_ref[...]
    m_new = jnp.maximum(m_prev, jnp.max(x, axis=-1, keepdims=True))
    z = x - m_new                                                # reused below
    l_ref[...] = (l_ref[...] * jnp.exp(m_prev - m_new)
                  + jnp.sum(jnp.exp(z), axis=-1, keepdims=True))
    m_ref[...] = m_new

    # --- target-logit pick (masked compare; reuses z so x can die) --------
    ids = jax.lax.broadcasted_iota(jnp.int32, z.shape, 1) + j * tile_v
    hit = ids == tgt                                             # (TM, TV)
    hit_any = jnp.sum(hit.astype(jnp.float32), axis=-1, keepdims=True)
    pick_ref[...] += (jnp.sum(jnp.where(hit, z, 0.0), axis=-1, keepdims=True)
                      + jnp.where(hit_any > 0.0, m_new, 0.0))

    # --- finalize: per-row NLL, ignored rows contribute 0 -----------------
    @pl.when(j == nv - 1)
    def _():
        lse = m_ref[...] + jnp.log(l_ref[...])
        nll = lse - pick_ref[...]
        valid = tgt != ignore_index
        nll_ref[...] = jnp.where(valid, nll, 0.0)


def amp_criterion_forward(logits_bf16, targets_i32, *, tile_rows=256,
                          tile_v=512, ignore_index=_IGNORE_INDEX):
    """AMPCriterion(CrossEntropyLoss, autocast(bf16)).forward(logits, targets)."""
    n, v = logits_bf16.shape
    tile_rows = min(tile_rows, n)
    tile_v = min(tile_v, v)
    assert n % tile_rows == 0, "rows must tile evenly for this synthetic setup"
    assert v % tile_v == 0, "vocab must tile evenly for this synthetic setup"
    tgt2d = targets_i32.reshape(n, 1).astype(jnp.int32)

    grid = (n // tile_rows, v // tile_v)
    kernel = functools.partial(_amp_ce_kernel, tile_v=tile_v,
                               ignore_index=ignore_index)

    # Scoped-VMEM ceiling: covers double-buffered bf16 tiles + f32 temps at
    # these tile sizes and stays within v7x's 64 MiB physical VMEM.
    # TODO(synk): re-derive tile_rows/tile_v per generation for production
    # vocab sizes (roughly half the v6e tile budget on v7x).
    vmem_limit = 32 * 1024 * 1024

    cost = pl.CostEstimate(
        flops=4 * n * v,
        transcendentals=n * v,               # exp per element (+ n logs)
        bytes_accessed=n * v * 2 + n * 4 + n * 4,
    )

    per_row_nll = pl.pallas_call(
        kernel,
        out_shape=jax.ShapeDtypeStruct((n, 1), jnp.float32),
        grid_spec=pltpu.PrefetchScalarGridSpec(
            num_scalar_prefetch=0,
            grid=grid,
            in_specs=[
                # logits: fresh (TM, TV) block every step
                pl.BlockSpec((tile_rows, tile_v), lambda i, j: (i, j)),
                # targets: constant along vocab axis -> one DMA per row tile
                pl.BlockSpec((tile_rows, 1), lambda i, j: (i, 0)),
            ],
            # per-row NLL: distinct output block per row tile, resident
            # across the inner (vocab) reduction axis
            out_specs=pl.BlockSpec((tile_rows, 1), lambda i, j: (i, 0)),
            scratch_shapes=[
                pltpu.VMEM((tile_rows, 1), jnp.float32),   # running max
                pltpu.VMEM((tile_rows, 1), jnp.float32),   # running sum-exp
                pltpu.VMEM((tile_rows, 1), jnp.float32),   # running pick
            ],
        ),
        compiler_params=pltpu.CompilerParams(
            dimension_semantics=("parallel", "arbitrary"),
            vmem_limit_bytes=vmem_limit,
        ),
        cost_estimate=cost,
    )(logits_bf16, tgt2d)

    # Tiny final reduction in plain XLA: mean over non-ignored targets
    # (matches PyTorch reduction="mean" with ignore_index=-100; NaN if all
    # targets are ignored, same as PyTorch).
    valid_count = jnp.sum((targets_i32 != ignore_index).astype(jnp.float32))
    return jnp.sum(per_row_nll[:, 0]) / valid_count


def _reference(logits_bf16, targets_i32, ignore_index=_IGNORE_INDEX):
    """Pure-JAX reference of the same autocast'ed cross-entropy."""
    x = logits_bf16.astype(jnp.float32)
    lse = jax.scipy.special.logsumexp(x, axis=-1)
    safe_tgt = jnp.where(targets_i32 == ignore_index, 0, targets_i32)
    picked = jnp.take_along_axis(x, safe_tgt[:, None].astype(jnp.int32),
                                 axis=-1)[:, 0]
    nll = lse - picked
    valid = targets_i32 != ignore_index
    return jnp.sum(jnp.where(valid, nll, 0.0)) / jnp.sum(
        valid.astype(jnp.float32))


if __name__ == "__main__":
    # small LLM-ish shapes: batch=4, seq=128, vocab=1024  ->  N=512 rows
    # (grid = 2 row tiles x 2 vocab tiles, exercising both axes)
    batch, seq, vocab = 4, 128, 1024
    n = batch * seq

    key = jax.random.PRNGKey(0)
    k_logits, k_tgt = jax.random.split(key)

    # logits as produced by a bf16-autocast'ed model forward
    logits = jax.random.normal(k_logits, (n, vocab), dtype=jnp.float32)
    logits_bf16 = logits.astype(jnp.bfloat16)
    targets = jax.random.randint(k_tgt, (n,), 0, vocab, dtype=jnp.int32)
    # sprinkle a few ignored positions (PyTorch default ignore_index=-100)
    targets = targets.at[::37].set(_IGNORE_INDEX)

    loss = amp_criterion_forward(logits_bf16, targets)
    loss = jax.block_until_ready(loss)

    ref = jax.block_until_ready(_reference(logits_bf16, targets))
    assert jnp.allclose(loss, ref, rtol=1e-3, atol=1e-3), (loss, ref)

    print("KERNEL_OK")
</pallas_src>

<mosaic_0001>
module attributes {stable_mosaic.version = 11 : i64} {
  func.func @_amp_ce_kernel(%arg0: i32, %arg1: i32, %arg2: memref<256x512xbf16, #tpu.memory_space<vmem>>, %arg3: memref<256x1xi32, #tpu.memory_space<vmem>>, %arg4: memref<256x1xf32, #tpu.memory_space<vmem>>, %arg5: memref<256x1xf32, #tpu.memory_space<vmem>>, %arg6: memref<256x1xf32, #tpu.memory_space<vmem>>, %arg7: memref<256x1xf32, #tpu.memory_space<vmem>>) attributes {dimension_semantics = [#tpu.dimension_semantics<parallel>, #tpu.dimension_semantics<arbitrary>], iteration_bounds = array<i64: 2, 2>, scalar_prefetch = 0 : i64, scratch_operands = 3 : i64, tpu.core_type = #tpu.core_type<tc>, window_params = [{transform_indices = @transform_0, window_bounds = array<i64: 256, 512>}, {transform_indices = @transform_1, window_bounds = array<i64: 256, 1>}, {transform_indices = @transform_2, window_bounds = array<i64: 256, 1>}]} {
    %c0_i32 = arith.constant 0 : i32
    %0 = arith.cmpi eq, %arg1, %c0_i32 : i32
    %1 = arith.extui %0 : i1 to i32
    %c0_i32_0 = arith.constant 0 : i32
    %2 = arith.cmpi ne, %1, %c0_i32_0 : i32
    scf.if %2 {
      %cst_23 = arith.constant 0xFF800000 : f32
      %47 = vector.broadcast %cst_23 : f32 to vector<256x1xf32>
      %c0_24 = arith.constant 0 : index
      %c0_25 = arith.constant 0 : index
      %48 = vector.load %arg5[%c0_24, %c0_25] : memref<256x1xf32, #tpu.memory_space<vmem>>, vector<256x1xf32>
      tpu.vector_store %arg5[%c0_24, %c0_25], %47 {strides = array<i32>} : memref<256x1xf32, #tpu.memory_space<vmem>>, vector<256x1xf32>,
      %cst_26 = arith.constant 0.000000e+00 : f32
      %49 = vector.broadcast %cst_26 : f32 to vector<256x1xf32>
      %c0_27 = arith.constant 0 : index
      %c0_28 = arith.constant 0 : index
      %50 = vector.load %arg6[%c0_27, %c0_28] : memref<256x1xf32, #tpu.memory_space<vmem>>, vector<256x1xf32>
      tpu.vector_store %arg6[%c0_27, %c0_28], %49 {strides = array<i32>} : memref<256x1xf32, #tpu.memory_space<vmem>>, vector<256x1xf32>,
      %cst_29 = arith.constant 0.000000e+00 : f32
      %51 = vector.broadcast %cst_29 : f32 to vector<256x1xf32>
      %c0_30 = arith.constant 0 : index
      %c0_31 = arith.constant 0 : index
      %52 = vector.load %arg7[%c0_30, %c0_31] : memref<256x1xf32, #tpu.memory_space<vmem>>, vector<256x1xf32>
      tpu.vector_store %arg7[%c0_30, %c0_31], %51 {strides = array<i32>} : memref<256x1xf32, #tpu.memory_space<vmem>>, vector<256x1xf32>,
    } else {
    }
    %c0 = arith.constant 0 : index
    %c0_1 = arith.constant 0 : index
    %3 = vector.load %arg2[%c0, %c0_1] : memref<256x512xbf16, #tpu.memory_space<vmem>>, vector<256x512xbf16>
    %4 = arith.extf %3 : vector<256x512xbf16> to vector<256x512xf32>
    %c0_2 = arith.constant 0 : index
    %c0_3 = arith.constant 0 : index
    %5 = vector.load %arg3[%c0_2, %c0_3] : memref<256x1xi32, #tpu.memory_space<vmem>>, vector<256x1xi32>
    %c0_4 = arith.constant 0 : index
    %c0_5 = arith.constant 0 : index
    %6 = vector.load %arg5[%c0_4, %c0_5] : memref<256x1xf32, #tpu.memory_space<vmem>>, vector<256x1xf32>
    %cst = arith.constant dense<0xFF800000> : vector<256xf32>
    %7 = vector.multi_reduction <maximumf>, %4, %cst [1] : vector<256x512xf32> to vector<256xf32>
    %8 = vector.shape_cast %7 : vector<256xf32> to vector<256x1xf32>
    %9 = arith.maximumf %6, %8 : vector<256x1xf32>
    %10 = vector.broadcast %9 : vector<256x1xf32> to vector<256x512xf32>
    %11 = arith.subf %4, %10 : vector<256x512xf32>
    %c0_6 = arith.constant 0 : index
    %c0_7 = arith.constant 0 : index
    %12 = vector.load %arg6[%c0_6, %c0_7] : memref<256x1xf32, #tpu.memory_space<vmem>>, vector<256x1xf32>
    %13 = arith.subf %6, %9 : vector<256x1xf32>
    %14 = math.exp %13 : vector<256x1xf32>
    %15 = arith.mulf %12, %14 : vector<256x1xf32>
    %16 = math.exp %11 : vector<256x512xf32>
    %cst_8 = arith.constant dense<0.000000e+00> : vector<256xf32>
    %17 = vector.multi_reduction <add>, %16, %cst_8 [1] : vector<256x512xf32> to vector<256xf32>
    %18 = vector.shape_cast %17 : vector<256xf32> to vector<256x1xf32>
    %19 = arith.addf %15, %18 : vector<256x1xf32>
    %c0_9 = arith.constant 0 : index
    %c0_10 = arith.constant 0 : index
    %20 = vector.load %arg6[%c0_9, %c0_10] : memref<256x1xf32, #tpu.memory_space<vmem>>, vector<256x1xf32>
    tpu.vector_store %arg6[%c0_9, %c0_10], %19 {strides = array<i32>} : memref<256x1xf32, #tpu.memory_space<vmem>>, vector<256x1xf32>,
    %c0_11 = arith.constant 0 : index
    %c0_12 = arith.constant 0 : index
    %21 = vector.load %arg5[%c0_11, %c0_12] : memref<256x1xf32, #tpu.memory_space<vmem>>, vector<256x1xf32>
    tpu.vector_store %arg5[%c0_11, %c0_12], %9 {strides = array<i32>} : memref<256x1xf32, #tpu.memory_space<vmem>>, vector<256x1xf32>,
    %22 = tpu.iota {dimensions = array<i32: 1>} : vector<256x512xi32>
    %c512_i32 = arith.constant 512 : i32
    %23 = arith.muli %arg1, %c512_i32 : i32
    %24 = vector.broadcast %23 : i32 to vector<256x512xi32>
    %25 = arith.addi %22, %24 : vector<256x512xi32>
    %26 = vector.broadcast %5 : vector<256x1xi32> to vector<256x512xi32>
    %27 = arith.cmpi eq, %25, %26 : vector<256x512xi32>
    %28 = arith.extui %27 : vector<256x512xi1> to vector<256x512xi32>
    %29 = arith.sitofp %28 : vector<256x512xi32> to vector<256x512xf32>
    %cst_13 = arith.constant dense<0.000000e+00> : vector<256xf32>
    %30 = vector.multi_reduction <add>, %29, %cst_13 [1] : vector<256x512xf32> to vector<256xf32>
    %31 = vector.shape_cast %30 : vector<256xf32> to vector<256x1xf32>
    %c0_14 = arith.constant 0 : index
    %c0_15 = arith.constant 0 : index
    %32 = vector.load %arg7[%c0_14, %c0_15] : memref<256x1xf32, #tpu.memory_space<vmem>>, vector<256x1xf32>
    %cst_16 = arith.constant 0.000000e+00 : f32
    %33 = vector.broadcast %cst_16 : f32 to vector<256x512xf32>
    %34 = arith.select %27, %11, %33 : vector<256x512xi1>, vector<256x512xf32>
    %cst_17 = arith.constant dense<0.000000e+00> : vector<256xf32>
    %35 = vector.multi_reduction <add>, %34, %cst_17 [1] : vector<256x512xf32> to vector<256xf32>
    %36 = vector.shape_cast %35 : vector<256xf32> to vector<256x1xf32>
    %cst_18 = arith.constant 0.000000e+00 : f32
    %37 = vector.broadcast %cst_18 : f32 to vector<256x1xf32>
    %38 = arith.cmpf ogt, %31, %37 : vector<256x1xf32>
    %cst_19 = arith.constant 0.000000e+00 : f32
    %39 = vector.broadcast %cst_19 : f32 to vector<256x1xf32>
    %40 = arith.select %38, %9, %39 : vector<256x1xi1>, vector<256x1xf32>
    %41 = arith.addf %36, %40 : vector<256x1xf32>
    %42 = arith.addf %32, %41 : vector<256x1xf32>
    %c0_20 = arith.constant 0 : index
    %c0_21 = arith.constant 0 : index
    %43 = vector.load %arg7[%c0_20, %c0_21] : memref<256x1xf32, #tpu.memory_space<vmem>>, vector<256x1xf32>
    tpu.vector_store %arg7[%c0_20, %c0_21], %42 {strides = array<i32>} : memref<256x1xf32, #tpu.memory_space<vmem>>, vector<256x1xf32>,
    %c1_i32 = arith.constant 1 : i32
    %44 = arith.cmpi eq, %arg1, %c1_i32 : i32
    %45 = arith.extui %44 : i1 to i32
    %c0_i32_22 = arith.constant 0 : i32
    %46 = arith.cmpi ne, %45, %c0_i32_22 : i32
    scf.if %46 {
      %c0_23 = arith.constant 0 : index
      %c0_24 = arith.constant 0 : index
      %47 = vector.load %arg5[%c0_23, %c0_24] : memref<256x1xf32, #tpu.memory_space<vmem>>, vector<256x1xf32>
      %c0_25 = arith.constant 0 : index
      %c0_26 = arith.constant 0 : index
      %48 = vector.load %arg6[%c0_25, %c0_26] : memref<256x1xf32, #tpu.memory_space<vmem>>, vector<256x1xf32>
      %49 = math.log %48 : vector<256x1xf32>
      %50 = arith.addf %47, %49 : vector<256x1xf32>
      %c0_27 = arith.constant 0 : index
      %c0_28 = arith.constant 0 : index
      %51 = vector.load %arg7[%c0_27, %c0_28] : memref<256x1xf32, #tpu.memory_space<vmem>>, vector<256x1xf32>
      %52 = arith.subf %50, %51 : vector<256x1xf32>
      %c-100_i32 = arith.constant -100 : i32
      %53 = vector.broadcast %c-100_i32 : i32 to vector<256x1xi32>
      %54 = arith.cmpi ne, %5, %53 : vector<256x1xi32>
      %cst_29 = arith.constant 0.000000e+00 : f32
      %55 = vector.broadcast %cst_29 : f32 to vector<256x1xf32>
      %56 = arith.select %54, %52, %55 : vector<256x1xi1>, vector<256x1xf32>
      %c0_30 = arith.constant 0 : index
      %c0_31 = arith.constant 0 : index
      %57 = vector.load %arg4[%c0_30, %c0_31] : memref<256x1xf32, #tpu.memory_space<vmem>>, vector<256x1xf32>
      tpu.vector_store %arg4[%c0_30, %c0_31], %56 {strides = array<i32>} : memref<256x1xf32, #tpu.memory_space<vmem>>, vector<256x1xf32>,
    } else {
    }
    return
  }
  func.func @transform_0(%arg0: i32, %arg1: i32) -> (i32, i32) {
    %c0_i32 = arith.constant 0 : i32
    return %arg0, %arg1 : i32, i32
  }
  func.func @transform_1(%arg0: i32, %arg1: i32) -> (i32, i32) {
    %c0_i32 = arith.constant 0 : i32
    %c0_i32_0 = arith.constant 0 : i32
    return %arg0, %c0_i32 : i32, i32
  }
  func.func @transform_2(%arg0: i32, %arg1: i32) -> (i32, i32) {
    %c0_i32 = arith.constant 0 : i32
    %c0_i32_0 = arith.constant 0 : i32
    return %arg0, %c0_i32 : i32, i32
  }
}

</mosaic_0001>

<bundles_post_ra>
// kernel: tpu_custom_call.1
= control target key start
LH: loop header
LB: loop body
LE: loop exit
PB: predicated region body
PF: predicated region fallthrough
CT: control target
= control target key end

     0   :  { %7 = vsyncpa [#allocation6], 0  ;;  %s7553_s0 = inlined_call_operand.hbm [shape: bf16[512,1024], index: 0, kind: input, shape index: {}]   ;;  %s7554_s1 = inlined_call_operand.vmem [shape: s32[512,1], index: 1, kind: input, shape index: {}]   ;;  %s7555_s2 = inlined_call_operand.vmem [shape: f32[512,1], index: 2, kind: output, shape index: {}]  }
   0x1   :  { %9 = vsyncpa [#allocation6 + $0x1], 0  ;;  %s4001_s9 = smov 0   ;;  %s4003_s10 = smov 0  }
   0x2   :  { %s4005_s11 = smov 0   ;;  %s4007_s12 = smov 0  }
   0x3   :  { %s4009_s13 = smov 0   ;;  %s4011_s14 = smov 0  }
   0x4   :  { %s4013_s15 = smov 0   ;;  %s4015_s16 = smov 0  }
   0x5 LB: > { %s3267_s17 = sadd.s32 4294967295, %s3977_s16   ;;  %s24_s18 = sadd.s32 1, %s3969_s14  ;;  %s3977_s16 = sphi %s4015_s16, %s15_s16   ;;  %s3973_s15 = sphi %s4013_s15, %s8695_s15   ;;  %s3969_s14 = sphi %s4011_s14, %s8694_s14   ;;  %s3965_s13 = sphi %s4009_s13, %s8693_s13   ;;  %s3961_s12 = sphi %s4007_s12, %s8692_s12   ;;  %s3957_s11 = sphi %s4005_s11, %s8691_s11   ;;  %s3953_s10 = sphi %s4003_s10, %s8690_s10   ;;  %s3949_s9 = sphi %s4001_s9, %s8689_s9  }
   0x6   : > { %p25_p0 = scmp.ge.s32.totalorder %s24_s18, 2  ;;  %s27_s19 = sadd.s32 1, %s3973_s15 }
   0x7   : > { %s36_s20 = sadd.s32 1, %s3957_s11  ;;  %p43_p1 = scmp.ne.s32.totalorder %s3957_s11, %s3953_s10 }
   0x8   : > { %s8697_s18 = smov (%p25_p0, %s24_s18), 0  ;;  %s8699_s19 = smov (!%p25_p0, %s27_s19), %s3973_s15 }
   0x9   : > { %s32_s21 = ssub.s32 %s3969_s14, %s8697_s18  ;;  %p44_p2 = scmp.eq.s32.totalorder %s3977_s16, 0 }
   0xa   : > { %p29_p3 = scmp.ge.s32.totalorder %s8699_s19, 2  ;;  %p49_p4 = scmp.ne.s32.totalorder %s3953_s10, %s3949_s9 }
   0xb   : > { %p4052_p5 = por %p44_p2, %p43_p1  ;;  %p50_p6 = scmp.eq.s32.totalorder %s3267_s17, 0 }
   0xc   : > { %s8701_s19 = smov (%p29_p3, %s8699_s19), 0  ;;  %p3422_p8 = scmp.lt.s32.totalorder %s3977_s16, 4 }
   0xd   : > { %p4058_p7 = por %p50_p6, %p49_p4  ;;  %s31_s24 = ssub.s32 %s3973_s15, %s8701_s19 }
   0xe   : > { %s33_s25 = sor.u32 %s32_s21, %s31_s24  ;;  %s125_s26 = sand.u32 1, %s3957_s11  }
   0xf   : > { %p34_p9 = scmp.eq.s32.totalorder %s33_s25, 0  ;;  %s3271_s27 = sshll.u32 %s125_s26, 9 }
  0x10   : > { %s3273_s28 = sshll.u32 %s3969_s14, 2  ;;  %s3415_s30 = sshll.u32 %s3973_s15, 8 }
  0x11   : > { %s4068_s29 = scalar_select %p34_p9, %s3957_s11, %s36_s20  }
  0x12   : > { %s135_s3 = sadd.s32 %s3415_s30, %s3273_s28  ;;  %s129_s4 = scalar_lea.vmem [#allocation5], %s3271_s27 }
  0x13   : > { %s140_s5 = sshll.u32 %s129_s4, 4  ;;  %s3275_s6 = sshll.u32 %s135_s3, 2  ;;  %s141_s5 = int_to_ptr.vmem [resolvable:$true] %s140_s5 }
  0x14   : > { %s137_s9 = scalar_lea.hbm %s7553_s0, %s3275_s6  ;;  %p3419_p10 = pnand %p3422_p8, %p4052_p5 }
  0x15   : > { %s138_s17 = sshll.u32 %s137_s9, 4  ;;  %s126_s21 = scalar_lea.sflag [#allocation6], %s125_s26  ;;  %s139_s17 = int_to_ptr.hbm [resolvable:$true] %s138_s17 }
  0x16   : > { %s3979_s20 = smov 512   ;;  %s3980_s24 = smov 256  }
  0x17   : > { %s3981_s25 = smov 16   ;;  %p3276_p11 = scmp.ge.s32.totalorder %s3977_s16, 1 }
  0x18   : > { %3421 = dma.hbm_to_vmem [thread:$0]  (!%p3419_p10), %s139_s17, 8192, %s141_s5, %s126_s21, %s3979_s20, %s3980_s24, %s3981_s25  }
  0x19   : > { %p157_p12 = scmp.lt.s32.totalorder %s3977_s16, 5 }
  0x1b   : > { %p158_p13 = pnand %p3276_p11, %p157_p12 }
  0x1d   : > { %161 = sbr.rel (%p158_p13) target bundleno = 1172 (0x494), region = 28 }
  0x22   : > { %s163_s27 = sand.u32 1, %s3953_s10  }
  0x23   : > { %s3277_s28 = sshll.u32 %s163_s27, 9  ;;  %s164_s30 = scalar_lea.sflag [#allocation6], %s163_s27 }
  0x24   : > { %s4081_s3 = scalar_lea.vmem [#allocation5], %s3277_s28 }
  0x25   : > { %3944 = dma.done.wait (%p4058_p7), %s164_s30, 8192  }
  0x26   : > { %3946 = vsyncadd (%p4058_p7), %s164_s30, 4294959104  ;;  %s3278_s22 = sshll.u32 %s3965_s13, 5  ;;  %p3282_p1 = scmp.ne.s32.totalorder %s3961_s12, 0 }
  0x27   : > { %p197_p0 = scmp.lt.s32.totalorder %s3278_s22, 63 }
  0x28   : > { %211 = sbr.rel (%p3282_p1) target bundleno = 142 (0x8e), region = 36 }
  0x29   : > { %s8703_s22 = smov (!%p197_p0, %s3278_s22), 63 }
  0x2a   : > { %s3279_s26 = sshll.u32 %s8703_s22, 3 }
  0x2b   : > { %s4091_s6 = scalar_lea.vmem %s7554_s1, %s3279_s26  ;;  %s4096_s9 = scalar_lea.vmem %s7555_s2, %s3279_s26 }
  0x2d   : > { %vm212_vm0 = vcmask 7168   ;;  %v3982_v0 = vmov -inf   ;;  %v3983_v1 = vmov 0.0  }
  0x2e   : > { %213 = vst.msk [vmem:[#allocation2] sm:$0xff] %vm212_vm0, %v3982_v0 }
  0x2f   : > { %214 = vst.msk [vmem:[#allocation2 + $0x8] sm:$0xff] %vm212_vm0, %v3982_v0 }
  0x30   : > { %215 = vst.msk [vmem:[#allocation2 + $0x10] sm:$0xff] %vm212_vm0, %v3982_v0 }
  0x31   : > { %216 = vst.msk [vmem:[#allocation2 + $0x18] sm:$0xff] %vm212_vm0, %v3982_v0 }
  0x32   : > { %217 = vst.msk [vmem:[#allocation2 + $0x20] sm:$0xff] %vm212_vm0, %v3982_v0 }
  0x33   : > { %218 = vst.msk [vmem:[#allocation2 + $0x28] sm:$0xff] %vm212_vm0, %v3982_v0 }
  0x34   : > { %219 = vst.msk [vmem:[#allocation2 + $0x30] sm:$0xff] %vm212_vm0, %v3982_v0 }
  0x35   : > { %220 = vst.msk [vmem:[#allocation2 + $0x38] sm:$0xff] %vm212_vm0, %v3982_v0 }
  0x36   : > { %221 = vst.msk [vmem:[#allocation2 + $0x40] sm:$0xff] %vm212_vm0, %v3982_v0 }
  0x37   : > { %222 = vst.msk [vmem:[#allocation2 + $0x48] sm:$0xff] %vm212_vm0, %v3982_v0 }
  0x38   : > { %223 = vst.msk [vmem:[#allocation2 + $0x50] sm:$0xff] %vm212_vm0, %v3982_v0 }
  0x39   : > { %224 = vst.msk [vmem:[#allocation2 + $0x58] sm:$0xff] %vm212_vm0, %v3982_v0 }
  0x3a   : > { %225 = vst.msk [vmem:[#allocation2 + $0x60] sm:$0xff] %vm212_vm0, %v3982_v0 }
  0x3b   : > { %226 = vst.msk [vmem:[#allocation2 + $0x68] sm:$0xff] %vm212_vm0, %v3982_v0 }
  0x3c   : > { %227 = vst.msk [vmem:[#allocation2 + $0x70] sm:$0xff] %vm212_vm0, %v3982_v0 }
  0x3d   : > { %228 = vst.msk [vmem:[#allocation2 + $0x78] sm:$0xff] %vm212_vm0, %v3982_v0 }
  0x3e   : > { %229 = vst.msk [vmem:[#allocation2 + $0x80] sm:$0xff] %vm212_vm0, %v3982_v0 }
  0x3f   : > { %230 = vst.msk [vmem:[#allocation2 + $0x88] sm:$0xff] %vm212_vm0, %v3982_v0 }
  0x40   : > { %231 = vst.msk [vmem:[#allocation2 + $0x90] sm:$0xff] %vm212_vm0, %v3982_v0 }
  0x41   : > { %232 = vst.msk [vmem:[#allocation2 + $0x98] sm:$0xff] %vm212_vm0, %v3982_v0 }
  0x42   : > { %233 = vst.msk [vmem:[#allocation2 + $0xa0] sm:$0xff] %vm212_vm0, %v3982_v0 }
  0x43   : > { %234 = vst.msk [vmem:[#allocation2 + $0xa8] sm:$0xff] %vm212_vm0, %v3982_v0 }
  0x44   : > { %235 = vst.msk [vmem:[#allocation2 + $0xb0] sm:$0xff] %vm212_vm0, %v3982_v0 }
  0x45   : > { %236 = vst.msk [vmem:[#allocation2 + $0xb8] sm:$0xff] %vm212_vm0, %v3982_v0 }
  0x46   : > { %237 = vst.msk [vmem:[#allocation2 + $0xc0] sm:$0xff] %vm212_vm0, %v3982_v0 }
  0x47   : > { %238 = vst.msk [vmem:[#allocation2 + $0xc8] sm:$0xff] %vm212_vm0, %v3982_v0 }
  0x48   : > { %239 = vst.msk [vmem:[#allocation2 + $0xd0] sm:$0xff] %vm212_vm0, %v3982_v0 }
  0x49   : > { %240 = vst.msk [vmem:[#allocation2 + $0xd8] sm:$0xff] %vm212_vm0, %v3982_v0 }
  0x4a   : > { %241 = vst.msk [vmem:[#allocation2 + $0xe0] sm:$0xff] %vm212_vm0, %v3982_v0 }
  0x4b   : > { %242 = vst.msk [vmem:[#allocation2 + $0xe8] sm:$0xff] %vm212_vm0, %v3982_v0 }
  0x4c   : > { %243 = vst.msk [vmem:[#allocation2 + $0xf0] sm:$0xff] %vm212_vm0, %v3982_v0 }
  0x4d   : > { %244 = vst.msk [vmem:[#allocation2 + $0xf8] sm:$0xff] %vm212_vm0, %v3982_v0 }
  0x4e   : > { %245 = vst.msk [vmem:[#allocation3] sm:$0xff] %vm212_vm0, %v3983_v1 }
  0x4f   : > { %246 = vst.msk [vmem:[#allocation3 + $0x8] sm:$0xff] %vm212_vm0, %v3983_v1 }
  0x50   : > { %247 = vst.msk [vmem:[#allocation3 + $0x10] sm:$0xff] %vm212_vm0, %v3983_v1 }
  0x51   : > { %248 = vst.msk [vmem:[#allocation3 + $0x18] sm:$0xff] %vm212_vm0, %v3983_v1 }
  0x52   : > { %249 = vst.msk [vmem:[#allocation3 + $0x20] sm:$0xff] %vm212_vm0, %v3983_v1 }
  0x53   : > { %250 = vst.msk [vmem:[#allocation3 + $0x28] sm:$0xff] %vm212_vm0, %v3983_v1 }
  0x54   : > { %251 = vst.msk [vmem:[#allocation3 + $0x30] sm:$0xff] %vm212_vm0, %v3983_v1 }
  0x55   : > { %252 = vst.msk [vmem:[#allocation3 + $0x38] sm:$0xff] %vm212_vm0, %v3983_v1 }
  0x56   : > { %253 = vst.msk [vmem:[#allocation3 + $0x40] sm:$0xff] %vm212_vm0, %v3983_v1 }
  0x57   : > { %254 = vst.msk [vmem:[#allocation3 + $0x48] sm:$0xff] %vm212_vm0, %v3983_v1 }
  0x58   : > { %255 = vst.msk [vmem:[#allocation3 + $0x50] sm:$0xff] %vm212_vm0, %v3983_v1 }
  0x59   : > { %256 = vst.msk [vmem:[#allocation3 + $0x58] sm:$0xff] %vm212_vm0, %v3983_v1 }
  0x5a   : > { %257 = vst.msk [vmem:[#allocation3 + $0x60] sm:$0xff] %vm212_vm0, %v3983_v1 }
  0x5b   : > { %258 = vst.msk [vmem:[#allocation3 + $0x68] sm:$0xff] %vm212_vm0, %v3983_v1 }
  0x5c   : > { %259 = vst.msk [vmem:[#allocation3 + $0x70] sm:$0xff] %vm212_vm0, %v3983_v1 }
  0x5d   : > { %260 = vst.msk [vmem:[#allocation3 + $0x78] sm:$0xff] %vm212_vm0, %v3983_v1 }
  0x5e   : > { %261 = vst.msk [vmem:[#allocation3 + $0x80] sm:$0xff] %vm212_vm0, %v3983_v1 }
  0x5f   : > { %262 = vst.msk [vmem:[#allocation3 + $0x88] sm:$0xff] %vm212_vm0, %v3983_v1 }
  0x60   : > { %263 = vst.msk [vmem:[#allocation3 + $0x90] sm:$0xff] %vm212_vm0, %v3983_v1 }
  0x61   : > { %264 = vst.msk [vmem:[#allocation3 + $0x98] sm:$0xff] %vm212_vm0, %v3983_v1 }
  0x62   : > { %265 = vst.msk [vmem:[#allocation3 + $0xa0] sm:$0xff] %vm212_vm0, %v3983_v1 }
  0x63   : > { %266 = vst.msk [vmem:[#allocation3 + $0xa8] sm:$0xff] %vm212_vm0, %v3983_v1 }
  0x64   : > { %267 = vst.msk [vmem:[#allocation3 + $0xb0] sm:$0xff] %vm212_vm0, %v3983_v1 }
  0x65   : > { %268 = vst.msk [vmem:[#allocation3 + $0xb8] sm:$0xff] %vm212_vm0, %v3983_v1 }
  0x66   : > { %269 = vst.msk [vmem:[#allocation3 + $0xc0] sm:$0xff] %vm212_vm0, %v3983_v1 }
  0x67   : > { %270 = vst.msk [vmem:[#allocation3 + $0xc8] sm:$0xff] %vm212_vm0, %v3983_v1 }
  0x68   : > { %271 = vst.msk [vmem:[#allocation3 + $0xd0] sm:$0xff] %vm212_vm0, %v3983_v1 }
  0x69   : > { %272 = vst.msk [vmem:[#allocation3 + $0xd8] sm:$0xff] %vm212_vm0, %v3983_v1 }
  0x6a   : > { %273 = vst.msk [vmem:[#allocation3 + $0xe0] sm:$0xff] %vm212_vm0, %v3983_v1 }
  0x6b   : > { %274 = vst.msk [vmem:[#allocation3 + $0xe8] sm:$0xff] %vm212_vm0, %v3983_v1 }
  0x6c   : > { %275 = vst.msk [vmem:[#allocation3 + $0xf0] sm:$0xff] %vm212_vm0, %v3983_v1 }
  0x6d   : > { %276 = vst.msk [vmem:[#allocation3 + $0xf8] sm:$0xff] %vm212_vm0, %v3983_v1 }
  0x6e   : > { %277 = vst.msk [vmem:[#allocation4] sm:$0xff] %vm212_vm0, %v3983_v1 }
  0x6f   : > { %278 = vst.msk [vmem:[#allocation4 + $0x8] sm:$0xff] %vm212_vm0, %v3983_v1 }
  0x70   : > { %279 = vst.msk [vmem:[#allocation4 + $0x10] sm:$0xff] %vm212_vm0, %v3983_v1 }
  0x71   : > { %280 = vst.msk [vmem:[#allocation4 + $0x18] sm:$0xff] %vm212_vm0, %v3983_v1 }
  0x72   : > { %281 = vst.msk [vmem:[#allocation4 + $0x20] sm:$0xff] %vm212_vm0, %v3983_v1 }
  0x73   : > { %282 = vst.msk [vmem:[#allocation4 + $0x28] sm:$0xff] %vm212_vm0, %v3983_v1 }
  0x74   : > { %283 = vst.msk [vmem:[#allocation4 + $0x30] sm:$0xff] %vm212_vm0, %v3983_v1 }
  0x75   : > { %284 = vst.msk [vmem:[#allocation4 + $0x38] sm:$0xff] %vm212_vm0, %v3983_v1 }
  0x76   : > { %285 = vst.msk [vmem:[#allocation4 + $0x40] sm:$0xff] %vm212_vm0, %v3983_v1 }
  0x77   : > { %286 = vst.msk [vmem:[#allocation4 + $0x48] sm:$0xff] %vm212_vm0, %v3983_v1 }
  0x78   : > { %287 = vst.msk [vmem:[#allocation4 + $0x50] sm:$0xff] %vm212_vm0, %v3983_v1 }
  0x79   : > { %288 = vst.msk [vmem:[#allocation4 + $0x58] sm:$0xff] %vm212_vm0, %v3983_v1 }
  0x7a   : > { %289 = vst.msk [vmem:[#allocation4 + $0x60] sm:$0xff] %vm212_vm0, %v3983_v1 }
  0x7b   : > { %290 = vst.msk [vmem:[#allocation4 + $0x68] sm:$0xff] %vm212_vm0, %v3983_v1 }
  0x7c   : > { %291 = vst.msk [vmem:[#allocation4 + $0x70] sm:$0xff] %vm212_vm0, %v3983_v1 }
  0x7d   : > { %292 = vst.msk [vmem:[#allocation4 + $0x78] sm:$0xff] %vm212_vm0, %v3983_v1 }
  0x7e   : > { %293 = vst.msk [vmem:[#allocation4 + $0x80] sm:$0xff] %vm212_vm0, %v3983_v1 }
  0x7f   : > { %294 = vst.msk [vmem:[#allocation4 + $0x88] sm:$0xff] %vm212_vm0, %v3983_v1 }
  0x80   : > { %295 = vst.msk [vmem:[#allocation4 + $0x90] sm:$0xff] %vm212_vm0, %v3983_v1 }
  0x81   : > { %296 = vst.msk [vmem:[#allocation4 + $0x98] sm:$0xff] %vm212_vm0, %v3983_v1 }
  0x82   : > { %297 = vst.msk [vmem:[#allocation4 + $0xa0] sm:$0xff] %vm212_vm0, %v3983_v1 }
  0x83   : > { %298 = vst.msk [vmem:[#allocation4 + $0xa8] sm:$0xff] %vm212_vm0, %v3983_v1 }
  0x84   : > { %299 = vst.msk [vmem:[#allocation4 + $0xb0] sm:$0xff] %vm212_vm0, %v3983_v1 }
  0x85   : > { %300 = vst.msk [vmem:[#allocation4 + $0xb8] sm:$0xff] %vm212_vm0, %v3983_v1 }
  0x86   : > { %301 = vst.msk [vmem:[#allocation4 + $0xc0] sm:$0xff] %vm212_vm0, %v3983_v1 }
  0x87   : > { %302 = vst.msk [vmem:[#allocation4 + $0xc8] sm:$0xff] %vm212_vm0, %v3983_v1 }
  0x88   : > { %303 = vst.msk [vmem:[#allocation4 + $0xd0] sm:$0xff] %vm212_vm0, %v3983_v1 }
  0x89   : > { %304 = vst.msk [vmem:[#allocation4 + $0xd8] sm:$0xff] %vm212_vm0, %v3983_v1 }
  0x8a   : > { %305 = vst.msk [vmem:[#allocation4 + $0xe0] sm:$0xff] %vm212_vm0, %v3983_v1 }
  0x8b   : > { %306 = vst.msk [vmem:[#allocation4 + $0xe8] sm:$0xff] %vm212_vm0, %v3983_v1 }
  0x8c   : > { %307 = vst.msk [vmem:[#allocation4 + $0xf0] sm:$0xff] %vm212_vm0, %v3983_v1 }
  0x8d   : > { %308 = vst.msk [vmem:[#allocation4 + $0xf8] sm:$0xff] %vm212_vm0, %v3983_v1 }
  0x8e PF: > { %v4260_v2 = vld [vmem:[%s4081_s3 + $0x40] sm:$0xff]  ;;  %v4263_v3 = vld [vmem:[%s4081_s3 + $0x48] sm:$0xff]  ;;  %v4285_v15 = vld [vmem:[%s4081_s3 + $0x50] sm:$0xff]  ;;  %vm7940_vm1 = vcmask 7168   ;;  %s3283_s13 = sshll.u32 %s3961_s12, 9  ;;  %p3412_p2 = scmp.ne.s32.totalorder %s3961_s12, 1 }
  0x8f   : > { %v4266_v4 = vld [vmem:[%s4081_s3 + $0x20] sm:$0xff]  ;;  %v7621_v5 = vunpack.c.l.bf16 %v4260_v2  ;;  %v7618_v6 = vunpack.c.h.bf16 %v4260_v2  ;;  %v7617_v7 = vunpack.c.l.bf16 %v4263_v3  ;;  %v4272_v8 = vld [vmem:[%s4081_s3 + $0x28] sm:$0xff]  ;;  %v7615_v11 = vunpack.c.h.bf16 %v4263_v3  ;;  %v4288_v16 = vld [vmem:[%s4081_s3 + $0x58] sm:$0xff] }
  0x90   : > { %v4275_v9 = vld [vmem:[%s4081_s3] sm:$0xff]  ;;  %v4278_v10 = vld [vmem:[%s4081_s3 + $0x8] sm:$0xff]  ;;  %v7610_v12 = vunpack.c.l.bf16 %v4266_v4  ;;  %v7609_v13 = vunpack.c.h.bf16 %v4266_v4  ;;  %v7603_v14 = vunpack.c.l.bf16 %v4272_v8  ;;  %v4298_v21 = vld [vmem:[%s4081_s3 + $0x30] sm:$0xff]  ;;  %v7595_v22 = vunpack.c.h.bf16 %v4272_v8 }
  0x91   : > { %v585_v17 = vmax.f32 %v7621_v5, %v7618_v6  ;;  %v7635_v18 = vunpack.c.l.bf16 %v4275_v9  ;;  %v7633_v19 = vunpack.c.h.bf16 %v4275_v9  ;;  %v7628_v20 = vunpack.c.l.bf16 %v4278_v10  ;;  %v4308_v26 = vld [vmem:[%s4081_s3 + $0x38] sm:$0xff]  ;;  %v4319_v31 = vld [vmem:[%s4081_s3 + $0x10] sm:$0xff]  ;;  %v4338_v40 = vld [vmem:[%s4081_s3 + $0x80] sm:$0xff] }
  0x92   : > { %v575_v23 = vmax.f32 %v7610_v12, %v7609_v13  ;;  %v7587_v24 = vunpack.c.l.bf16 %v4285_v15  ;;  %v7580_v25 = vunpack.c.h.bf16 %v4285_v15  ;;  %v7627_v28 = vunpack.c.h.bf16 %v4278_v10  ;;  %v4330_v36 = vld [vmem:[%s4081_s3 + $0x18] sm:$0xff]  ;;  %v4349_v45 = vld [vmem:[%s4081_s3 + $0x70] sm:$0xff]  ;;  %v4361_v52 = vld [vmem:[%s4081_s3 + $0x88] sm:$0xff] }
  0x93   : > { %v586_v27 = vmax.f32 %v585_v17, %v7617_v7  ;;  %v565_v29 = vmax.f32 %v7635_v18, %v7633_v19  ;;  %v7570_v30 = vunpack.c.l.bf16 %v4288_v16  ;;  %v7600_v34 = vunpack.c.l.bf16 %v4298_v21  ;;  %v4371_v57 = vld [vmem:[%s4081_s3 + $0x78] sm:$0xff]  ;;  %v4385_v0 = vld [vmem:[%s4081_s3 + $0xb0] sm:$0xff]  ;;  %v4580_v12 = vld [vmem:[%s4081_s3 + $0x120] sm:$0xff] }
  0x94   : > { %v576_v32 = vmax.f32 %v575_v23, %v7603_v14  ;;  %v590_v33 = vmax.f32 %v7587_v24, %v7580_v25  ;;  %v7599_v35 = vunpack.c.h.bf16 %v4298_v21  ;;  %v7592_v39 = vunpack.c.l.bf16 %v4308_v26  ;;  %v4565_v14 = vld [vmem:[%s4081_s3 + $0x130] sm:$0xff]  ;;  %v4606_v6 = vld [vmem:[%s4081_s3 + $0x128] sm:$0xff]  ;;  %v4619_v5 = vld [vmem:[%s4081_s3 + $0x160] sm:$0xff] }
  0x95   : > { %v587_v37 = vmax.f32 %v586_v27, %v7615_v11  ;;  %v566_v38 = vmax.f32 %v565_v29, %v7628_v20  ;;  %v7562_v42 = vunpack.c.h.bf16 %v4288_v16  ;;  %v7575_v44 = vunpack.c.l.bf16 %v4319_v31  ;;  %v4397_v29 = vld [vmem:[%s4081_s3 + $0xa0] sm:$0xff]  ;;  %7979 = vst [vmem:[#allocation10_spill] sm:$0xff] %v4619_v5  ;;  %v4634_v20 = vld [vmem:[%s4081_s3 + $0x150] sm:$0xff] }
  0x96   : > { %v577_v41 = vmax.f32 %v576_v32, %v7595_v22  ;;  %v580_v43 = vmax.f32 %v7600_v34, %v7599_v35  ;;  %v591_v47 = vmax.f32 %v590_v33, %v7570_v30  ;;  %v7572_v48 = vunpack.c.h.bf16 %v4319_v31  ;;  %v4537_v22 = vld [vmem:[%s4081_s3 + $0x108] sm:$0xff]  ;;  %v4552_v34 = vld [vmem:[%s4081_s3 + $0xf8] sm:$0xff]  ;;  %7980 = vst [vmem:[#allocation11_spill] sm:$0xff] %v4634_v20  ;;  %v4673_v18 = vld [vmem:[%s4081_s3 + $0x190] sm:$0xff] }
  0x97   : > { %588 = vmax.xlane.f32.xlu2 %v587_v37  ;;  %v567_v46 = vmax.f32 %v566_v38, %v7627_v28  ;;  %v7559_v49 = vunpack.c.l.bf16 %v4330_v36  ;;  %v7591_v50 = vunpack.c.h.bf16 %v4308_v26  ;;  %v7568_v53 = vunpack.c.l.bf16 %v4338_v40  ;;  %7986 = vst [vmem:[#allocation16_spill] sm:$0xff] %v4673_v18 }
  0x98   : > { %578 = vmax.xlane.f32.xlu1 %v577_v41  ;;  %v581_v51 = vmax.f32 %v580_v43, %v7592_v39  ;;  %v7563_v54 = vunpack.c.h.bf16 %v4338_v40  ;;  %v7558_v55 = vunpack.c.h.bf16 %v4330_v36  ;;  %v570_v56 = vmax.f32 %v7575_v44, %v7572_v48  ;;  %v4405_v41 = vld [vmem:[%s4081_s3 + $0xb8] sm:$0xff]  ;;  %v4408_v43 = vld [vmem:[%s4081_s3 + $0x60] sm:$0xff]  ;;  %v4526_v39 = vld [vmem:[%s4081_s3 + $0xf0] sm:$0xff] }
  0x99   : > { %568 = vmax.xlane.f32.xlu0 %v567_v46  ;;  %v7571_v58 = vunpack.c.l.bf16 %v4349_v45  ;;  %v7569_v59 = vunpack.c.h.bf16 %v4349_v45  ;;  %v592_v60 = vmax.f32 %v591_v47, %v7562_v42  ;;  %v7556_v62 = vunpack.c.l.bf16 %v4361_v52  ;;  %v4442_v42 = vld [vmem:[%s4081_s3 + $0xd0] sm:$0xff]  ;;  %v4475_v44 = vld [vmem:[%s4081_s3 + $0xd8] sm:$0xff] }
  0x9a   : > { %v571_v61 = vmax.f32 %v570_v56, %v7559_v49  ;;  %v605_v63 = vmax.f32 %v7568_v53, %v7563_v54  ;;  %v582_v1 = vmax.f32 %v581_v51, %v7591_v50  ;;  %v7557_v17 = vunpack.c.l.bf16 %v4371_v57  ;;  %v4414_v51 = vld [vmem:[%s4081_s3 + $0xa8] sm:$0xff]  ;;  %v4459_v53 = vld [vmem:[%s4081_s3 + $0x98] sm:$0xff] }
  0x9b   : > { %v600_v23 = vmax.f32 %v7571_v58, %v7569_v59  ;;  %v7561_v32 = vunpack.c.l.bf16 %v4385_v0  ;;  %v7560_v33 = vunpack.c.h.bf16 %v4385_v0  ;;  %v7564_v37 = vunpack.c.h.bf16 %v4361_v52 }
  0x9c   : > { %v572_v27 = vmax.f32 %v571_v61, %v7558_v55  ;;  %v606_v38 = vmax.f32 %v605_v63, %v7556_v62  ;;  %v7565_v46 = vunpack.c.h.bf16 %v4371_v57  ;;  %v7567_v56 = vunpack.c.l.bf16 %v4397_v29  ;;  %v4419_v61 = vld [vmem:[%s4081_s3 + $0x68] sm:$0xff] }
  0x9d   : > { %v601_v47 = vmax.f32 %v600_v23, %v7557_v17  ;;  %v7573_v63 = vunpack.c.l.bf16 %v4405_v41  ;;  %v7579_v23 = vunpack.c.l.bf16 %v4408_v43  ;;  %v7576_v62 = vunpack.c.h.bf16 %v4408_v43 }
  0x9e   : > { %v607_v17 = vmax.f32 %v606_v38, %v7564_v37  ;;  %v7577_v55 = vunpack.c.l.bf16 %v4414_v51  ;;  %v7574_v49 = vunpack.c.l.bf16 %v4419_v61  ;;  %v7578_v54 = vunpack.c.h.bf16 %v4419_v61  ;;  %v4450_v37 = vld [vmem:[%s4081_s3 + $0x90] sm:$0xff] }
  0x9f   : > { %593 = vmax.xlane.f32.xlu2 %v592_v60  ;;  %v7566_v60 = vunpack.c.h.bf16 %v4397_v29  ;;  %v595_v38 = vmax.f32 %v7579_v23, %v7576_v62  ;;  %v7589_v58 = vunpack.c.l.bf16 %v4442_v42  ;;  %v7583_v48 = vunpack.c.l.bf16 %v4450_v37 }
  0xa0   : > { %583 = vmax.xlane.f32.xlu1 %v582_v1  ;;  %v620_v1 = vmax.f32 %v7561_v32, %v7560_v33  ;;  %v4439_v32 = vld [vmem:[%s4081_s3 + $0xe0] sm:$0xff]  ;;  %v7590_v62 = vunpack.c.l.bf16 %v4459_v53  ;;  %v7632_v11 = vunpack.c.l.bf16 %v4580_v12  ;;  %v7984_v19 = vunpack.c.l.bf16 %v4619_v5 }
  0xa1   : > { %573 = vmax.xlane.f32.xlu0 %v572_v27  ;;  %v602_v27 = vmax.f32 %v601_v47, %v7565_v46  ;;  %v615_v33 = vmax.f32 %v7567_v56, %v7566_v60  ;;  %v7582_v47 = vunpack.c.h.bf16 %v4405_v41  ;;  %v7586_v60 = vunpack.c.h.bf16 %v4414_v51 }
  0xa2   : > { %v621_v46 = vmax.f32 %v620_v1, %v7573_v63  ;;  %v596_v56 = vmax.f32 %v595_v38, %v7574_v49  ;;  %v7585_v59 = vunpack.c.l.bf16 %v4439_v32  ;;  %v7584_v30 = vunpack.c.h.bf16 %v4439_v32  ;;  %v4468_v63 = vld [vmem:[%s4081_s3 + $0xe8] sm:$0xff] }
  0xa3   : > { %v616_v1 = vmax.f32 %v615_v33, %v7577_v55  ;;  %v7588_v38 = vunpack.c.h.bf16 %v4442_v42  ;;  %v7581_v49 = vunpack.c.h.bf16 %v4450_v37  ;;  %v4484_v55 = vld [vmem:[%s4081_s3 + $0xc0] sm:$0xff] }
  0xa4   : > { %v635_v23 = vmax.f32 %v7585_v59, %v7584_v30  ;;  %v4509_v30 = vld [vmem:[%s4081_s3 + $0x100] sm:$0xff]  ;;  %v7597_v59 = vunpack.c.l.bf16 %v4484_v55 }
  0xa5   : > { %v610_v33 = vmax.f32 %v7583_v48, %v7581_v49  ;;  %v617_v25 = vmax.f32 %v616_v1, %v7586_v60  ;;  %v7598_v49 = vunpack.c.l.bf16 %v4475_v44  ;;  %v7596_v1 = vunpack.c.h.bf16 %v4484_v55 }
  0xa6   : > { %v7602_v60 = vunpack.c.h.bf16 %v4468_v63 }
  0xa7   : > { %608 = vmax.xlane.f32.xlu2 %v607_v17  ;;  %v597_v17 = vmax.f32 %v596_v56, %v7578_v54  ;;  %v622_v56 = vmax.f32 %v621_v46, %v7582_v47  ;;  %v7594_v54 = vunpack.c.l.bf16 %v4468_v63  ;;  %v630_v46 = vmax.f32 %v7589_v58, %v7588_v38  ;;  %v4504_v47 = vld [vmem:[%s4081_s3 + $0x110] sm:$0xff] }
  0xa8   : > { %603 = vmax.xlane.f32.xlu1 %v602_v27  ;;  %v7593_v27 = vunpack.c.h.bf16 %v4459_v53  ;;  %v611_v48 = vmax.f32 %v610_v33, %v7590_v62  ;;  %v7605_v33 = vunpack.c.l.bf16 %v4504_v47  ;;  %v7604_v62 = vunpack.c.h.bf16 %v4504_v47 }
  0xa9   : > { %598 = vmax.xlane.f32.xlu0 %v597_v17  ;;  %v4494_v17 = vld [vmem:[%s4081_s3 + $0xc8] sm:$0xff]  ;;  %v636_v58 = vmax.f32 %v635_v23, %v7594_v54  ;;  %v625_v50 = vmax.f32 %v7597_v59, %v7596_v1  ;;  %v7608_v23 = vunpack.c.l.bf16 %v4509_v30  ;;  %v7607_v54 = vunpack.c.h.bf16 %v4509_v30 }
  0xaa   : > { %7977 = vst [vmem:[#allocation8_spill] sm:$0xff] %v4494_v17  ;;  %v612_v24 = vmax.f32 %v611_v48, %v7593_v27  ;;  %v7601_v38 = vunpack.c.l.bf16 %v4494_v17  ;;  %v7606_v48 = vunpack.c.h.bf16 %v4475_v44  ;;  %v4532_v27 = vld [vmem:[%s4081_s3 + $0x118] sm:$0xff]  ;;  %v7611_v1 = vunpack.c.h.bf16 %v4494_v17 }
  0xab   : > { %v7614_v59 = vunpack.c.l.bf16 %v4526_v39  ;;  %v7613_v35 = vunpack.c.l.bf16 %v4532_v27 }
  0xaf   : > { %623 = vmax.xlane.f32.xlu2 %v622_v56  ;;  %v631_v56 = vmax.f32 %v630_v46, %v7598_v49  ;;  %v7612_v46 = vunpack.c.h.bf16 %v4526_v39  ;;  %v637_v49 = vmax.f32 %v636_v58, %v7602_v60  ;;  %v645_v58 = vmax.f32 %v7608_v23, %v7607_v54  ;;  %v4562_v60 = vld [vmem:[%s4081_s3 + $0x140] sm:$0xff] }
  0xb0   : > { %618 = vmax.xlane.f32.xlu1 %v617_v25  ;;  %v626_v25 = vmax.f32 %v625_v50, %v7601_v38  ;;  %v7616_v38 = vunpack.c.l.bf16 %v4537_v22  ;;  %v7623_v23 = vunpack.c.l.bf16 %v4562_v60  ;;  %v7622_v13 = vunpack.c.h.bf16 %v4562_v60 }
  0xb1   : > { %613 = vmax.xlane.f32.xlu0 %v612_v24  ;;  %v650_v24 = vmax.f32 %v7605_v33, %v7604_v62  ;;  %v632_v50 = vmax.f32 %v631_v56, %v7606_v48  ;;  %v7619_v33 = vunpack.c.l.bf16 %v4552_v34  ;;  %v640_v56 = vmax.f32 %v7614_v59, %v7612_v46  ;;  %v4586_v46 = vld [vmem:[%s4081_s3 + $0x148] sm:$0xff] }
  0xb2   : > { %v627_v62 = vmax.f32 %v626_v25, %v7611_v1  ;;  %v7620_v48 = vunpack.c.h.bf16 %v4532_v27  ;;  %v7624_v25 = vunpack.c.h.bf16 %v4537_v22  ;;  %v646_v1 = vmax.f32 %v645_v58, %v7616_v38 }
  0xb3   : > { %v651_v54 = vmax.f32 %v650_v24, %v7613_v35  ;;  %v7625_v24 = vunpack.c.h.bf16 %v4565_v14  ;;  %v4591_v35 = vld [vmem:[%s4081_s3 + $0x138] sm:$0xff]  ;;  %v7629_v59 = vunpack.c.h.bf16 %v4552_v34  ;;  %v7630_v58 = vunpack.c.h.bf16 %v4580_v12 }
  0xb4   : > { %v7631_v7 = vunpack.c.l.bf16 %v4586_v46 }
  0xb5   : > { %v652_v38 = vmax.f32 %v651_v54, %v7620_v48  ;;  %v4616_v48 = vld [vmem:[%s4081_s3 + $0x170] sm:$0xff] }
  0xb6   : > { %7978 = vst [vmem:[#allocation9_spill] sm:$0xff] %v4616_v48  ;;  %v7638_v28 = vunpack.c.h.bf16 %v4616_v48 }
  0xb7   : > { %638 = vmax.xlane.f32.xlu2 %v637_v49  ;;  %v7626_v49 = vunpack.c.l.bf16 %v4565_v14 }
  0xb8   : > { %633 = vmax.xlane.f32.xlu1 %v632_v50  ;;  %v641_v50 = vmax.f32 %v640_v56, %v7619_v33  ;;  %v647_v56 = vmax.f32 %v646_v1, %v7624_v25  ;;  %v7634_v33 = vunpack.c.l.bf16 %v4591_v35  ;;  %v655_v1 = vmax.f32 %v7632_v11, %v7630_v58  ;;  %v4640_v58 = vld [vmem:[%s4081_s3 + $0x178] sm:$0xff] }
  0xb9   : > { %628 = vmax.xlane.f32.xlu0 %v627_v62  ;;  %v665_v62 = vmax.f32 %v7623_v23, %v7622_v13  ;;  %v660_v54 = vmax.f32 %v7626_v49, %v7625_v24  ;;  %v7636_v23 = vunpack.c.l.bf16 %v4606_v6  ;;  %v7637_v25 = vunpack.c.h.bf16 %v4586_v46  ;;  %7981 = vst [vmem:[#allocation12_spill] sm:$0xff] %v4640_v58 }
  0xba   : > { %v642_v13 = vmax.f32 %v641_v50, %v7629_v59  ;;  %v7639_v49 = vunpack.c.l.bf16 %v4616_v48  ;;  %v7640_v50 = vunpack.c.h.bf16 %v4591_v35  ;;  %v7648_v11 = vunpack.c.h.bf16 %v4606_v6 }
  0xbb   : > { %v666_v24 = vmax.f32 %v665_v62, %v7631_v7  ;;  %v661_v59 = vmax.f32 %v660_v54, %v7634_v33  ;;  %v7641_v62 = vunpack.c.h.bf16 %v4619_v5  ;;  %v4645_v7 = vld [vmem:[%s4081_s3 + $0x168] sm:$0xff]  ;;  %v7649_v54 = vunpack.c.h.bf16 %v4634_v20  ;;  %v4688_v5 = vld [vmem:[%s4081_s3 + $0x180] sm:$0xff] }
  0xbc   : > { %7982 = vst [vmem:[#allocation13_spill] sm:$0xff] %v4645_v7 }
  0xbd   : > { %v667_v33 = vmax.f32 %v666_v24, %v7637_v25  ;;  %v675_v24 = vmax.f32 %v7984_v19, %v7641_v62  ;;  %v4670_v25 = vld [vmem:[%s4081_s3 + $0x1a0] sm:$0xff]  ;;  %v7988_v19 = vunpack.c.l.bf16 %v4640_v58  ;;  %7989 = vst [vmem:[#allocation17_spill] sm:$0xff] %v4688_v5 }
  0xbe   : > { %7985 = vst [vmem:[#allocation15_spill] sm:$0xff] %v4670_v25  ;;  %v7655_v48 = vunpack.c.h.bf16 %v4670_v25 }
  0xbf   : > { %653 = vmax.xlane.f32.xlu2 %v652_v38  ;;  %v4660_v38 = vld [vmem:[%s4081_s3 + $0x158] sm:$0xff] }
  0xc0   : > { %648 = vmax.xlane.f32.xlu1 %v647_v56  ;;  %v656_v56 = vmax.f32 %v655_v1, %v7636_v23  ;;  %7983 = vst [vmem:[#allocation14_spill] sm:$0xff] %v4660_v38  ;;  %v662_v1 = vmax.f32 %v661_v59, %v7640_v50  ;;  %v7987_v59 = vunpack.c.l.bf16 %v4634_v20  ;;  %v7652_v23 = vunpack.c.h.bf16 %v4640_v58  ;;  %v4714_v20 = vld [vmem:[%s4081_s3 + $0x188] sm:$0xff] }
  0xc1   : > { %643 = vmax.xlane.f32.xlu0 %v642_v13  ;;  %v680_v13 = vmax.f32 %v7639_v49, %v7638_v28  ;;  %7994 = vst [vmem:[#allocation19_spill] sm:$0xff] %v4714_v20  ;;  %v8007_v58 = vunpack.c.l.bf16 %v4714_v20 }
  0xc2   : > { %v657_v28 = vmax.f32 %v656_v56, %v7648_v11  ;;  %v670_v50 = vmax.f32 %v7987_v59, %v7649_v54  ;;  %v7990_v11 = vunpack.c.l.bf16 %v4645_v7  ;;  %v4694_v59 = vld [vmem:[%s4081_s3 + $0x1a8] sm:$0xff]  ;;  %v7995_v54 = vunpack.c.h.bf16 %v4645_v7 }
  0xc3   : > { %v681_v62 = vmax.f32 %v680_v13, %v7988_v19  ;;  %7991 = vst [vmem:[#allocation18_spill] sm:$0xff] %v4694_v59  ;;  %v4699_v19 = vld [vmem:[%s4081_s3 + $0x198] sm:$0xff]  ;;  %v7993_v13 = vunpack.c.l.bf16 %v4670_v25  ;;  %v7996_v56 = vunpack.c.h.bf16 %v4673_v18  ;;  %v8000_v25 = vunpack.c.h.bf16 %v4660_v38 }
  0xc4   : > { %v676_v49 = vmax.f32 %v675_v24, %v7990_v11  ;;  %v7997_v11 = vunpack.c.l.bf16 %v4673_v18  ;;  %v7666_v18 = vunpack.c.h.bf16 %v4694_v59 }
  0xc5   : > { %v682_v24 = vmax.f32 %v681_v62, %v7652_v23  ;;  %v4724_v23 = vld [vmem:[%s4081_s3 + $0x1d0] sm:$0xff] }
  0xc6   : > { %v690_v62 = vmax.f32 %v7997_v11, %v7996_v56  ;;  %7998 = vst [vmem:[#allocation20_spill] sm:$0xff] %v4724_v23  ;;  %v8003_v56 = vunpack.c.l.bf16 %v4694_v59  ;;  %v7669_v7 = vunpack.c.h.bf16 %v4724_v23 }
  0xc7   : > { %668 = vmax.xlane.f32.xlu2 %v667_v33  ;;  %v4727_v33 = vld [vmem:[%s4081_s3 + $0x1c0] sm:$0xff] }
  0xc8   : > { %663 = vmax.xlane.f32.xlu1 %v662_v1  ;;  %v7992_v1 = vunpack.c.l.bf16 %v4660_v38  ;;  %7999 = vst [vmem:[#allocation21_spill] sm:$0xff] %v4727_v33  ;;  %v4742_v38 = vld [vmem:[%s4081_s3 + $0x1b0] sm:$0xff] }
  0xc9   : > { %658 = vmax.xlane.f32.xlu0 %v657_v28  ;;  %v695_v28 = vmax.f32 %v7993_v13, %v7655_v48  ;;  %8004 = vst [vmem:[#allocation22_spill] sm:$0xff] %v4742_v38 }
  0xca   : > { %v671_v17 = vmax.f32 %v670_v50, %v7992_v1  ;;  %v677_v50 = vmax.f32 %v676_v49, %v7995_v54  ;;  %v8001_v49 = vunpack.c.h.bf16 %v4688_v5  ;;  %v8002_v54 = vunpack.c.l.bf16 %v4688_v5  ;;  %v4768_v5 = vld [vmem:[%s4081_s3 + $0x1b8] sm:$0xff] }
  0xcb   : > { %v696_v11 = vmax.f32 %v695_v28, %v8003_v56  ;;  %v8008_v28 = vunpack.c.l.bf16 %v4724_v23  ;;  %8009 = vst [vmem:[#allocation24_spill] sm:$0xff] %v4768_v5  ;;  %v8010_v56 = vunpack.c.h.bf16 %v4699_v19  ;;  %v8016_v23 = vunpack.c.l.bf16 %v4742_v38 }
  0xcc   : > { %v672_v13 = vmax.f32 %v671_v17, %v8000_v25  ;;  %v685_v1 = vmax.f32 %v8002_v54, %v8001_v49  ;;  %v8005_v25 = vunpack.c.l.bf16 %v4699_v19  ;;  %v4748_v49 = vld [vmem:[%s4081_s3 + $0x1d8] sm:$0xff]  ;;  %v4753_v54 = vld [vmem:[%s4081_s3 + $0x1c8] sm:$0xff]  ;;  %v8011_v17 = vunpack.c.h.bf16 %v4727_v33 }
  0xcd   : > { %8006 = vst [vmem:[#allocation23_spill] sm:$0xff] %v4748_v49 }
  0xce   : > { %v691_v48 = vmax.f32 %v690_v62, %v8005_v25  ;;  %v697_v25 = vmax.f32 %v696_v11, %v7666_v18  ;;  %v8012_v62 = vunpack.c.l.bf16 %v4727_v33  ;;  %v4778_v18 = vld [vmem:[%s4081_s3 + $0x1f0] sm:$0xff] }
  0xcf   : > { %683 = vmax.xlane.f32.xlu2 %v682_v24  ;;  %8013 = vst [vmem:[#allocation25_spill] sm:$0xff] %v4778_v18  ;;  %v8014_v24 = vunpack.c.h.bf16 %v4714_v20 }
  0xd0   : > { %678 = vmax.xlane.f32.xlu1 %v677_v50  ;;  %v686_v50 = vmax.f32 %v685_v1, %v8007_v58  ;;  %v692_v58 = vmax.f32 %v691_v48, %v8010_v56  ;;  %v705_v11 = vmax.f32 %v8012_v62, %v8011_v17  ;;  %v7678_v56 = vunpack.c.h.bf16 %v4748_v49  ;;  %v4791_v17 = vld [vmem:[%s4081_s3 + $0x1e0] sm:$0xff] }
  0xd1   : > { %673 = vmax.xlane.f32.xlu0 %v672_v13  ;;  %v710_v13 = vmax.f32 %v8008_v28, %v7669_v7  ;;  %v8015_v7 = vunpack.c.h.bf16 %v4742_v38  ;;  %v8017_v1 = vunpack.c.l.bf16 %v4748_v49  ;;  %8018 = vst [vmem:[#allocation26_spill] sm:$0xff] %v4791_v17 }
  0xd2   : > { %v687_v59 = vmax.f32 %v686_v50, %v8014_v24  ;;  %v8019_v24 = vunpack.c.l.bf16 %v4753_v54 }
  0xd3   : > { %v700_v48 = vmax.f32 %v8016_v23, %v8015_v7  ;;  %v711_v33 = vmax.f32 %v710_v13, %v8017_v1  ;;  %v4799_v7 = vld [vmem:[%s4081_s3 + $0x1f8] sm:$0xff]  ;;  %v8025_v23 = vunpack.c.l.bf16 %v4778_v18 }
  0xd4   : > { %v706_v50 = vmax.f32 %v705_v11, %v8019_v24  ;;  %8020 = vst [vmem:[#allocation27_spill] sm:$0xff] %v4799_v7  ;;  %v4809_v11 = vld [vmem:[%s4081_s3 + $0x1e8] sm:$0xff]  ;;  %v8023_v24 = vunpack.c.h.bf16 %v4753_v54  ;;  %v7680_v38 = vunpack.c.l.bf16 %v4799_v7 }
  0xd5   : > { %v712_v62 = vmax.f32 %v711_v33, %v7678_v56  ;;  %8022 = vst [vmem:[#allocation28_spill] sm:$0xff] %v4809_v11  ;;  %v7682_v1 = vunpack.c.l.bf16 %v4809_v11  ;;  %v8027_v33 = vunpack.c.l.bf16 %v4791_v17 }
  0xd6   : > { %v707_v28 = vmax.f32 %v706_v50, %v8023_v24  ;;  %v7679_v50 = vunpack.c.h.bf16 %v4799_v7 }
  0xd7   : > { %698 = vmax.xlane.f32.xlu2 %v697_v25  ;;  %v8021_v25 = vunpack.c.l.bf16 %v4768_v5 }
  0xd8   : > { %693 = vmax.xlane.f32.xlu1 %v692_v58  ;;  %v7683_v58 = vunpack.c.h.bf16 %v4791_v17 }
  0xd9   : > { %688 = vmax.xlane.f32.xlu0 %v687_v59  ;;  %v701_v13 = vmax.f32 %v700_v48, %v8021_v25  ;;  %v8024_v59 = vunpack.c.h.bf16 %v4778_v18  ;;  %v8026_v48 = vunpack.c.h.bf16 %v4768_v5 }
  0xda   : > { %v715_v56 = vmax.f32 %v8027_v33, %v7683_v58  ;;  %v4839_v33 = vld [vmem:[#allocation2] sm:$0xff] }
  0xdb   : > { %v720_v20 = vmax.f32 %v8025_v23, %v8024_v59  ;;  %v702_v25 = vmax.f32 %v701_v13, %v8026_v48  ;;  %v7681_v23 = vunpack.c.h.bf16 %v4809_v11 }
  0xdc   : > { %v716_v13 = vmax.f32 %v715_v56, %v7682_v1 }
  0xdd   : > { %v721_v24 = vmax.f32 %v720_v20, %v7680_v38  ;;  %v4837_v20 = vld [vmem:[#allocation2 + $0x10] sm:$0xff] }
  0xde   : > { %v717_v48 = vmax.f32 %v716_v13, %v7681_v23  ;;  %8029 = vst [vmem:[#allocation30_spill] sm:$0xff] %v4837_v20 }
  0xdf   : > { %713 = vmax.xlane.f32.xlu2 %v712_v62  ;;  %v722_v59 = vmax.f32 %v721_v24, %v7679_v50  ;;  %v4835_v62 = vld [vmem:[#allocation2 + $0x20] sm:$0xff]  ;;  %v4862_v50 = vld [vmem:[#allocation2 + $0x8] sm:$0xff] }
  0xe0   : > { %708 = vmax.xlane.f32.xlu1 %v707_v28  ;;  %v3984_v28 = vmov 0   ;;  %8028 = vst [vmem:[#allocation29_spill] sm:$0xff] %v4835_v62 }
  0xe1   : > { %703 = vmax.xlane.f32.xlu0 %v702_v25  ;;  %3496 = vset.pattern.permute.xlu1 %v3984_v28  ;;  %8035 = vst [vmem:[#allocation36_spill] sm:$0xff] %v4862_v50 }
  0xe2   : > { %3494 = vset.pattern.permute.xlu2 %v3984_v28  ;;  %3495 = vset.pattern.permute.xlu0 %v3984_v28  ;;  %v4858_v28 = vld [vmem:[#allocation2 + $0x28] sm:$0xff] }
  0xe3   : > { %8033 = vst [vmem:[#allocation34_spill] sm:$0xff] %v4858_v28 }
  0xe8   : > { %723 = vmax.xlane.f32.xlu1 %v722_v59 }
  0xe9   : > { %718 = vmax.xlane.f32.xlu0 %v717_v48 }
 0x10a   : > { %v589_v25 = vpop.xlane.xlu2 %588 }
 0x10b   : > { %v4842_v56 = vmax.f32 %v4835_v62, %v589_v25  ;;  %v579_v24 = vpop.xlane.xlu1 %578  ;;  %v4860_v25 = vld [vmem:[#allocation2 + $0x18] sm:$0xff] }
 0x10c   : > { %v4845_v13 = vmax.f32 %v4837_v20, %v579_v24  ;;  %v569_v59 = vpop.xlane.xlu0 %568  ;;  %8034 = vst [vmem:[#allocation35_spill] sm:$0xff] %v4860_v25 }
 0x10d   : > { %8030 = vst [vmem:[#allocation31_spill] sm:$0xff] %v4842_v56  ;;  %v4850_v48 = vmax.f32 %v4839_v33, %v569_v59 }
 0x10e   : > { %8031 = vst [vmem:[#allocation32_spill] sm:$0xff] %v4845_v13  ;;  %769 = vperm.xlu1 %3496, %v4845_v13  }
 0x10f   : > { %1690 = vst.msk [vmem:[#allocation2 + $0x20] sm:$0xff] %vm7940_vm1, %v4842_v56  ;;  %759 = vperm.xlu2 %3494, %v4850_v48  }
 0x110   : > { %8032 = vst [vmem:[#allocation33_spill] sm:$0xff] %v4850_v48 }
 0x111   : > { %1688 = vst.msk [vmem:[#allocation2 + $0x10] sm:$0xff] %vm7940_vm1, %v4845_v13 }
 0x112   : > { %1686 = vst.msk [vmem:[#allocation2] sm:$0xff] %vm7940_vm1, %v4850_v48  ;;  %v594_v24 = vpop.xlane.xlu2 %593 }
 0x113   : > { %v4865_v59 = vmax.f32 %v4858_v28, %v594_v24  ;;  %v584_v38 = vpop.xlane.xlu1 %583  ;;  %v4884_v24 = vld [vmem:[#allocation2 + $0x38] sm:$0xff] }
 0x114   : > { %v4868_v23 = vmax.f32 %v4860_v25, %v584_v38  ;;  %v574_v1 = vpop.xlane.xlu0 %573  ;;  %v4882_v38 = vld [vmem:[#allocation2 + $0x40] sm:$0xff]  ;;  %8040 = vst [vmem:[#allocation41_spill] sm:$0xff] %v4884_v24  ;;  %v4889_v25 = vld [vmem:[#allocation2 + $0x30] sm:$0xff] }
 0x115   : > { %8036 = vst [vmem:[#allocation37_spill] sm:$0xff] %v4865_v59  ;;  %v4873_v58 = vmax.f32 %v4862_v50, %v574_v1 }
 0x116   : > { %8037 = vst [vmem:[#allocation38_spill] sm:$0xff] %v4868_v23  ;;  %784 = vperm.xlu1 %3496, %v4865_v59  }
 0x117   : > { %1691 = vst.msk [vmem:[#allocation2 + $0x28] sm:$0xff] %vm7940_vm1, %v4865_v59  ;;  %774 = vperm.xlu2 %3494, %v4868_v23   ;;  %764 = vperm.xlu0 %3495, %v4873_v58  }
 0x118   : > { %8038 = vst [vmem:[#allocation39_spill] sm:$0xff] %v4873_v58 }
 0x119   : > { %1689 = vst.msk [vmem:[#allocation2 + $0x18] sm:$0xff] %vm7940_vm1, %v4868_v23 }
 0x11a   : > { %1687 = vst.msk [vmem:[#allocation2 + $0x8] sm:$0xff] %vm7940_vm1, %v4873_v58  ;;  %v609_v7 = vpop.xlane.xlu2 %608 }
 0x11b   : > { %8039 = vst [vmem:[#allocation40_spill] sm:$0xff] %v4882_v38  ;;  %v4887_v1 = vmax.f32 %v4882_v38, %v609_v7  ;;  %v604_v18 = vpop.xlane.xlu1 %603  ;;  %v4904_v7 = vld [vmem:[#allocation2 + $0x58] sm:$0xff] }
 0x11c   : > { %8042 = vst [vmem:[#allocation43_spill] sm:$0xff] %v4889_v25  ;;  %v4892_v50 = vmax.f32 %v4884_v24, %v604_v18  ;;  %v599_v23 = vpop.xlane.xlu0 %598  ;;  %v4908_v18 = vld [vmem:[#allocation2 + $0x50] sm:$0xff] }
 0x11d   : > { %8041 = vst [vmem:[#allocation42_spill] sm:$0xff] %v4887_v1  ;;  %v4900_v58 = vmax.f32 %v4889_v25, %v599_v23 }
 0x11e   : > { %8043 = vst [vmem:[#allocation44_spill] sm:$0xff] %v4892_v50  ;;  %794 = vperm.xlu1 %3496, %v4892_v50  }
 0x11f   : > { %1694 = vst.msk [vmem:[#allocation2 + $0x40] sm:$0xff] %vm7940_vm1, %v4887_v1  ;;  %779 = vperm.xlu2 %3494, %v4842_v56   ;;  %799 = vperm.xlu0 %3495, %v4887_v1  }
 0x120   : > { %1693 = vst.msk [vmem:[#allocation2 + $0x38] sm:$0xff] %vm7940_vm1, %v4892_v50  ;;  %v4913_v50 = vld [vmem:[#allocation2 + $0x48] sm:$0xff] }
 0x121   : > { %8044 = vst [vmem:[#allocation45_spill] sm:$0xff] %v4900_v58 }
 0x122   : > { %8045 = vst [vmem:[#allocation46_spill] sm:$0xff] %v4904_v7  ;;  %v624_v38 = vpop.xlane.xlu2 %623 }
 0x123   : > { %1692 = vst.msk [vmem:[#allocation2 + $0x30] sm:$0xff] %vm7940_vm1, %v4900_v58  ;;  %v4911_v24 = vmax.f32 %v4904_v7, %v624_v38  ;;  %v619_v28 = vpop.xlane.xlu1 %618  ;;  %v4928_v38 = vld [vmem:[#allocation2 + $0x70] sm:$0xff] }
 0x124   : > { %8046 = vst [vmem:[#allocation47_spill] sm:$0xff] %v4908_v18  ;;  %v4916_v23 = vmax.f32 %v4908_v18, %v619_v28  ;;  %v614_v25 = vpop.xlane.xlu0 %613  ;;  %v4932_v28 = vld [vmem:[#allocation2 + $0x68] sm:$0xff] }
 0x125   : > { %8047 = vst [vmem:[#allocation48_spill] sm:$0xff] %v4911_v24  ;;  %v4924_v1 = vmax.f32 %v4913_v50, %v614_v25 }
 0x126   : > { %8048 = vst [vmem:[#allocation49_spill] sm:$0xff] %v4913_v50  ;;  %809 = vperm.xlu1 %3496, %v4916_v23  }
 0x127   : > { %8049 = vst [vmem:[#allocation50_spill] sm:$0xff] %v4916_v23  ;;  %814 = vperm.xlu0 %3495, %v4911_v24   ;;  %789 = vperm.xlu2 %3494, %v4900_v58  }
 0x128   : > { %1697 = vst.msk [vmem:[#allocation2 + $0x58] sm:$0xff] %vm7940_vm1, %v4911_v24 }
 0x129   : > { %1696 = vst.msk [vmem:[#allocation2 + $0x50] sm:$0xff] %vm7940_vm1, %v4916_v23  ;;  %v4937_v23 = vld [vmem:[#allocation2 + $0x60] sm:$0xff] }
 0x12a   : > { %8050 = vst [vmem:[#allocation51_spill] sm:$0xff] %v4924_v1  ;;  %v639_v7 = vpop.xlane.xlu2 %638 }
 0x12b   : > { %8051 = vst [vmem:[#allocation52_spill] sm:$0xff] %v4928_v38  ;;  %v4935_v18 = vmax.f32 %v4928_v38, %v639_v7  ;;  %v634_v59 = vpop.xlane.xlu1 %633  ;;  %v4952_v7 = vld [vmem:[#allocation2 + $0x88] sm:$0xff] }
 0x12c   : > { %1695 = vst.msk [vmem:[#allocation2 + $0x48] sm:$0xff] %vm7940_vm1, %v4924_v1  ;;  %v4940_v25 = vmax.f32 %v4932_v28, %v634_v59  ;;  %v629_v50 = vpop.xlane.xlu0 %628  ;;  %v4956_v59 = vld [vmem:[#allocation2 + $0x80] sm:$0xff] }
 0x12d   : > { %8052 = vst [vmem:[#allocation53_spill] sm:$0xff] %v4932_v28  ;;  %v4948_v24 = vmax.f32 %v4937_v23, %v629_v50 }
 0x12e   : > { %8053 = vst [vmem:[#allocation54_spill] sm:$0xff] %v4935_v18  ;;  %824 = vperm.xlu1 %3496, %v4940_v25  }
 0x12f   : > { %8054 = vst [vmem:[#allocation55_spill] sm:$0xff] %v4937_v23  ;;  %829 = vperm.xlu0 %3495, %v4935_v18   ;;  %804 = vperm.xlu2 %3494, %v4924_v1  }
 0x130   : > { %8055 = vst [vmem:[#allocation56_spill] sm:$0xff] %v4940_v25 }
 0x131   : > { %1700 = vst.msk [vmem:[#allocation2 + $0x70] sm:$0xff] %vm7940_vm1, %v4935_v18 }
 0x132   : > { %1699 = vst.msk [vmem:[#allocation2 + $0x68] sm:$0xff] %vm7940_vm1, %v4940_v25  ;;  %v654_v38 = vpop.xlane.xlu2 %653  ;;  %v4961_v25 = vld [vmem:[#allocation2 + $0x78] sm:$0xff] }
 0x133   : > { %8056 = vst [vmem:[#allocation57_spill] sm:$0xff] %v4948_v24  ;;  %v4959_v28 = vmax.f32 %v4952_v7, %v654_v38  ;;  %v649_v58 = vpop.xlane.xlu1 %648  ;;  %v4976_v38 = vld [vmem:[#allocation2 + $0xa0] sm:$0xff] }
 0x134   : > { %8057 = vst [vmem:[#allocation58_spill] sm:$0xff] %v4952_v7  ;;  %v4964_v50 = vmax.f32 %v4956_v59, %v649_v58  ;;  %v644_v23 = vpop.xlane.xlu0 %643  ;;  %v4980_v58 = vld [vmem:[#allocation2 + $0x98] sm:$0xff] }
 0x135   : > { %1698 = vst.msk [vmem:[#allocation2 + $0x60] sm:$0xff] %vm7940_vm1, %v4948_v24  ;;  %v4972_v1 = vmax.f32 %v4961_v25, %v644_v23 }
 0x136   : > { %8058 = vst [vmem:[#allocation59_spill] sm:$0xff] %v4956_v59  ;;  %839 = vperm.xlu1 %3496, %v4964_v50  }
 0x137   : > { %8059 = vst [vmem:[#allocation60_spill] sm:$0xff] %v4959_v28  ;;  %844 = vperm.xlu0 %3495, %v4959_v28   ;;  %819 = vperm.xlu2 %3494, %v4948_v24  }
 0x138   : > { %8060 = vst [vmem:[#allocation61_spill] sm:$0xff] %v4961_v25 }
 0x139   : > { %8061 = vst [vmem:[#allocation62_spill] sm:$0xff] %v4964_v50 }
 0x13a   : > { %1703 = vst.msk [vmem:[#allocation2 + $0x88] sm:$0xff] %vm7940_vm1, %v4959_v28  ;;  %v669_v7 = vpop.xlane.xlu2 %668 }
 0x13b   : > { %1702 = vst.msk [vmem:[#allocation2 + $0x80] sm:$0xff] %vm7940_vm1, %v4964_v50  ;;  %v4983_v59 = vmax.f32 %v4976_v38, %v669_v7  ;;  %v664_v18 = vpop.xlane.xlu1 %663  ;;  %v4985_v50 = vld [vmem:[#allocation2 + $0x90] sm:$0xff]  ;;  %v5000_v7 = vld [vmem:[#allocation2 + $0xb8] sm:$0xff] }
 0x13c   : > { %8062 = vst [vmem:[#allocation63_spill] sm:$0xff] %v4972_v1  ;;  %v4988_v23 = vmax.f32 %v4980_v58, %v664_v18  ;;  %v659_v25 = vpop.xlane.xlu0 %658  ;;  %v5004_v18 = vld [vmem:[#allocation2 + $0xb0] sm:$0xff] }
 0x13d   : > { %8063 = vst [vmem:[#allocation64_spill] sm:$0xff] %v4976_v38  ;;  %v4996_v24 = vmax.f32 %v4985_v50, %v659_v25 }
 0x13e   : > { %1701 = vst.msk [vmem:[#allocation2 + $0x78] sm:$0xff] %vm7940_vm1, %v4972_v1  ;;  %854 = vperm.xlu1 %3496, %v4988_v23  }
 0x13f   : > { %8064 = vst [vmem:[#allocation65_spill] sm:$0xff] %v4980_v58  ;;  %859 = vperm.xlu0 %3495, %v4983_v59   ;;  %834 = vperm.xlu2 %3494, %v4972_v1  }
 0x140   : > { %8065 = vst [vmem:[#allocation66_spill] sm:$0xff] %v4983_v59 }
 0x141   : > { %8066 = vst [vmem:[#allocation67_spill] sm:$0xff] %v4985_v50 }
 0x142   : > { %8067 = vst [vmem:[#allocation68_spill] sm:$0xff] %v4988_v23  ;;  %v684_v38 = vpop.xlane.xlu2 %683 }
 0x143   : > { %1706 = vst.msk [vmem:[#allocation2 + $0xa0] sm:$0xff] %vm7940_vm1, %v4983_v59  ;;  %v5007_v58 = vmax.f32 %v5000_v7, %v684_v38  ;;  %v679_v28 = vpop.xlane.xlu1 %678  ;;  %v5024_v38 = vld [vmem:[#allocation2 + $0xd0] sm:$0xff] }
 0x144   : > { %1705 = vst.msk [vmem:[#allocation2 + $0x98] sm:$0xff] %vm7940_vm1, %v4988_v23  ;;  %v5009_v23 = vld [vmem:[#allocation2 + $0xa8] sm:$0xff]  ;;  %v5012_v25 = vmax.f32 %v5004_v18, %v679_v28  ;;  %v674_v50 = vpop.xlane.xlu0 %673 }
 0x145   : > { %8068 = vst [vmem:[#allocation69_spill] sm:$0xff] %v4996_v24  ;;  %v5020_v1 = vmax.f32 %v5009_v23, %v674_v50  ;;  %v5028_v28 = vld [vmem:[#allocation2 + $0xc8] sm:$0xff] }
 0x146   : > { %8069 = vst [vmem:[#allocation70_spill] sm:$0xff] %v5000_v7  ;;  %869 = vperm.xlu1 %3496, %v5012_v25  }
 0x147   : > { %1704 = vst.msk [vmem:[#allocation2 + $0x90] sm:$0xff] %vm7940_vm1, %v4996_v24  ;;  %874 = vperm.xlu0 %3495, %v5007_v58   ;;  %849 = vperm.xlu2 %3494, %v4996_v24  }
 0x148   : > { %8070 = vst [vmem:[#allocation71_spill] sm:$0xff] %v5004_v18 }
 0x149   : > { %8071 = vst [vmem:[#allocation72_spill] sm:$0xff] %v5007_v58 }
 0x14a   : > { %8072 = vst [vmem:[#allocation73_spill] sm:$0xff] %v5009_v23  ;;  %v699_v7 = vpop.xlane.xlu2 %698 }
 0x14b   : > { %8073 = vst [vmem:[#allocation74_spill] sm:$0xff] %v5012_v25  ;;  %v5031_v18 = vmax.f32 %v5024_v38, %v699_v7  ;;  %v694_v59 = vpop.xlane.xlu1 %693  ;;  %v5048_v7 = vld [vmem:[#allocation2 + $0xe8] sm:$0xff] }
 0x14c   : > { %1709 = vst.msk [vmem:[#allocation2 + $0xb8] sm:$0xff] %vm7940_vm1, %v5007_v58  ;;  %v5036_v50 = vmax.f32 %v5028_v28, %v694_v59  ;;  %v689_v23 = vpop.xlane.xlu0 %688  ;;  %v5052_v59 = vld [vmem:[#allocation2 + $0xe0] sm:$0xff] }
 0x14d   : > { %1708 = vst.msk [vmem:[#allocation2 + $0xb0] sm:$0xff] %vm7940_vm1, %v5012_v25  ;;  %v5033_v25 = vld [vmem:[#allocation2 + $0xc0] sm:$0xff] }
 0x14e   : > { %8074 = vst [vmem:[#allocation75_spill] sm:$0xff] %v5020_v1  ;;  %884 = vperm.xlu1 %3496, %v5036_v50   ;;  %v5044_v24 = vmax.f32 %v5033_v25, %v689_v23 }
 0x14f   : > { %8075 = vst [vmem:[#allocation76_spill] sm:$0xff] %v5024_v38  ;;  %889 = vperm.xlu0 %3495, %v5031_v18   ;;  %864 = vperm.xlu2 %3494, %v5020_v1  }
 0x150   : > { %1707 = vst.msk [vmem:[#allocation2 + $0xa8] sm:$0xff] %vm7940_vm1, %v5020_v1 }
 0x151   : > { %8076 = vst [vmem:[#allocation77_spill] sm:$0xff] %v5028_v28 }
 0x152   : > { %8077 = vst [vmem:[#allocation78_spill] sm:$0xff] %v5031_v18  ;;  %v714_v38 = vpop.xlane.xlu2 %713 }
 0x153   : > { %8078 = vst [vmem:[#allocation79_spill] sm:$0xff] %v5033_v25  ;;  %v5055_v28 = vmax.f32 %v5048_v7, %v714_v38  ;;  %v709_v58 = vpop.xlane.xlu1 %708 }
 0x154   : > { %8079 = vst [vmem:[#allocation80_spill] sm:$0xff] %v5036_v50  ;;  %v5060_v23 = vmax.f32 %v5052_v59, %v709_v58  ;;  %v704_v25 = vpop.xlane.xlu0 %703  ;;  %v5074_v58 = vld [vmem:[#allocation2 + $0xf8] sm:$0xff] }
 0x155   : > { %1712 = vst.msk [vmem:[#allocation2 + $0xd0] sm:$0xff] %vm7940_vm1, %v5031_v18 }
 0x156   : > { %1711 = vst.msk [vmem:[#allocation2 + $0xc8] sm:$0xff] %vm7940_vm1, %v5036_v50  ;;  %v5057_v50 = vld [vmem:[#allocation2 + $0xd8] sm:$0xff]  ;;  %899 = vperm.xlu1 %3496, %v5060_v23  }
 0x157   : > { %8080 = vst [vmem:[#allocation81_spill] sm:$0xff] %v5044_v24  ;;  %v5068_v1 = vmax.f32 %v5057_v50, %v704_v25  ;;  %904 = vperm.xlu0 %3495, %v5055_v28   ;;  %879 = vperm.xlu2 %3494, %v5044_v24  }
 0x158   : > { %8081 = vst [vmem:[#allocation82_spill] sm:$0xff] %v5048_v7  ;;  %v5076_v7 = vld [vmem:[#allocation2 + $0xf0] sm:$0xff] }
 0x159   : > { %1710 = vst.msk [vmem:[#allocation2 + $0xc0] sm:$0xff] %vm7940_vm1, %v5044_v24  ;;  %v8091_v24 = vunpack.c.l.bf16 %v4275_v9 }
 0x15a   : > { %8082 = vst [vmem:[#allocation83_spill] sm:$0xff] %v5052_v59 }
 0x15b   : > { %8083 = vst [vmem:[#allocation84_spill] sm:$0xff] %v5055_v28  ;;  %v724_v38 = vpop.xlane.xlu1 %723 }
 0x15c   : > { %8084 = vst [vmem:[#allocation85_spill] sm:$0xff] %v5057_v50  ;;  %v5079_v59 = vmax.f32 %v5074_v58, %v724_v38  ;;  %v719_v18 = vpop.xlane.xlu0 %718  ;;  %v8093_v38 = vunpack.c.h.bf16 %v4275_v9 }
 0x15d   : > { %8085 = vst [vmem:[#allocation86_spill] sm:$0xff] %v5060_v23  ;;  %v5084_v25 = vmax.f32 %v5076_v7, %v719_v18 }
 0x15e   : > { %1715 = vst.msk [vmem:[#allocation2 + $0xe8] sm:$0xff] %vm7940_vm1, %v5055_v28 }
 0x15f   : > { %1714 = vst.msk [vmem:[#allocation2 + $0xe0] sm:$0xff] %vm7940_vm1, %v5060_v23  ;;  %894 = vperm.xlu2 %3494, %v5068_v1   ;;  %v8095_v23 = vunpack.c.l.bf16 %v4278_v10 }
 0x160   : > { %8086 = vst [vmem:[#allocation87_spill] sm:$0xff] %v5068_v1 }
 0x161   : > { %1713 = vst.msk [vmem:[#allocation2 + $0xd8] sm:$0xff] %vm7940_vm1, %v5068_v1 }
 0x162   : > { %8087 = vst [vmem:[#allocation88_spill] sm:$0xff] %v5074_v58 }
 0x163   : > { %8088 = vst [vmem:[#allocation89_spill] sm:$0xff] %v5076_v7 }
 0x164   : > { %8089 = vst [vmem:[#allocation90_spill] sm:$0xff] %v5079_v59 }
 0x165   : > { %1717 = vst.msk [vmem:[#allocation2 + $0xf8] sm:$0xff] %vm7940_vm1, %v5079_v59 }
 0x166   : > { %8090 = vst [vmem:[#allocation91_spill] sm:$0xff] %v5084_v25 }
 0x167   : > { %1716 = vst.msk [vmem:[#allocation2 + $0xf0] sm:$0xff] %vm7940_vm1, %v5084_v25  ;;  %909 = vperm.xlu2 %3494, %v5084_v25   ;;  %v8097_v25 = vunpack.c.h.bf16 %v4278_v10  ;;  %v8101_v10 = vunpack.c.h.bf16 %v4260_v2 }
 0x169   : > { %v760_v50 = vpop.permute.xlu2 %759 }
 0x16a   : > { %v5092_v28 = vsub.f32 %v8091_v24, %v760_v50  ;;  %v5096_v58 = vsub.f32 %v8093_v38, %v760_v50  ;;  %v5100_v18 = vsub.f32 %v8095_v23, %v760_v50  ;;  %v5106_v59 = vsub.f32 %v8097_v25, %v760_v50 }
 0x16b   : > { %v8103_v50 = vunpack.c.l.bf16 %v4263_v3 }
 0x16c   : > { %8092 = vst [vmem:[#allocation92_spill] sm:$0xff] %v5092_v28  ;;  %v1205_v7 = vmul.f32 1.442695, %v5092_v28  ;;  %v1207_v1 = vmul.f32 1.442695, %v5096_v58 }
 0x16d   : > { %8094 = vst [vmem:[#allocation93_spill] sm:$0xff] %v5096_v58  ;;  %v1209_v24 = vmul.f32 1.442695, %v5100_v18  ;;  %v1211_v38 = vmul.f32 1.442695, %v5106_v59  ;;  %v8099_v58 = vunpack.c.l.bf16 %v4260_v2 }
 0x16e   : > { %8096 = vst [vmem:[#allocation94_spill] sm:$0xff] %v5100_v18  ;;  %3497 = vpow2.f32 %v1205_v7 }
 0x16f   : > { %3499 = vpow2.f32 %v1207_v1  ;;  %8098 = vst [vmem:[#allocation95_spill] sm:$0xff] %v5106_v59  ;;  %v8105_v59 = vunpack.c.h.bf16 %v4263_v3  ;;  %v8109_v3 = vunpack.c.h.bf16 %v4266_v4 }
 0x170   : > { %3501 = vpow2.f32 %v1209_v24 }
 0x171   : > { %v775_v11 = vpop.permute.xlu2 %774  ;;  %3503 = vpow2.f32 %v1211_v38 }
 0x174   : > { %v3498_v9 = vpop.eup %3497 }
 0x175   : > { %v3500_v20 = vpop.eup %3499 }
 0x176   : > { %v1461_v23 = vadd.f32 %v3500_v20, %v3498_v9  ;;  %v3502_v28 = vpop.eup %3501 }
 0x177   : > { %v3504_v38 = vpop.eup %3503 }
 0x178   : > { %v1462_v24 = vadd.f32 %v3502_v28, %v1461_v23 }
 0x179   : > { %v780_v13 = vpop.permute.xlu2 %779 }
 0x17a   : > { %v5112_v7 = vsub.f32 %v8099_v58, %v780_v13  ;;  %v5116_v1 = vsub.f32 %v8101_v10, %v780_v13  ;;  %v5120_v25 = vsub.f32 %v8103_v50, %v780_v13  ;;  %v5124_v18 = vsub.f32 %v8105_v59, %v780_v13 }
 0x17b   : > { %v1463_v2 = vadd.f32 %v3504_v38, %v1462_v24  ;;  %v8107_v50 = vunpack.c.l.bf16 %v4266_v4  ;;  %v1077_v4 = vsub.f32 %v4839_v33, %v4850_v48  ;;  %v8121_v48 = vunpack.c.h.bf16 %v4308_v26 }
 0x17c   : > { %8100 = vst [vmem:[#allocation96_spill] sm:$0xff] %v5112_v7  ;;  %v1237_v20 = vmul.f32 1.442695, %v5112_v7  ;;  %v1239_v9 = vmul.f32 1.442695, %v5116_v1 }
 0x17d   : > { %8102 = vst [vmem:[#allocation97_spill] sm:$0xff] %v5116_v1  ;;  %v1241_v58 = vmul.f32 1.442695, %v5120_v25  ;;  %v1243_v17 = vmul.f32 1.442695, %v5124_v18 }
 0x17e   : > { %8104 = vst [vmem:[#allocation98_spill] sm:$0xff] %v5120_v25  ;;  %3505 = vpow2.f32 %v1237_v20 }
 0x17f   : > { %8106 = vst [vmem:[#allocation99_spill] sm:$0xff] %v5124_v18  ;;  %3507 = vpow2.f32 %v1239_v9  ;;  %v8111_v18 = vunpack.c.l.bf16 %v4272_v8 }
 0x180   : > { %v770_v10 = vpop.permute.xlu1 %769  ;;  %3509 = vpow2.f32 %v1241_v58  ;;  %v8113_v58 = vunpack.c.l.bf16 %v4298_v21 }
 0x181   : > { %v5132_v28 = vsub.f32 %v8107_v50, %v770_v10  ;;  %v5136_v13 = vsub.f32 %v8109_v3, %v770_v10  ;;  %1464 = vadd.xlane.f32.xlu0 %v1463_v2  ;;  %3511 = vpow2.f32 %v1243_v17  ;;  %v5142_v25 = vsub.f32 %v8111_v18, %v770_v10 }
 0x182   : > { %v5148_v3 = vsub.f32 %v8113_v58, %v775_v11  ;;  %v8117_v18 = vunpack.c.h.bf16 %v4272_v8  ;;  %v8119_v58 = vunpack.c.l.bf16 %v4308_v26 }
 0x183   : > { %8108 = vst [vmem:[#allocation100_spill] sm:$0xff] %v5132_v28  ;;  %v1221_v23 = vmul.f32 1.442695, %v5132_v28  ;;  %v1223_v24 = vmul.f32 1.442695, %v5136_v13 }
 0x184   : > { %8110 = vst [vmem:[#allocation101_spill] sm:$0xff] %v5136_v13  ;;  %v3506_v59 = vpop.eup %3505  ;;  %v5158_v7 = vsub.f32 %v8117_v18, %v770_v10  ;;  %v1225_v33 = vmul.f32 1.442695, %v5142_v25  ;;  %v5169_v13 = vsub.f32 %v8121_v48, %v775_v11  ;;  %v8127_v48 = vunpack.c.l.bf16 %v4408_v43 }
 0x185   : > { %v3508_v20 = vpop.eup %3507  ;;  %8112 = vst [vmem:[#allocation102_spill] sm:$0xff] %v5142_v25  ;;  %3513 = vpow2.f32 %v1221_v23 }
 0x186   : > { %v1481_v9 = vadd.f32 %v3508_v20, %v3506_v59  ;;  %v3510_v38 = vpop.eup %3509  ;;  %8114 = vst [vmem:[#allocation103_spill] sm:$0xff] %v5148_v3  ;;  %3515 = vpow2.f32 %v1223_v24  ;;  %v8115_v59 = vunpack.c.h.bf16 %v4298_v21  ;;  %v5165_v24 = vsub.f32 %v8119_v58, %v775_v11 }
 0x187   : > { %v3512_v1 = vpop.eup %3511  ;;  %8118 = vst [vmem:[#allocation105_spill] sm:$0xff] %v5158_v7  ;;  %v1229_v21 = vmul.f32 1.442695, %v5148_v3  ;;  %3517 = vpow2.f32 %v1225_v33  ;;  %v1227_v26 = vmul.f32 1.442695, %v5158_v7 }
 0x188   : > { %v785_v50 = vpop.permute.xlu1 %784  ;;  %v1482_v2 = vadd.f32 %v3510_v38, %v1481_v9  ;;  %v5154_v20 = vsub.f32 %v8115_v59, %v775_v11  ;;  %v5161_v9 = vpop.permute.xlu2 %789  ;;  %v1109_v38 = vmul.f32 1.442695, %v1077_v4  ;;  %8120 = vst [vmem:[#allocation106_spill] sm:$0xff] %v5165_v24  ;;  %v8123_v59 = vunpack.c.l.bf16 %v4285_v15 }
 0x189   : > { %v5150_v17 = vpop.permute.xlu0 %764  ;;  %8122 = vst [vmem:[#allocation107_spill] sm:$0xff] %v5169_v13  ;;  %v8125_v4 = vunpack.c.h.bf16 %v4285_v15  ;;  %v1233_v11 = vmul.f32 1.442695, %v5165_v24  ;;  %v1235_v33 = vmul.f32 1.442695, %v5169_v13 }
 0x18a   : > { %8116 = vst [vmem:[#allocation104_spill] sm:$0xff] %v5154_v20  ;;  %v1483_v23 = vadd.f32 %v3512_v1, %v1482_v2  ;;  %v1231_v10 = vmul.f32 1.442695, %v5154_v20  ;;  %v5175_v1 = vsub.f32 %v8123_v59, %v785_v50  ;;  %3519 = vpow2.f32 %v1109_v38 }
 0x18b   : > { %v3514_v8 = vpop.eup %3513  ;;  %v5179_v18 = vsub.f32 %v8125_v4, %v785_v50  ;;  %3521 = vpow2.f32 %v1229_v21  ;;  %v8129_v59 = vunpack.c.h.bf16 %v4408_v43  ;;  %v8131_v4 = vunpack.c.l.bf16 %v4319_v31 }
 0x18c   : > { %1484 = vadd.xlane.f32.xlu0 %v1483_v23  ;;  %8124 = vst [vmem:[#allocation108_spill] sm:$0xff] %v5175_v1  ;;  %v3516_v2 = vpop.eup %3515  ;;  %v5186_v23 = vsub.f32 %v8127_v48, %v5161_v9  ;;  %3523 = vpow2.f32 %v1231_v10  ;;  %v1245_v38 = vmul.f32 1.442695, %v5175_v1  ;;  %v8133_v21 = vunpack.c.h.bf16 %v4319_v31 }
 0x18d   : > { %8126 = vst [vmem:[#allocation109_spill] sm:$0xff] %v5179_v18  ;;  %v5193_v15 = vsub.f32 %v8129_v59, %v5161_v9  ;;  %v5200_v7 = vsub.f32 %v8131_v4, %v5150_v17  ;;  %v1471_v48 = vadd.f32 %v3516_v2, %v3514_v8  ;;  %v1247_v25 = vmul.f32 1.442695, %v5179_v18  ;;  %v3518_v4 = vpop.eup %3517 }
 0x18e   : > { %8128 = vst [vmem:[#allocation110_spill] sm:$0xff] %v5186_v23  ;;  %v5206_v28 = vsub.f32 %v8133_v21, %v5150_v17  ;;  %3525 = vpow2.f32 %v1227_v26  ;;  %v1253_v10 = vmul.f32 1.442695, %v5186_v23  ;;  %v8135_v59 = vunpack.c.l.bf16 %v4349_v45 }
 0x18f   : > { %8130 = vst [vmem:[#allocation111_spill] sm:$0xff] %v5193_v15  ;;  %3527 = vpow2.f32 %v1233_v11  ;;  %v8137_v8 = vunpack.c.l.bf16 %v4288_v16  ;;  %v1255_v31 = vmul.f32 1.442695, %v5193_v15  ;;  %v1213_v26 = vmul.f32 1.442695, %v5200_v7 }
 0x190   : > { %v5188_v58 = vpop.permute.xlu1 %794  ;;  %8132 = vst [vmem:[#allocation112_spill] sm:$0xff] %v5200_v7  ;;  %v5221_v21 = vpop.permute.xlu2 %804  ;;  %3529 = vpow2.f32 %v1235_v33  ;;  %v1472_v11 = vadd.f32 %v3518_v4, %v1471_v48  ;;  %v8142_v15 = vunpack.c.l.bf16 %v4338_v40  ;;  %v8146_v4 = vunpack.c.h.bf16 %v4288_v16 }
 0x191   : > { %8134 = vst [vmem:[#allocation113_spill] sm:$0xff] %v5206_v28  ;;  %v5208_v43 = vpop.permute.xlu0 %799  ;;  %v5214_v13 = vsub.f32 %v8135_v59, %v5188_v58  ;;  %v5218_v2 = vsub.f32 %v8137_v8, %v785_v50  ;;  %v5223_v24 = vpop.eup %3519  ;;  %3531 = vpow2.f32 %v1245_v38  ;;  %v8140_v59 = vunpack.c.h.bf16 %v4349_v45 }
 0x192   : > { %8139 = vst [vmem:[#allocation116_spill] sm:$0xff] %v5223_v24  ;;  %v5231_v20 = vpop.eup %3521  ;;  %3533 = vpow2.f32 %v1247_v25  ;;  %v1215_v8 = vmul.f32 1.442695, %v5206_v28  ;;  %v5237_v33 = vsub.f32 %v8142_v15, %v5208_v43  ;;  %v8144_v45 = vunpack.c.h.bf16 %v4338_v40 }
 0x193   : > { %8136 = vst [vmem:[#allocation114_spill] sm:$0xff] %v5214_v13  ;;  %v5229_v23 = vsub.f32 %v8140_v59, %v5188_v58  ;;  %v5239_v3 = vpop.eup %3523  ;;  %3535 = vpow2.f32 %v1253_v10  ;;  %v1261_v38 = vmul.f32 1.442695, %v5214_v13  ;;  %v5251_v18 = vsub.f32 %v8146_v4, %v785_v50 }
 0x194   : > { %8138 = vst [vmem:[#allocation115_spill] sm:$0xff] %v5218_v2  ;;  %v5245_v59 = vsub.f32 %v8144_v45, %v5208_v43  ;;  %v3526_v25 = vpop.eup %3525  ;;  %v1249_v15 = vmul.f32 1.442695, %v5218_v2  ;;  %3537 = vpow2.f32 %v1255_v31  ;;  %v8148_v10 = vunpack.c.l.bf16 %v4330_v36 }
 0x195   : > { %8141 = vst [vmem:[#allocation117_spill] sm:$0xff] %v5229_v23  ;;  %v5254_v1 = vpop.eup %3527  ;;  %3539 = vpow2.f32 %v1213_v26  ;;  %v1263_v40 = vmul.f32 1.442695, %v5229_v23  ;;  %v1473_v45 = vadd.f32 %v3526_v25, %v1472_v11  ;;  %v1269_v16 = vmul.f32 1.442695, %v5237_v33 }
 0x196   : > { %8143 = vst [vmem:[#allocation118_spill] sm:$0xff] %v5237_v33  ;;  %v5259_v13 = vsub.f32 %v8148_v10, %v5150_v17  ;;  %v5262_v28 = vpop.eup %3529  ;;  %3541 = vpow2.f32 %v1215_v8  ;;  %v8150_v50 = vunpack.c.l.bf16 %v4450_v37  ;;  %v8152_v2 = vunpack.c.h.bf16 %v4330_v36 }
 0x197   : > { %8145 = vst [vmem:[#allocation119_spill] sm:$0xff] %v5245_v59  ;;  %v3532_v4 = vpop.eup %3531  ;;  %3543 = vpow2.f32 %v1261_v38  ;;  %v1271_v26 = vmul.f32 1.442695, %v5245_v59  ;;  %1474 = vadd.xlane.f32.xlu1 %v1473_v45  ;;  %v8154_v8 = vunpack.c.h.bf16 %v4450_v37 }
 0x198   : > { %v5247_v48 = vpop.permute.xlu1 %809  ;;  %8147 = vst [vmem:[#allocation120_spill] sm:$0xff] %v5251_v18  ;;  %v5268_v31 = vsub.f32 %v8150_v50, %v5221_v21  ;;  %v5273_v10 = vsub.f32 %v8152_v2, %v5150_v17  ;;  %v3534_v11 = vpop.eup %3533  ;;  %3545 = vpow2.f32 %v1249_v15  ;;  %v1251_v50 = vmul.f32 1.442695, %v5251_v18 }
 0x199   : > { %8149 = vst [vmem:[#allocation121_spill] sm:$0xff] %v5259_v13  ;;  %v5279_v25 = vsub.f32 %v8154_v8, %v5221_v21  ;;  %v5281_v23 = vpop.permute.xlu0 %814  ;;  %v5284_v33 = vpop.eup %3535  ;;  %v1217_v36 = vmul.f32 1.442695, %v5259_v13  ;;  %3547 = vpow2.f32 %v1263_v40  ;;  %v8156_v17 = vunpack.c.l.bf16 %v4397_v29 }
 0x19a   : > { %8151 = vst [vmem:[#allocation122_spill] sm:$0xff] %v5268_v31  ;;  %v5292_v38 = vpop.eup %3537  ;;  %3549 = vpow2.f32 %v1269_v16  ;;  %v1277_v37 = vmul.f32 1.442695, %v5268_v31  ;;  %v8158_v15 = vunpack.c.h.bf16 %v4397_v29  ;;  %v5300_v8 = vpop.permute.xlu2 %819  ;;  %v8160_v40 = vunpack.c.l.bf16 %v4385_v0 }
 0x19b   : > { %8153 = vst [vmem:[#allocation123_spill] sm:$0xff] %v5273_v10  ;;  %v5290_v2 = vsub.f32 %v8156_v17, %v5247_v48  ;;  %v3540_v18 = vpop.eup %3539  ;;  %3551 = vpow2.f32 %v1271_v26  ;;  %v1486_v17 = vadd.f32 %v3534_v11, %v3532_v4  ;;  %v1219_v13 = vmul.f32 1.442695, %v5273_v10 }
 0x19c   : > { %8155 = vst [vmem:[#allocation124_spill] sm:$0xff] %v5279_v25  ;;  %v5298_v45 = vsub.f32 %v8158_v15, %v5247_v48  ;;  %v5305_v59 = vsub.f32 %v8160_v40, %v5281_v23  ;;  %v3542_v16 = vpop.eup %3541  ;;  %v1279_v31 = vmul.f32 1.442695, %v5279_v25  ;;  %v8162_v29 = vunpack.c.h.bf16 %v4385_v0 }
 0x19d   : > { %8157 = vst [vmem:[#allocation125_spill] sm:$0xff] %v5290_v2  ;;  %3553 = vpow2.f32 %v1251_v50  ;;  %v5314_v5 = vpop.eup %3543  ;;  %v1285_v26 = vmul.f32 1.442695, %v5290_v2  ;;  %v8164_v4 = vunpack.c.l.bf16 %v4484_v55  ;;  %v8166_v0 = vunpack.c.h.bf16 %v4484_v55 }
 0x19e   : > { %8159 = vst [vmem:[#allocation126_spill] sm:$0xff] %v5298_v45  ;;  %v5312_v15 = vsub.f32 %v8162_v29, %v5281_v23  ;;  %3555 = vpow2.f32 %v1217_v36  ;;  %v3546_v40 = vpop.eup %3545  ;;  %v1287_v25 = vmul.f32 1.442695, %v5298_v45  ;;  %v1293_v10 = vmul.f32 1.442695, %v5305_v59 }
 0x19f   : > { %8161 = vst [vmem:[#allocation127_spill] sm:$0xff] %v5305_v59  ;;  %v5320_v11 = vsub.f32 %v8164_v4, %v5300_v8  ;;  %3557 = vpow2.f32 %v1277_v37  ;;  %v5326_v29 = vsub.f32 %v8166_v0, %v5300_v8  ;;  %v5328_v50 = vpop.eup %3547  ;;  %v1487_v2 = vadd.f32 %v3546_v40, %v1486_v17 }
 0x1a0   : > { %8163 = vst [vmem:[#allocation128_spill] sm:$0xff] %v5312_v15  ;;  %v825_v7 = vpop.permute.xlu1 %824  ;;  %3559 = vpow2.f32 %v1219_v13  ;;  %v8168_v36 = vunpack.c.l.bf16 %v4442_v42  ;;  %v5335_v4 = vpop.eup %3549  ;;  %v1295_v37 = vmul.f32 1.442695, %v5312_v15  ;;  %v1466_v45 = vadd.f32 %v3542_v16, %v3540_v18 }
 0x1a1   : > { %8165 = vst [vmem:[#allocation129_spill] sm:$0xff] %v5320_v11  ;;  %3561 = vpow2.f32 %v1279_v31  ;;  %v8170_v55 = vunpack.c.h.bf16 %v4442_v42  ;;  %v5342_v49 = vpop.eup %3551  ;;  %v8172_v17 = vunpack.c.l.bf16 %v4371_v57  ;;  %v1301_v40 = vmul.f32 1.442695, %v5320_v11 }
 0x1a2   : > { %8167 = vst [vmem:[#allocation130_spill] sm:$0xff] %v5326_v29  ;;  %v5333_v24 = vsub.f32 %v8168_v36, %v825_v7  ;;  %3563 = vpow2.f32 %v1285_v26  ;;  %v8174_v31 = vunpack.c.h.bf16 %v4371_v57  ;;  %v1303_v42 = vmul.f32 1.442695, %v5326_v29 }
 0x1a3   : > { %v5340_v0 = vsub.f32 %v8170_v55, %v825_v7  ;;  %v5347_v13 = vsub.f32 %v8172_v17, %v5188_v58  ;;  %v3554_v36 = vpop.eup %3553  ;;  %3565 = vpow2.f32 %v1287_v25  ;;  %v8176_v16 = vunpack.c.l.bf16 %v4361_v52 }
 0x1a4   : > { %8169 = vst [vmem:[#allocation131_spill] sm:$0xff] %v5333_v24  ;;  %v5353_v15 = vsub.f32 %v8174_v31, %v5188_v58  ;;  %v3556_v18 = vpop.eup %3555  ;;  %3567 = vpow2.f32 %v1293_v10  ;;  %v1488_v17 = vadd.f32 %v3554_v36, %v1487_v2  ;;  %v1309_v26 = vmul.f32 1.442695, %v5333_v24  ;;  %v830_v31 = vpop.permute.xlu0 %829 }
 0x1a5   : > { %8171 = vst [vmem:[#allocation132_spill] sm:$0xff] %v5340_v0  ;;  %v5359_v55 = vsub.f32 %v8176_v16, %v5208_v43  ;;  %v5362_v11 = vpop.eup %3557  ;;  %3569 = vpow2.f32 %v1295_v37  ;;  %v1467_v59 = vadd.f32 %v3556_v18, %v1466_v45  ;;  %v8178_v57 = vunpack.c.l.bf16 %v4475_v44 }
 0x1a6   : > { %8173 = vst [vmem:[#allocation133_spill] sm:$0xff] %v5347_v13  ;;  %v1311_v25 = vmul.f32 1.442695, %v5340_v0  ;;  %v3560_v29 = vpop.eup %3559  ;;  %v1265_v62 = vmul.f32 1.442695, %v5347_v13  ;;  %v8180_v10 = vunpack.c.h.bf16 %v4361_v52  ;;  %1489 = vadd.xlane.f32.xlu1 %v1488_v17  ;;  %3571 = vpow2.f32 %v1301_v40 }
 0x1a7   : > { %8175 = vst [vmem:[#allocation134_spill] sm:$0xff] %v5353_v15  ;;  %v5366_v58 = vsub.f32 %v8178_v57, %v825_v7  ;;  %v1476_v45 = vadd.f32 %v5239_v3, %v5231_v20  ;;  %v5377_v37 = vpop.eup %3561  ;;  %v1468_v36 = vadd.f32 %v3560_v29, %v1467_v59  ;;  %3573 = vpow2.f32 %v1303_v42  ;;  %v835_v59 = vpop.permute.xlu2 %834 }
 0x1a8   : > { %8177 = vst [vmem:[#allocation135_spill] sm:$0xff] %v5359_v55  ;;  %v5373_v2 = vsub.f32 %v8180_v10, %v5208_v43  ;;  %v8182_v18 = vunpack.c.h.bf16 %v4475_v44  ;;  %v1267_v57 = vmul.f32 1.442695, %v5353_v15  ;;  %v5384_v0 = vpop.eup %3563  ;;  %v1273_v52 = vmul.f32 1.442695, %v5359_v55 }
 0x1a9   : > { %8179 = vst [vmem:[#allocation136_spill] sm:$0xff] %v5366_v58  ;;  %3575 = vpow2.f32 %v1309_v26  ;;  %v8184_v43 = vunpack.c.l.bf16 %v4439_v32  ;;  %v5391_v3 = vpop.eup %3565  ;;  %1469 = vadd.xlane.f32.xlu2 %v1468_v36  ;;  %v1313_v20 = vmul.f32 1.442695, %v5366_v58  ;;  %v8185_v44 = vunpack.c.h.bf16 %v4439_v32 }
 0x1aa   : > { %8181 = vst [vmem:[#allocation137_spill] sm:$0xff] %v5373_v2  ;;  %v5381_v16 = vsub.f32 %v8182_v18, %v825_v7  ;;  %3577 = vpow2.f32 %v1311_v25  ;;  %v5398_v29 = vpop.eup %3567  ;;  %v8186_v42 = vunpack.c.l.bf16 %v4468_v63  ;;  %v1477_v26 = vadd.f32 %v5254_v1, %v1476_v45 }
 0x1ab   : > { %v5389_v40 = vsub.f32 %v8184_v43, %v830_v31  ;;  %v5396_v7 = vsub.f32 %v8185_v44, %v830_v31  ;;  %3579 = vpow2.f32 %v1265_v62  ;;  %v1275_v10 = vmul.f32 1.442695, %v5373_v2  ;;  %v5406_v36 = vpop.eup %3569 }
 0x1ac   : > { %8183 = vst [vmem:[#allocation138_spill] sm:$0xff] %v5381_v16  ;;  %v5402_v17 = vsub.f32 %v8186_v42, %v830_v31  ;;  %v1315_v25 = vmul.f32 1.442695, %v5381_v16  ;;  %v8188_v32 = vunpack.c.h.bf16 %v4468_v63  ;;  %3581 = vpow2.f32 %v1267_v57  ;;  %v5413_v43 = vpop.eup %3571 }
 0x1ad   : > { %v1317_v44 = vmul.f32 1.442695, %v5389_v40  ;;  %3583 = vpow2.f32 %v1273_v52  ;;  %v8190_v62 = vunpack.c.l.bf16 %v4526_v39  ;;  %v5420_v1 = vpop.eup %3573  ;;  %v1319_v45 = vmul.f32 1.442695, %v5396_v7 }
 0x1ae   : > { %8187 = vst [vmem:[#allocation139_spill] sm:$0xff] %v5402_v17  ;;  %v5411_v18 = vsub.f32 %v8188_v32, %v830_v31  ;;  %3585 = vpow2.f32 %v1313_v20  ;;  %v1496_v63 = vadd.f32 %v5328_v50, %v5314_v5  ;;  %v8191_v31 = vunpack.c.h.bf16 %v4526_v39  ;;  %v840_v32 = vpop.permute.xlu1 %839 }
 0x1af   : > { %v5418_v42 = vsub.f32 %v8190_v62, %v835_v59  ;;  %v5429_v16 = vpop.eup %3575  ;;  %v1321_v52 = vmul.f32 1.442695, %v5402_v17  ;;  %v1478_v62 = vadd.f32 %v5262_v28, %v1477_v26  ;;  %3587 = vpow2.f32 %v1275_v10 }
 0x1b0   : > { %8189 = vst [vmem:[#allocation140_spill] sm:$0xff] %v5411_v18  ;;  %v5427_v57 = vsub.f32 %v8191_v31, %v835_v59  ;;  %v8192_v58 = vunpack.c.l.bf16 %v4552_v34  ;;  %v5437_v24 = vpop.eup %3577  ;;  %3589 = vpow2.f32 %v1315_v25  ;;  %v1323_v5 = vmul.f32 1.442695, %v5411_v18 }
 0x1b1   : > { %v1501_v39 = vadd.f32 %v5342_v49, %v5335_v4  ;;  %v8194_v50 = vunpack.c.h.bf16 %v4552_v34  ;;  %v3580_v15 = vpop.eup %3579  ;;  %3591 = vpow2.f32 %v1317_v44  ;;  %v1325_v28 = vmul.f32 1.442695, %v5418_v42  ;;  %1479 = vadd.xlane.f32.xlu2 %v1478_v62 }
 0x1b2   : > { %v5435_v20 = vsub.f32 %v8192_v58, %v835_v59  ;;  %v8196_v26 = vunpack.c.l.bf16 %v4509_v30  ;;  %v3582_v10 = vpop.eup %3581  ;;  %3593 = vpow2.f32 %v1319_v45  ;;  %v1497_v25 = vadd.f32 %v3580_v15, %v1496_v63 }
 0x1b3   : > { %v5444_v31 = vsub.f32 %v8194_v50, %v835_v59  ;;  %v1327_v13 = vmul.f32 1.442695, %v5427_v57  ;;  %v8198_v49 = vunpack.c.h.bf16 %v4509_v30  ;;  %v3584_v34 = vpop.eup %3583  ;;  %v8200_v59 = vunpack.c.l.bf16 %v4414_v51 }
 0x1b4   : > { %8193 = vst [vmem:[#allocation141_spill] sm:$0xff] %v5435_v20  ;;  %v5449_v58 = vsub.f32 %v8196_v26, %v840_v32  ;;  %v8202_v50 = vunpack.c.h.bf16 %v4414_v51  ;;  %3595 = vpow2.f32 %v1321_v52  ;;  %v1329_v15 = vmul.f32 1.442695, %v5435_v20  ;;  %v5467_v45 = vpop.eup %3585 }
 0x1b5   : > { %8195 = vst [vmem:[#allocation142_spill] sm:$0xff] %v5444_v31  ;;  %v5454_v4 = vsub.f32 %v8198_v49, %v840_v32  ;;  %v5459_v44 = vsub.f32 %v8200_v59, %v5247_v48  ;;  %3597 = vpow2.f32 %v1323_v5  ;;  %v1498_v30 = vadd.f32 %v3582_v10, %v1497_v25  ;;  %v3588_v49 = vpop.eup %3587  ;;  %v845_v10 = vpop.permute.xlu0 %844 }
 0x1b6   : > { %8197 = vst [vmem:[#allocation143_spill] sm:$0xff] %v5449_v58  ;;  %v5464_v26 = vsub.f32 %v8202_v50, %v5247_v48  ;;  %v1502_v63 = vadd.f32 %v3584_v34, %v1501_v39  ;;  %v1331_v62 = vmul.f32 1.442695, %v5444_v31  ;;  %v8204_v59 = vunpack.c.l.bf16 %v4419_v61  ;;  %v5476_v48 = vpop.eup %3589 }
 0x1b7   : > { %8199 = vst [vmem:[#allocation144_spill] sm:$0xff] %v5454_v4  ;;  %3599 = vpow2.f32 %v1325_v28  ;;  %v1333_v51 = vmul.f32 1.442695, %v5449_v58  ;;  %v8205_v52 = vunpack.c.h.bf16 %v4419_v61  ;;  %1499 = vadd.xlane.f32.xlu0 %v1498_v30  ;;  %v1335_v39 = vmul.f32 1.442695, %v5454_v4  ;;  %v5484_v25 = vpop.eup %3591 }
 0x1b8   : > { %8201 = vst [vmem:[#allocation145_spill] sm:$0xff] %v5459_v44  ;;  %v5473_v18 = vsub.f32 %v8204_v59, %v5161_v9  ;;  %v1503_v5 = vadd.f32 %v3588_v49, %v1502_v63  ;;  %3601 = vpow2.f32 %v1327_v13  ;;  %v1289_v34 = vmul.f32 1.442695, %v5459_v44  ;;  %v5492_v58 = vpop.eup %3593 }
 0x1b9   : > { %8203 = vst [vmem:[#allocation146_spill] sm:$0xff] %v5464_v26  ;;  %v5481_v50 = vsub.f32 %v8205_v52, %v5161_v9  ;;  %v8206_v28 = vunpack.c.l.bf16 %v4405_v41  ;;  %3603 = vpow2.f32 %v1329_v15  ;;  %v8208_v61 = vunpack.c.l.bf16 %v4537_v22 }
 0x1ba   : > { %1504 = vadd.xlane.f32.xlu1 %v1503_v5  ;;  %3605 = vpow2.f32 %v1331_v62  ;;  %v1291_v13 = vmul.f32 1.442695, %v5464_v26  ;;  %v5499_v30 = vpop.eup %3595  ;;  %v1257_v63 = vmul.f32 1.442695, %v5473_v18  ;;  %v8210_v49 = vunpack.c.h.bf16 %v4405_v41 }
 0x1bb   : > { %v5490_v59 = vsub.f32 %v8206_v28, %v5281_v23  ;;  %v5496_v9 = vsub.f32 %v8208_v61, %v840_v32  ;;  %3607 = vpow2.f32 %v1333_v51  ;;  %v5507_v15 = vpop.eup %3597  ;;  %v8212_v62 = vunpack.c.h.bf16 %v4537_v22 }
 0x1bc   : > { %v5505_v52 = vsub.f32 %v8210_v49, %v5281_v23  ;;  %3609 = vpow2.f32 %v1335_v39  ;;  %v1259_v28 = vmul.f32 1.442695, %v5481_v50  ;;  %v8214_v26 = vunpack.c.l.bf16 %v4504_v47  ;;  %v5532_v49 = vpop.permute.xlu2 %849 }
 0x1bd   : > { %8207 = vst [vmem:[#allocation147_spill] sm:$0xff] %v5490_v59  ;;  %v5511_v5 = vsub.f32 %v8212_v62, %v840_v32  ;;  %v5514_v61 = vpop.eup %3599  ;;  %v1297_v4 = vmul.f32 1.442695, %v5490_v59  ;;  %3611 = vpow2.f32 %v1289_v34  ;;  %v1337_v23 = vmul.f32 1.442695, %v5496_v9  ;;  %v5534_v62 = vpop.permute.xlu1 %854 }
 0x1be   : > { %8209 = vst [vmem:[#allocation148_spill] sm:$0xff] %v5496_v9  ;;  %v5519_v44 = vsub.f32 %v8214_v26, %v845_v10  ;;  %v5521_v41 = vpop.eup %3601  ;;  %v8215_v22 = vunpack.c.h.bf16 %v4504_v47  ;;  %v8216_v51 = vunpack.c.l.bf16 %v4532_v27  ;;  %3613 = vpow2.f32 %v1291_v13 }
 0x1bf   : > { %8211 = vst [vmem:[#allocation149_spill] sm:$0xff] %v5505_v52  ;;  %v5536_v26 = vpop.eup %3603  ;;  %v8218_v34 = vunpack.c.l.bf16 %v4459_v53  ;;  %v8219_v47 = vunpack.c.h.bf16 %v4459_v53  ;;  %3615 = vpow2.f32 %v1257_v63  ;;  %v1339_v9 = vmul.f32 1.442695, %v5511_v5 }
 0x1c0   : > { %8213 = vst [vmem:[#allocation150_spill] sm:$0xff] %v5511_v5  ;;  %v5526_v32 = vsub.f32 %v8215_v22, %v845_v10  ;;  %v5530_v39 = vsub.f32 %v8216_v51, %v845_v10  ;;  %v1299_v51 = vmul.f32 1.442695, %v5505_v52  ;;  %v5549_v13 = vpop.eup %3605  ;;  %v8220_v20 = vunpack.c.h.bf16 %v4532_v27 }
 0x1c1   : > { %v5541_v31 = vsub.f32 %v8218_v34, %v5221_v21  ;;  %v5546_v22 = vsub.f32 %v8219_v47, %v5221_v21  ;;  %v1511_v34 = vadd.f32 %v5391_v3, %v5384_v0  ;;  %3617 = vpow2.f32 %v1259_v28  ;;  %v5558_v59 = vpop.eup %3607 }
 0x1c2   : > { %8217 = vst [vmem:[#allocation151_spill] sm:$0xff] %v5530_v39  ;;  %v5554_v17 = vsub.f32 %v8220_v20, %v845_v10  ;;  %v1341_v53 = vmul.f32 1.442695, %v5519_v44  ;;  %3619 = vpow2.f32 %v1297_v4  ;;  %v8222_v21 = vunpack.c.l.bf16 %v4580_v12  ;;  %v3610_v20 = vpop.eup %3609  ;;  %v860_v4 = vpop.permute.xlu0 %859 }
 0x1c3   : > { %v8223_v47 = vunpack.c.l.bf16 %v4565_v14  ;;  %3621 = vpow2.f32 %v1337_v23  ;;  %v1343_v0 = vmul.f32 1.442695, %v5526_v32  ;;  %v1345_v3 = vmul.f32 1.442695, %v5530_v39  ;;  %v3612_v28 = vpop.eup %3611 }
 0x1c4   : > { %8221 = vst [vmem:[#allocation152_spill] sm:$0xff] %v5554_v17  ;;  %v5564_v63 = vsub.f32 %v8222_v21, %v5532_v49  ;;  %v1491_v10 = vadd.f32 %v5292_v38, %v5284_v33  ;;  %3623 = vpow2.f32 %v1299_v51  ;;  %v8225_v21 = vunpack.c.h.bf16 %v4580_v12  ;;  %v3614_v39 = vpop.eup %3613 }
 0x1c5   : > { %v5569_v27 = vsub.f32 %v8223_v47, %v5534_v62  ;;  %v8226_v47 = vunpack.c.h.bf16 %v4565_v14  ;;  %v1526_v23 = vadd.f32 %v5437_v24, %v5429_v16  ;;  %3625 = vpow2.f32 %v1339_v9  ;;  %v3616_v2 = vpop.eup %3615 }
 0x1c6   : > { %v5578_v5 = vsub.f32 %v8225_v21, %v5532_v49  ;;  %v1347_v33 = vmul.f32 1.442695, %v5554_v17  ;;  %v1512_v38 = vadd.f32 %v3612_v28, %v1511_v34  ;;  %v1516_v51 = vadd.f32 %v5406_v36, %v5398_v29 }
 0x1c7   : > { %8224 = vst [vmem:[#allocation153_spill] sm:$0xff] %v5569_v27  ;;  %v5583_v52 = vsub.f32 %v8226_v47, %v5534_v62  ;;  %3627 = vpow2.f32 %v1341_v53  ;;  %v1349_v12 = vmul.f32 1.442695, %v5564_v63  ;;  %v1357_v21 = vmul.f32 1.442695, %v5569_v27  ;;  %v3618_v55 = vpop.eup %3617 }
 0x1c8   : > { %v8228_v14 = vunpack.c.l.bf16 %v4562_v60  ;;  %3629 = vpow2.f32 %v1343_v0  ;;  %v1513_v24 = vadd.f32 %v3614_v39, %v1512_v38  ;;  %v1492_v16 = vadd.f32 %v3616_v2, %v1491_v10  ;;  %v3620_v28 = vpop.eup %3619 }
 0x1c9   : > { %8227 = vst [vmem:[#allocation154_spill] sm:$0xff] %v5583_v52  ;;  %v8229_v9 = vunpack.c.h.bf16 %v4562_v60  ;;  %3631 = vpow2.f32 %v1345_v3  ;;  %v1351_v29 = vmul.f32 1.442695, %v5578_v5  ;;  %v1359_v36 = vmul.f32 1.442695, %v5583_v52  ;;  %v3622_v27 = vpop.eup %3621 }
 0x1ca   : > { %v5594_v47 = vsub.f32 %v8228_v14, %v860_v4  ;;  %v1527_v53 = vadd.f32 %v5467_v45, %v1526_v23  ;;  %3633 = vpow2.f32 %v1347_v33  ;;  %1514 = vadd.xlane.f32.xlu0 %v1513_v24  ;;  %v1493_v14 = vadd.f32 %v3618_v55, %v1492_v16  ;;  %v3624_v39 = vpop.eup %3623 }
 0x1cb   : > { %v5598_v34 = vsub.f32 %v8229_v9, %v860_v4  ;;  %v1517_v17 = vadd.f32 %v3620_v28, %v1516_v51  ;;  %v1531_v2 = vadd.f32 %v5492_v58, %v5484_v25  ;;  %v1281_v60 = vmul.f32 1.442695, %v5541_v31  ;;  %v3626_v45 = vpop.eup %3625  ;;  %v870_v25 = vpop.permute.xlu1 %869 }
 0x1cc   : > { %3635 = vpow2.f32 %v1349_v12  ;;  %v8230_v0 = vunpack.c.l.bf16 %v4591_v35  ;;  %v1365_v10 = vmul.f32 1.442695, %v5594_v47  ;;  %1494 = vadd.xlane.f32.xlu2 %v1493_v14  ;;  %v8232_v55 = vunpack.c.l.bf16 %v4606_v6 }
 0x1cd   : > { %v1518_v23 = vadd.f32 %v3624_v39, %v1517_v17  ;;  %3637 = vpow2.f32 %v1357_v21  ;;  %v1367_v58 = vmul.f32 1.442695, %v5598_v34  ;;  %v3628_v38 = vpop.eup %3627  ;;  %v8234_v51 = vunpack.c.h.bf16 %v4591_v35 }
 0x1ce   : > { %v5609_v3 = vsub.f32 %v8230_v0, %v5534_v62  ;;  %v5615_v33 = vsub.f32 %v8232_v55, %v5532_v49  ;;  %3639 = vpow2.f32 %v1359_v36  ;;  %v8236_v24 = vunpack.c.l.bf16 %v4586_v46  ;;  %v3630_v9 = vpop.eup %3629  ;;  %v8240_v0 = vld [vmem:[#allocation10_spill] sm:$0xff] }
 0x1cf   : > { %v5621_v12 = vsub.f32 %v8234_v51, %v5534_v62  ;;  %v1283_v17 = vmul.f32 1.442695, %v5546_v22  ;;  %1519 = vadd.xlane.f32.xlu1 %v1518_v23  ;;  %3641 = vpow2.f32 %v1351_v29  ;;  %v1528_v21 = vadd.f32 %v5476_v48, %v1527_v53  ;;  %v3632_v39 = vpop.eup %3631 }
 0x1d0   : > { %8231 = vst [vmem:[#allocation155_spill] sm:$0xff] %v5609_v3  ;;  %v5625_v16 = vsub.f32 %v8236_v24, %v860_v4  ;;  %v1532_v28 = vadd.f32 %v5499_v30, %v1531_v2  ;;  %v1541_v14 = vadd.f32 %v3610_v20, %v5558_v59  ;;  %v1361_v35 = vmul.f32 1.442695, %v5609_v3  ;;  %v3634_v23 = vpop.eup %3633  ;;  %v875_v59 = vpop.permute.xlu0 %874  ;;  %v8245_v24 = vld [vmem:[#allocation13_spill] sm:$0xff] }
 0x1d1   : > { %8233 = vst [vmem:[#allocation156_spill] sm:$0xff] %v5615_v33  ;;  %v8238_v62 = vunpack.c.h.bf16 %v4586_v46  ;;  %3643 = vpow2.f32 %v1365_v10  ;;  %v8241_v55 = vunpack.c.l.bf16 %v8240_v0  ;;  %v1353_v29 = vmul.f32 1.442695, %v5615_v33  ;;  %v8248_v3 = vld [vmem:[#allocation9_spill] sm:$0xff] }
 0x1d2   : > { %8235 = vst [vmem:[#allocation157_spill] sm:$0xff] %v5621_v12  ;;  %3645 = vpow2.f32 %v1367_v58  ;;  %v8243_v48 = vunpack.c.h.bf16 %v8240_v0  ;;  %v5645_v20 = vpop.eup %3635  ;;  %v1363_v46 = vmul.f32 1.442695, %v5621_v12  ;;  %v1546_v53 = vadd.f32 %v3630_v9, %v3628_v38  ;;  %1529 = vadd.xlane.f32.xlu0 %v1528_v21 }
 0x1d3   : > { %8237 = vst [vmem:[#allocation158_spill] sm:$0xff] %v5625_v16  ;;  %v5634_v36 = vsub.f32 %v8238_v62, %v860_v4  ;;  %v5638_v51 = vsub.f32 %v8241_v55, %v870_v25  ;;  %v1369_v4 = vmul.f32 1.442695, %v5625_v16  ;;  %3647 = vpow2.f32 %v1281_v60  ;;  %v3638_v2 = vpop.eup %3637 }
 0x1d4   : > { %v5643_v30 = vsub.f32 %v8243_v48, %v870_v25  ;;  %3649 = vpow2.f32 %v1283_v17  ;;  %v1533_v10 = vadd.f32 %v5507_v15, %v1532_v28  ;;  %v8246_v58 = vunpack.c.l.bf16 %v8245_v24  ;;  %v3640_v55 = vpop.eup %3639 }
 0x1d5   : > { %8239 = vst [vmem:[#allocation159_spill] sm:$0xff] %v5634_v36  ;;  %v1542_v0 = vadd.f32 %v3622_v27, %v1541_v14  ;;  %3651 = vpow2.f32 %v1361_v35  ;;  %v1371_v48 = vmul.f32 1.442695, %v5634_v36  ;;  %v1381_v12 = vmul.f32 1.442695, %v5638_v51  ;;  %v5660_v38 = vpop.eup %3641 }
 0x1d6   : > { %8242 = vst [vmem:[#allocation10_spill] sm:$0xff] %v5638_v51  ;;  %v5652_v62 = vsub.f32 %v8246_v58, %v870_v25  ;;  %v8249_v52 = vunpack.c.l.bf16 %v8248_v3  ;;  %3653 = vpow2.f32 %v1353_v29  ;;  %v1506_v15 = vadd.f32 %v5377_v37, %v5362_v11 }
 0x1d7   : > { %8244 = vst [vmem:[#allocation160_spill] sm:$0xff] %v5643_v30  ;;  %v1383_v17 = vmul.f32 1.442695, %v5643_v30  ;;  %v8250_v27 = vunpack.c.h.bf16 %v8248_v3  ;;  %v3644_v21 = vpop.eup %3643  ;;  %3655 = vpow2.f32 %v1363_v46  ;;  %v8251_v28 = vunpack.c.h.bf16 %v8245_v24  ;;  %1534 = vadd.xlane.f32.xlu1 %v1533_v10  ;;  %v8256_v30 = vld [vmem:[#allocation8_spill] sm:$0xff] }
 0x1d8   : > { %8247 = vst [vmem:[#allocation13_spill] sm:$0xff] %v5652_v62  ;;  %v5658_v60 = vsub.f32 %v8249_v52, %v875_v59  ;;  %v8253_v52 = vld [vmem:[#allocation12_spill] sm:$0xff]  ;;  %v1547_v29 = vadd.f32 %v3632_v39, %v1546_v53  ;;  %v3646_v51 = vpop.eup %3645  ;;  %3657 = vpow2.f32 %v1369_v4  ;;  %v1385_v11 = vmul.f32 1.442695, %v5652_v62 }
 0x1d9   : > { %v5667_v9 = vsub.f32 %v8250_v27, %v875_v59  ;;  %v5671_v14 = vsub.f32 %v8251_v28, %v870_v25  ;;  %v8254_v35 = vunpack.c.l.bf16 %v8253_v52  ;;  %v1543_v37 = vadd.f32 %v3626_v45, %v1542_v0  ;;  %v3648_v27 = vpop.eup %3647 }
 0x1da   : > { %v1556_v3 = vadd.f32 %v3640_v55, %v3638_v2  ;;  %v8257_v46 = vunpack.c.l.bf16 %v8256_v30  ;;  %v8258_v25 = vunpack.c.h.bf16 %v8256_v30  ;;  %3659 = vpow2.f32 %v1381_v12  ;;  %v3650_v4 = vpop.eup %3649  ;;  %v5695_v55 = vpop.permute.xlu2 %864 }
 0x1db   : > { %8252 = vst [vmem:[#allocation9_spill] sm:$0xff] %v5671_v14  ;;  %v5675_v58 = vsub.f32 %v8254_v35, %v875_v59  ;;  %v1389_v39 = vmul.f32 1.442695, %v5658_v60  ;;  %v8259_v53 = vunpack.c.h.bf16 %v4606_v6  ;;  %v1507_v2 = vadd.f32 %v3648_v27, %v1506_v15  ;;  %v3652_v0 = vpop.eup %3651  ;;  %1544 = vadd.xlane.f32.xlu0 %v1543_v37  ;;  %v885_v6 = vpop.permute.xlu1 %884 }
 0x1dc   : > { %v5681_v33 = vsub.f32 %v8257_v46, %v5300_v8  ;;  %v5686_v24 = vsub.f32 %v8258_v25, %v5300_v8  ;;  %3661 = vpow2.f32 %v1383_v17  ;;  %v1391_v10 = vmul.f32 1.442695, %v5667_v9  ;;  %v5699_v28 = vpop.eup %3653 }
 0x1dd   : > { %8255 = vst [vmem:[#allocation12_spill] sm:$0xff] %v5675_v58  ;;  %v5692_v45 = vsub.f32 %v8259_v53, %v5532_v49  ;;  %3663 = vpow2.f32 %v1371_v48  ;;  %v1387_v8 = vmul.f32 1.442695, %v5671_v14  ;;  %v1393_v12 = vmul.f32 1.442695, %v5675_v58  ;;  %v3656_v17 = vpop.eup %3655 }
 0x1de   : > { %v1548_v30 = vadd.f32 %v3634_v23, %v1547_v29  ;;  %v1508_v35 = vadd.f32 %v3650_v4, %v1507_v2  ;;  %3665 = vpow2.f32 %v1385_v11  ;;  %v1557_v49 = vadd.f32 %v3652_v0, %v1556_v3  ;;  %v3658_v25 = vpop.eup %3657  ;;  %v8263_v23 = vld [vmem:[#allocation11_spill] sm:$0xff]  ;;  %v890_v2 = vpop.permute.xlu0 %889 }
 0x1df   : > { %8260 = vst [vmem:[#allocation8_spill] sm:$0xff] %v5692_v45  ;;  %v1561_v15 = vadd.f32 %v3646_v51, %v3644_v21  ;;  %v1305_v27 = vmul.f32 1.442695, %v5681_v33  ;;  %v8261_v48 = vunpack.c.h.bf16 %v8253_v52  ;;  %3667 = vpow2.f32 %v1389_v39  ;;  %v8265_v21 = vld [vmem:[#allocation16_spill] sm:$0xff] }
 0x1e0   : > { %1509 = vadd.xlane.f32.xlu2 %v1508_v35  ;;  %v8264_v29 = vunpack.c.l.bf16 %v8263_v23  ;;  %3669 = vpow2.f32 %v1391_v10  ;;  %v1307_v11 = vmul.f32 1.442695, %v5686_v24  ;;  %v3660_v37 = vpop.eup %3659  ;;  %v1355_v51 = vmul.f32 1.442695, %v5692_v45  ;;  %1549 = vadd.xlane.f32.xlu1 %v1548_v30 }
 0x1e1   : > { %v5704_v46 = vsub.f32 %v8261_v48, %v875_v59  ;;  %3671 = vpow2.f32 %v1387_v8  ;;  %v8266_v3 = vunpack.c.l.bf16 %v8265_v21  ;;  %v8268_v39 = vunpack.c.h.bf16 %v8265_v21 }
 0x1e2   : > { %v5709_v53 = vsub.f32 %v8264_v29, %v5695_v55  ;;  %v3662_v59 = vpop.eup %3661  ;;  %3673 = vpow2.f32 %v1393_v12  ;;  %v1558_v0 = vadd.f32 %v3656_v17, %v1557_v49  ;;  %v1562_v10 = vadd.f32 %v3658_v25, %v1561_v15  ;;  %v8274_v17 = vld [vmem:[#allocation15_spill] sm:$0xff] }
 0x1e3   : > { %8262 = vst [vmem:[#allocation161_spill] sm:$0xff] %v5704_v46  ;;  %v5715_v52 = vsub.f32 %v8266_v3, %v885_v6  ;;  %v5719_v4 = vsub.f32 %v8268_v39, %v885_v6  ;;  %v3664_v35 = vpop.eup %3663  ;;  %v1395_v48 = vmul.f32 1.442695, %v5704_v46  ;;  %3675 = vpow2.f32 %v1305_v27 }
 0x1e4   : > { %v8270_v8 = vunpack.c.l.bf16 %v4699_v19  ;;  %v1571_v3 = vadd.f32 %v3662_v59, %v3660_v37  ;;  %v3666_v14 = vpop.eup %3665  ;;  %v1373_v12 = vmul.f32 1.442695, %v5709_v53  ;;  %3677 = vpow2.f32 %v1307_v11  ;;  %1559 = vadd.xlane.f32.xlu0 %v1558_v0 }
 0x1e5   : > { %8267 = vst [vmem:[#allocation11_spill] sm:$0xff] %v5715_v52  ;;  %v8272_v30 = vunpack.c.h.bf16 %v4699_v19  ;;  %v3668_v39 = vpop.eup %3667  ;;  %v1521_v49 = vadd.f32 %v5420_v1, %v5413_v43  ;;  %v1405_v15 = vmul.f32 1.442695, %v5715_v52  ;;  %v8275_v27 = vunpack.c.l.bf16 %v8274_v17 }
 0x1e6   : > { %8269 = vst [vmem:[#allocation16_spill] sm:$0xff] %v5719_v4  ;;  %v5724_v29 = vsub.f32 %v8270_v8, %v885_v6  ;;  %v8276_v37 = vunpack.c.h.bf16 %v8274_v17  ;;  %v3670_v8 = vpop.eup %3669  ;;  %3679 = vpow2.f32 %v1355_v51  ;;  %v1407_v19 = vmul.f32 1.442695, %v5719_v4 }
 0x1e7   : > { %v5729_v21 = vsub.f32 %v8272_v30, %v885_v6  ;;  %v5736_v25 = vsub.f32 %v8275_v27, %v890_v2  ;;  %v1563_v6 = vadd.f32 %v3664_v35, %v1562_v10  ;;  %v1572_v11 = vadd.f32 %v3666_v14, %v1571_v3  ;;  %v3672_v30 = vpop.eup %3671  ;;  %v8281_v14 = vld [vmem:[#allocation18_spill] sm:$0xff]  ;;  %v5759_v3 = vpop.permute.xlu2 %879 }
 0x1e8   : > { %8271 = vst [vmem:[#allocation162_spill] sm:$0xff] %v5724_v29  ;;  %v5740_v59 = vsub.f32 %v8276_v37, %v890_v2  ;;  %v8277_v43 = vunpack.c.h.bf16 %v8263_v23  ;;  %3681 = vpow2.f32 %v1395_v48  ;;  %v1409_v27 = vmul.f32 1.442695, %v5724_v29  ;;  %v3674_v17 = vpop.eup %3673  ;;  %v8278_v37 = vld [vmem:[#allocation14_spill] sm:$0xff] }
 0x1e9   : > { %8273 = vst [vmem:[#allocation163_spill] sm:$0xff] %v5729_v21  ;;  %v1576_v52 = vadd.f32 %v3670_v8, %v3668_v39  ;;  %v8279_v62 = vunpack.c.l.bf16 %v8278_v37  ;;  %3683 = vpow2.f32 %v1373_v12  ;;  %v1411_v0 = vmul.f32 1.442695, %v5729_v21  ;;  %v3676_v23 = vpop.eup %3675  ;;  %1564 = vadd.xlane.f32.xlu1 %v1563_v6  ;;  %v900_v21 = vpop.permute.xlu1 %899 }
 0x1ea   : > { %v5746_v1 = vsub.f32 %v8277_v43, %v5695_v55  ;;  %v8282_v10 = vunpack.c.l.bf16 %v8281_v14  ;;  %3685 = vpow2.f32 %v1405_v15  ;;  %v8284_v48 = vunpack.c.h.bf16 %v8281_v14  ;;  %v3678_v43 = vpop.eup %3677 }
 0x1eb   : > { %v5752_v51 = vsub.f32 %v8279_v62, %v5695_v55  ;;  %v1413_v8 = vmul.f32 1.442695, %v5736_v25  ;;  %v1415_v62 = vmul.f32 1.442695, %v5740_v59  ;;  %v1522_v12 = vadd.f32 %v3676_v23, %v1521_v49  ;;  %v8288_v49 = vld [vmem:[#allocation17_spill] sm:$0xff] }
 0x1ec   : > { %v5757_v35 = vsub.f32 %v8282_v10, %v890_v2  ;;  %v5763_v39 = vsub.f32 %v8284_v48, %v890_v2  ;;  %3687 = vpow2.f32 %v1407_v19  ;;  %v1573_v29 = vadd.f32 %v3672_v30, %v1572_v11  ;;  %v5775_v14 = vpop.eup %3679 }
 0x1ed   : > { %8280 = vst [vmem:[#allocation15_spill] sm:$0xff] %v5752_v51  ;;  %v1577_v10 = vadd.f32 %v3674_v17, %v1576_v52  ;;  %v8286_v4 = vunpack.c.h.bf16 %v8278_v37  ;;  %v1375_v15 = vmul.f32 1.442695, %v5746_v1  ;;  %3689 = vpow2.f32 %v1409_v27 }
 0x1ee   : > { %8283 = vst [vmem:[#allocation14_spill] sm:$0xff] %v5757_v35  ;;  %v1536_v2 = vadd.f32 %v5521_v41, %v5514_v61  ;;  %v1523_v48 = vadd.f32 %v3678_v43, %v1522_v12  ;;  %v8289_v19 = vunpack.c.l.bf16 %v8288_v49  ;;  %3691 = vpow2.f32 %v1411_v0  ;;  %v3682_v11 = vpop.eup %3681  ;;  %v905_v0 = vpop.permute.xlu0 %904  ;;  %1574 = vadd.xlane.f32.xlu0 %v1573_v29 }
 0x1ef   : > { %8285 = vst [vmem:[#allocation18_spill] sm:$0xff] %v5763_v39  ;;  %v5770_v46 = vsub.f32 %v8286_v4, %v5695_v55  ;;  %v1417_v52 = vmul.f32 1.442695, %v5757_v35  ;;  %v1377_v55 = vmul.f32 1.442695, %v5752_v51  ;;  %3693 = vpow2.f32 %v1413_v8  ;;  %v8290_v4 = vld [vmem:[#allocation21_spill] sm:$0xff]  ;;  %v5788_v61 = vpop.eup %3683 }
 0x1f0   : > { %v5780_v6 = vsub.f32 %v8289_v19, %v5759_v3  ;;  %v8291_v30 = vunpack.c.l.bf16 %v8290_v4  ;;  %1524 = vadd.xlane.f32.xlu2 %v1523_v48  ;;  %3695 = vpow2.f32 %v1415_v62  ;;  %v1419_v41 = vmul.f32 1.442695, %v5763_v39  ;;  %v3686_v43 = vpop.eup %3685  ;;  %v8297_v48 = vld [vmem:[#allocation29_spill] sm:$0xff]  ;;  %v8431_v35 = vld [vmem:[#allocation123_spill] sm:$0xff] }
 0x1f1   : > { %8287 = vst [vmem:[#allocation164_spill] sm:$0xff] %v5770_v46  ;;  %v8293_v17 = vunpack.c.h.bf16 %v8290_v4  ;;  %v1578_v23 = vadd.f32 %v3682_v11, %v1577_v10  ;;  %3697 = vpow2.f32 %v1375_v15  ;;  %v1379_v8 = vmul.f32 1.442695, %v5770_v46 }
 0x1f2   : > { %v5786_v27 = vsub.f32 %v8291_v30, %v900_v21  ;;  %v1537_v12 = vadd.f32 %v5536_v26, %v1536_v2  ;;  %v8295_v19 = vunpack.c.l.bf16 %v4753_v54  ;;  %v3688_v62 = vpop.eup %3687  ;;  %v1081_v39 = vsub.f32 %v8297_v48, %v4842_v56  ;;  %v8300_v26 = vld [vmem:[#allocation20_spill] sm:$0xff] }
 0x1f3   : > { %v5793_v37 = vsub.f32 %v8293_v17, %v900_v21  ;;  %v1397_v4 = vmul.f32 1.442695, %v5780_v6  ;;  %3699 = vpow2.f32 %v1417_v52  ;;  %v8298_v29 = vunpack.c.h.bf16 %v4753_v54  ;;  %v3690_v15 = vpop.eup %3689  ;;  %1579 = vadd.xlane.f32.xlu1 %v1578_v23  ;;  %v895_v23 = vpop.permute.xlu2 %894 }
 0x1f4   : > { %8292 = vst [vmem:[#allocation17_spill] sm:$0xff] %v5786_v27  ;;  %v5799_v30 = vsub.f32 %v8295_v19, %v900_v21  ;;  %3701 = vpow2.f32 %v1377_v55  ;;  %v1429_v11 = vmul.f32 1.442695, %v5786_v27  ;;  %v8301_v2 = vunpack.c.l.bf16 %v8300_v26  ;;  %v3692_v46 = vpop.eup %3691 }
 0x1f5   : > { %8294 = vst [vmem:[#allocation21_spill] sm:$0xff] %v5793_v37  ;;  %v5806_v10 = vsub.f32 %v8298_v29, %v900_v21  ;;  %v1586_v19 = vadd.f32 %v3688_v62, %v3686_v43  ;;  %v8302_v48 = vunpack.c.h.bf16 %v8288_v49  ;;  %3703 = vpow2.f32 %v1419_v41  ;;  %v3694_v55 = vpop.eup %3693 }
 0x1f6   : > { %8296 = vst [vmem:[#allocation165_spill] sm:$0xff] %v5799_v30  ;;  %v5811_v17 = vsub.f32 %v8301_v2, %v905_v0  ;;  %v1431_v54 = vmul.f32 1.442695, %v5793_v37  ;;  %v8303_v21 = vunpack.c.h.bf16 %v8300_v26  ;;  %3705 = vpow2.f32 %v1379_v8  ;;  %v3696_v2 = vpop.eup %3695  ;;  %v8314_v37 = vld [vmem:[#allocation22_spill] sm:$0xff] }
 0x1f7   : > { %8299 = vst [vmem:[#allocation29_spill] sm:$0xff] %v5806_v10  ;;  %v5816_v56 = vsub.f32 %v8302_v48, %v5759_v3  ;;  %v1538_v29 = vadd.f32 %v5549_v13, %v1537_v12  ;;  %v1433_v43 = vmul.f32 1.442695, %v5799_v30  ;;  %v1587_v62 = vadd.f32 %v3690_v15, %v1586_v19  ;;  %v8304_v48 = vld [vmem:[#allocation23_spill] sm:$0xff] }
 0x1f8   : > { %v5821_v52 = vsub.f32 %v8303_v21, %v905_v0  ;;  %3707 = vpow2.f32 %v1397_v4  ;;  %v1435_v49 = vmul.f32 1.442695, %v5806_v10  ;;  %v8305_v41 = vunpack.c.l.bf16 %v8304_v48  ;;  %v3698_v21 = vpop.eup %3697  ;;  %v8309_v10 = vld [vmem:[#allocation19_spill] sm:$0xff] }
 0x1f9   : > { %v1551_v26 = vadd.f32 %v5660_v38, %v5645_v20  ;;  %3709 = vpow2.f32 %v1429_v11  ;;  %v1437_v8 = vmul.f32 1.442695, %v5811_v17  ;;  %v1588_v13 = vadd.f32 %v3692_v46, %v1587_v62  ;;  %v3700_v30 = vpop.eup %3699  ;;  %1539 = vadd.xlane.f32.xlu2 %v1538_v29 }
 0x1fa   : > { %v5828_v27 = vsub.f32 %v8305_v41, %v905_v0  ;;  %v1591_v12 = vadd.f32 %v3696_v2, %v3694_v55  ;;  %3711 = vpow2.f32 %v1431_v54  ;;  %v8307_v4 = vunpack.c.h.bf16 %v8304_v48  ;;  %v3702_v41 = vpop.eup %3701 }
 0x1fb   : > { %v1439_v19 = vmul.f32 1.442695, %v5821_v52  ;;  %v8310_v20 = vunpack.c.l.bf16 %v8309_v10  ;;  %v1399_v11 = vmul.f32 1.442695, %v5816_v56  ;;  %3713 = vpow2.f32 %v1433_v43  ;;  %1589 = vadd.xlane.f32.xlu0 %v1588_v13  ;;  %v3704_v55 = vpop.eup %3703 }
 0x1fc   : > { %8306 = vst [vmem:[#allocation20_spill] sm:$0xff] %v5828_v27  ;;  %v5835_v15 = vsub.f32 %v8307_v4, %v905_v0  ;;  %v1592_v46 = vadd.f32 %v3700_v30, %v1591_v12  ;;  %3715 = vpow2.f32 %v1435_v49  ;;  %v1441_v54 = vmul.f32 1.442695, %v5828_v27  ;;  %v3706_v29 = vpop.eup %3705 }
 0x1fd   : > { %v5841_v38 = vsub.f32 %v8310_v20, %v5759_v3  ;;  %v1552_v0 = vadd.f32 %v5699_v28, %v1551_v26  ;;  %v1117_v62 = vmul.f32 1.442695, %v1081_v39  ;;  %v8312_v2 = vunpack.c.h.bf16 %v8309_v10 }
 0x1fe   : > { %8308 = vst [vmem:[#allocation23_spill] sm:$0xff] %v5835_v15  ;;  %3717 = vpow2.f32 %v1437_v8  ;;  %v1593_v4 = vadd.f32 %v3704_v55, %v1592_v46  ;;  %v3708_v20 = vpop.eup %3707  ;;  %v8315_v43 = vunpack.c.l.bf16 %v8314_v37  ;;  %v1443_v30 = vmul.f32 1.442695, %v5835_v15 }
 0x1ff   : > { %8311 = vst [vmem:[#allocation19_spill] sm:$0xff] %v5841_v38  ;;  %v5849_v48 = vsub.f32 %v8312_v2, %v5759_v3  ;;  %3719 = vpow2.f32 %v1439_v19  ;;  %v3710_v49 = vpop.eup %3709  ;;  %v1401_v28 = vmul.f32 1.442695, %v5841_v38  ;;  %v8316_v39 = vunpack.c.h.bf16 %v8314_v37  ;;  %v1045_v3 = vld [vmem:[#allocation3] sm:$0xff] }
 0x200   : > { %v5853_v13 = vsub.f32 %v8315_v43, %v895_v23  ;;  %3721 = vpow2.f32 %v1399_v11  ;;  %1594 = vadd.xlane.f32.xlu1 %v1593_v4  ;;  %v3712_v10 = vpop.eup %3711  ;;  %v1553_v8 = vadd.f32 %v5775_v14, %v1552_v0  ;;  %v1566_v12 = vadd.f32 %v3698_v21, %v5788_v61  ;;  %v8317_v37 = vld [vmem:[#allocation116_spill] sm:$0xff]  ;;  %v910_v61 = vpop.permute.xlu2 %909 }
 0x201   : > { %8313 = vst [vmem:[#allocation166_spill] sm:$0xff] %v5849_v48  ;;  %v5859_v26 = vsub.f32 %v8316_v39, %v895_v23  ;;  %3723 = vpow2.f32 %v1441_v54  ;;  %v3714_v46 = vpop.eup %3713  ;;  %v1403_v19 = vmul.f32 1.442695, %v5849_v48  ;;  %v1601_v55 = vadd.f32 %v3712_v10, %v3710_v49  ;;  %v8318_v39 = vld [vmem:[#allocation24_spill] sm:$0xff] }
 0x202   : > { %3725 = vpow2.f32 %v1117_v62  ;;  %v3716_v11 = vpop.eup %3715  ;;  %v1421_v2 = vmul.f32 1.442695, %v5853_v13  ;;  %1554 = vadd.xlane.f32.xlu2 %v1553_v8  ;;  %v1173_v43 = vmul.f32 %v8317_v37, %v1045_v3  ;;  %v8319_v54 = vunpack.c.l.bf16 %v8318_v39 }
 0x203   : > { %3727 = vpow2.f32 %v1443_v30  ;;  %v1423_v14 = vmul.f32 1.442695, %v5859_v26  ;;  %v1602_v21 = vadd.f32 %v3714_v46, %v1601_v55  ;;  %v8321_v62 = vunpack.c.h.bf16 %v8318_v39  ;;  %v1465_v30 = vpop.xlane.xlu0 %1464 }
 0x204   : > { %v3718_v4 = vpop.eup %3717  ;;  %3729 = vpow2.f32 %v1401_v28  ;;  %v5868_v15 = vsub.f32 %v8319_v54, %v895_v23  ;;  %v1567_v10 = vadd.f32 %v3702_v41, %v1566_v12  ;;  %v1621_v28 = vadd.f32 %v1465_v30, %v1173_v43  ;;  %v8323_v54 = vld [vmem:[#allocation26_spill] sm:$0xff]  ;;  %v8328_v30 = vld [vmem:[#allocation28_spill] sm:$0xff] }
 0x205   : > { %v3720_v0 = vpop.eup %3719  ;;  %v5873_v49 = vsub.f32 %v8321_v62, %v895_v23  ;;  %3731 = vpow2.f32 %v1403_v19  ;;  %v1603_v3 = vadd.f32 %v3716_v11, %v1602_v21  ;;  %v8324_v38 = vunpack.c.l.bf16 %v8323_v54  ;;  %v8326_v19 = vld [vmem:[#allocation32_spill] sm:$0xff]  ;;  %v8327_v11 = vld [vmem:[#allocation30_spill] sm:$0xff] }
 0x206   : > { %8320 = vst [vmem:[#allocation22_spill] sm:$0xff] %v5868_v15  ;;  %v3722_v8 = vpop.eup %3721  ;;  %v1606_v37 = vadd.f32 %v3720_v0, %v3718_v4  ;;  %3733 = vpow2.f32 %v1421_v2  ;;  %v1425_v46 = vmul.f32 1.442695, %v5868_v15  ;;  %v8325_v23 = vunpack.c.h.bf16 %v8323_v54 }
 0x207   : > { %8322 = vst [vmem:[#allocation116_spill] sm:$0xff] %v5873_v49  ;;  %v3724_v48 = vpop.eup %3723  ;;  %v5877_v27 = vsub.f32 %v8324_v38, %v910_v61  ;;  %3735 = vpow2.f32 %v1423_v14  ;;  %1604 = vadd.xlane.f32.xlu0 %v1603_v3  ;;  %v1079_v2 = vsub.f32 %v8327_v11, %v8326_v19  ;;  %v1568_v43 = vadd.f32 %v3706_v29, %v1567_v10  ;;  %v1049_v38 = vld [vmem:[#allocation3 + $0x20] sm:$0xff]  ;;  %v5931_v19 = vld [vmem:[%s4091_s6 + $0x8] sm:$0xff] }
 0x208   : > { %v3726_v51 = vpop.eup %3725  ;;  %v5882_v55 = vsub.f32 %v8325_v23, %v910_v61  ;;  %v1607_v41 = vadd.f32 %v3724_v48, %v1606_v37  ;;  %1654 = vst.msk [vmem:[#allocation3] sm:$0xff] %vm7940_vm1, %v1621_v28  ;;  %v1581_v4 = vadd.f32 %v3722_v8, %v3708_v20  ;;  %v1427_v14 = vmul.f32 1.442695, %v5873_v49  ;;  %v8427_v49 = vld [vmem:[#allocation109_spill] sm:$0xff] }
 0x209   : > { %v3728_v12 = vpop.eup %3727  ;;  %v1445_v0 = vmul.f32 1.442695, %v5877_v27  ;;  %3737 = vpow2.f32 %v1425_v46  ;;  %v8329_v48 = vunpack.c.l.bf16 %v8328_v30  ;;  %v1177_v28 = vmul.f32 %v3726_v51, %v1049_v38 }
 0x20a   : > { %v3730_v39 = vpop.eup %3729  ;;  %v1608_v21 = vadd.f32 %v3728_v12, %v1607_v41  ;;  %1569 = vadd.xlane.f32.xlu2 %v1568_v43  ;;  %v1447_v37 = vmul.f32 1.442695, %v5882_v55  ;;  %v1113_v20 = vmul.f32 1.442695, %v1079_v2  ;;  %3739 = vpow2.f32 %v1427_v14  ;;  %v8334_v14 = vld [vmem:[#allocation34_spill] sm:$0xff] }
 0x20b   : > { %v3732_v62 = vpop.eup %3731  ;;  %v5891_v3 = vsub.f32 %v8329_v48, %v910_v61  ;;  %v1582_v10 = vadd.f32 %v3730_v39, %v1581_v4  ;;  %v1485_v8 = vpop.xlane.xlu0 %1484  ;;  %3741 = vpow2.f32 %v1445_v0  ;;  %v8331_v41 = vunpack.c.h.bf16 %v8328_v30  ;;  %v8333_v39 = vld [vmem:[#allocation37_spill] sm:$0xff]  ;;  %v1047_v48 = vld [vmem:[#allocation3 + $0x10] sm:$0xff]  ;;  %8352 = vst [vmem:[#allocation34_spill] sm:$0xff] %v5931_v19 }
 0x20c   : > { %1609 = vadd.xlane.f32.xlu1 %v1608_v21  ;;  %v3734_v29 = vpop.eup %3733  ;;  %v1625_v23 = vadd.f32 %v1485_v8, %v1177_v28  ;;  %3743 = vpow2.f32 %v1447_v37  ;;  %v1082_v21 = vsub.f32 %v8334_v14, %v8333_v39  ;;  %v8335_v37 = vld [vmem:[#allocation39_spill] sm:$0xff]  ;;  %v8336_v28 = vld [vmem:[#allocation36_spill] sm:$0xff] }
 0x20d   : > { %8330 = vst [vmem:[#allocation24_spill] sm:$0xff] %v5891_v3  ;;  %v3736_v54 = vpop.eup %3735  ;;  %v5896_v12 = vsub.f32 %v8331_v41, %v910_v61  ;;  %v1449_v46 = vmul.f32 1.442695, %v5891_v3  ;;  %3745 = vpow2.f32 %v1113_v20  ;;  %v1583_v11 = vadd.f32 %v3732_v62, %v1582_v10 }
 0x20e   : > { %1658 = vst.msk [vmem:[#allocation3 + $0x20] sm:$0xff] %vm7940_vm1, %v1625_v23  ;;  %v1596_v51 = vadd.f32 %v3736_v54, %v3734_v29  ;;  %v1078_v8 = vsub.f32 %v8336_v28, %v8335_v37  ;;  %v1119_v62 = vmul.f32 1.442695, %v1082_v21  ;;  %v1475_v23 = vpop.xlane.xlu1 %1474  ;;  %v8339_v21 = vld [vmem:[#allocation44_spill] sm:$0xff] }
 0x20f   : > { %8332 = vst [vmem:[#allocation26_spill] sm:$0xff] %v5896_v12  ;;  %v3738_v43 = vpop.eup %3737  ;;  %3747 = vpow2.f32 %v1449_v46  ;;  %v1451_v4 = vmul.f32 1.442695, %v5896_v12  ;;  %v5963_v37 = vld [vmem:[%s4091_s6 + $0x60] sm:$0xff] }
 0x210   : > { %v3740_v2 = vpop.eup %3739  ;;  %v1597_v61 = vadd.f32 %v3738_v43, %v1596_v51  ;;  %v1111_v41 = vmul.f32 1.442695, %v1078_v8  ;;  %v8337_v51 = vld [vmem:[#allocation38_spill] sm:$0xff]  ;;  %v8338_v43 = vld [vmem:[#allocation35_spill] sm:$0xff] }
 0x211   : > { %v3742_v38 = vpop.eup %3741  ;;  %3749 = vpow2.f32 %v1451_v4  ;;  %v1080_v39 = vsub.f32 %v8338_v43, %v8337_v51  ;;  %v8342_v8 = vld [vmem:[#allocation42_spill] sm:$0xff] }
 0x212   : > { %1584 = vadd.xlane.f32.xlu2 %v1583_v11  ;;  %v3744_v0 = vpop.eup %3743  ;;  %v1598_v29 = vadd.f32 %v3740_v2, %v1597_v61  ;;  %3751 = vpow2.f32 %v1119_v62  ;;  %v1050_v2 = vld [vmem:[#allocation3 + $0x28] sm:$0xff]  ;;  %v8343_v62 = vld [vmem:[#allocation40_spill] sm:$0xff] }
 0x213   : > { %v3746_v30 = vpop.eup %3745  ;;  %v1611_v20 = vadd.f32 %v3744_v0, %v3742_v38  ;;  %3753 = vpow2.f32 %v1111_v41  ;;  %v1115_v38 = vmul.f32 1.442695, %v1080_v39  ;;  %v8340_v61 = vld [vmem:[#allocation41_spill] sm:$0xff] }
 0x214   : > { %v1175_v54 = vmul.f32 %v3746_v30, %v1047_v48  ;;  %v1084_v0 = vsub.f32 %v8340_v61, %v8339_v21  ;;  %v8341_v30 = vld [vmem:[#allocation90_spill] sm:$0xff]  ;;  %v5920_v61 = vld [vmem:[%s4091_s6 + $0x18] sm:$0xff]  ;;  %v5959_v21 = vld [vmem:[%s4091_s6 + $0x40] sm:$0xff] }
 0x215   : > { %v3748_v10 = vpop.eup %3747  ;;  %3755 = vpow2.f32 %v1115_v38  ;;  %8345 = vst [vmem:[#allocation28_spill] sm:$0xff] %v5920_v61 }
 0x216   : > { %v1623_v46 = vadd.f32 %v1475_v23, %v1175_v54  ;;  %v1612_v11 = vadd.f32 %v3748_v10, %v1611_v20  ;;  %v1046_v10 = vld [vmem:[#allocation3 + $0x8] sm:$0xff]  ;;  %v1123_v23 = vmul.f32 1.442695, %v1084_v0  ;;  %8366 = vst [vmem:[#allocation40_spill] sm:$0xff] %v5959_v21 }
 0x217   : > { %v3750_v14 = vpop.eup %3749 }
 0x218   : > { %1656 = vst.msk [vmem:[#allocation3 + $0x10] sm:$0xff] %vm7940_vm1, %v1623_v46  ;;  %v1613_v28 = vadd.f32 %v3750_v14, %v1612_v11  ;;  %v3752_v4 = vpop.eup %3751  ;;  %v5914_v14 = vld [vmem:[%s4091_s6] sm:$0xff]  ;;  %3757 = vpow2.f32 %v1123_v23 }
 0x219   : > { %v3754_v48 = vpop.eup %3753  ;;  %v1178_v20 = vmul.f32 %v3752_v4, %v1050_v2  ;;  %v1490_v54 = vpop.xlane.xlu1 %1489  ;;  %8344 = vst [vmem:[#allocation30_spill] sm:$0xff] %v5914_v14  ;;  %v1048_v4 = vld [vmem:[#allocation3 + $0x18] sm:$0xff]  ;;  %v1053_v23 = vld [vmem:[#allocation3 + $0x40] sm:$0xff] }
 0x21a   : > { %1599 = vadd.xlane.f32.xlu2 %v1598_v29  ;;  %v1085_v29 = vsub.f32 %v8343_v62, %v8342_v8  ;;  %v1174_v46 = vmul.f32 %v3754_v48, %v1046_v10  ;;  %v1052_v48 = vld [vmem:[#allocation3 + $0x38] sm:$0xff]  ;;  %v8351_v8 = vld [vmem:[#allocation46_spill] sm:$0xff] }
 0x21b   : > { %v1626_v41 = vadd.f32 %v1490_v54, %v1178_v20  ;;  %v8346_v20 = vld [vmem:[#allocation50_spill] sm:$0xff]  ;;  %v8347_v10 = vld [vmem:[#allocation47_spill] sm:$0xff] }
 0x21c   : > { %v1125_v11 = vmul.f32 1.442695, %v1085_v29  ;;  %v1470_v39 = vpop.xlane.xlu2 %1469  ;;  %v1087_v54 = vsub.f32 %v8347_v10, %v8346_v20  ;;  %8367 = vst [vmem:[#allocation47_spill] sm:$0xff] %v5963_v37 }
 0x21d   : > { %1659 = vst.msk [vmem:[#allocation3 + $0x28] sm:$0xff] %vm7940_vm1, %v1626_v41  ;;  %v1622_v43 = vadd.f32 %v1470_v39, %v1174_v46  ;;  %v8348_v46 = vld [vmem:[#allocation45_spill] sm:$0xff] }
 0x21e   : > { %3759 = vpow2.f32 %v1125_v11  ;;  %v8349_v11 = vld [vmem:[#allocation43_spill] sm:$0xff] }
 0x21f   : > { %1655 = vst.msk [vmem:[#allocation3 + $0x8] sm:$0xff] %vm7940_vm1, %v1622_v43  ;;  %v1083_v39 = vsub.f32 %v8349_v11, %v8348_v46 }
 0x222   : > { %1614 = vadd.xlane.f32.xlu2 %v1613_v28  ;;  %v3756_v28 = vpop.eup %3755 }
 0x223   : > { %v1176_v2 = vmul.f32 %v3756_v28, %v1048_v4  ;;  %v3758_v38 = vpop.eup %3757 }
 0x224   : > { %v1480_v0 = vpop.xlane.xlu2 %1479  ;;  %v3760_v29 = vpop.eup %3759  ;;  %v1180_v41 = vmul.f32 %v3758_v38, %v1052_v48  ;;  %v5935_v38 = vld [vmem:[%s4091_s6 + $0x30] sm:$0xff] }
 0x225   : > { %914 = vperm.xlu1 %3496, %v8341_v30   ;;  %v1624_v62 = vadd.f32 %v1480_v0, %v1176_v2  ;;  %v1181_v28 = vmul.f32 %v3760_v29, %v1053_v23  ;;  %v1129_v0 = vmul.f32 1.442695, %v1087_v54  ;;  %8353 = vst [vmem:[#allocation36_spill] sm:$0xff] %v5935_v38  ;;  %v8354_v29 = vld [vmem:[#allocation56_spill] sm:$0xff]  ;;  %v8356_v23 = vld [vmem:[#allocation54_spill] sm:$0xff] }
 0x227   : > { %1657 = vst.msk [vmem:[#allocation3 + $0x18] sm:$0xff] %vm7940_vm1, %v1624_v62  ;;  %v1121_v62 = vmul.f32 1.442695, %v1083_v39  ;;  %3761 = vpow2.f32 %v1129_v0  ;;  %v5945_v39 = vld [vmem:[%s4091_s6 + $0x28] sm:$0xff]  ;;  %v8360_v0 = vld [vmem:[#allocation62_spill] sm:$0xff] }
 0x228   : > { %8358 = vst [vmem:[#allocation35_spill] sm:$0xff] %v5945_v39 }
 0x229   : > { %3763 = vpow2.f32 %v1121_v62 }
 0x22a   : > { %v1500_v43 = vpop.xlane.xlu0 %1499 }
 0x22b   : > { %v1628_v4 = vadd.f32 %v1500_v43, %v1180_v41  ;;  %v8357_v41 = vld [vmem:[#allocation52_spill] sm:$0xff] }
 0x22c   : > { %v1091_v11 = vsub.f32 %v8357_v41, %v8356_v23  ;;  %v1056_v23 = vld [vmem:[#allocation3 + $0x58] sm:$0xff] }
 0x22d   : > { %1730 = vperm.xlu1 %3496, %v5914_v14   ;;  %v8350_v14 = vld [vmem:[#allocation48_spill] sm:$0xff]  ;;  %v1505_v10 = vpop.xlane.xlu1 %1504  ;;  %1661 = vst.msk [vmem:[#allocation3 + $0x38] sm:$0xff] %vm7940_vm1, %v1628_v4  ;;  %v5948_v4 = vld [vmem:[%s4091_s6 + $0x48] sm:$0xff] }
 0x22e   : > { %v1088_v2 = vsub.f32 %v8351_v8, %v8350_v14  ;;  %v1629_v51 = vadd.f32 %v1505_v10, %v1181_v28  ;;  %v8355_v8 = vld [vmem:[#allocation53_spill] sm:$0xff]  ;;  %v3762_v28 = vpop.eup %3761  ;;  %8359 = vst [vmem:[#allocation41_spill] sm:$0xff] %v5948_v4  ;;  %v1055_v10 = vld [vmem:[#allocation3 + $0x50] sm:$0xff] }
 0x22f   : > { %v1090_v54 = vsub.f32 %v8355_v8, %v8354_v29  ;;  %v8361_v8 = vld [vmem:[#allocation59_spill] sm:$0xff]  ;;  %v1183_v41 = vmul.f32 %v3762_v28, %v1055_v10  ;;  %v8364_v29 = vld [vmem:[#allocation60_spill] sm:$0xff] }
 0x230   : > { %1662 = vst.msk [vmem:[#allocation3 + $0x40] sm:$0xff] %vm7940_vm1, %v1629_v51  ;;  %v1131_v48 = vmul.f32 1.442695, %v1088_v2  ;;  %v3764_v51 = vpop.eup %3763  ;;  %v1137_v2 = vmul.f32 1.442695, %v1091_v11  ;;  %v1093_v62 = vsub.f32 %v8361_v8, %v8360_v0  ;;  %v8365_v11 = vld [vmem:[#allocation58_spill] sm:$0xff] }
 0x231   : > { %v1135_v43 = vmul.f32 1.442695, %v1090_v54 }
 0x232   : > { %3765 = vpow2.f32 %v1131_v48  ;;  %v1051_v48 = vld [vmem:[#allocation3 + $0x30] sm:$0xff]  ;;  %v1141_v20 = vmul.f32 1.442695, %v1093_v62  ;;  %v8369_v62 = vld [vmem:[#allocation65_spill] sm:$0xff] }
 0x233   : > { %3767 = vpow2.f32 %v1135_v43  ;;  %v1179_v46 = vmul.f32 %v3764_v51, %v1051_v48  ;;  %v1094_v43 = vsub.f32 %v8365_v11, %v8364_v29 }
 0x234   : > { %3769 = vpow2.f32 %v1137_v2  ;;  %v8368_v2 = vld [vmem:[#allocation68_spill] sm:$0xff] }
 0x235   : > { %1739 = vperm.xlu1 %3496, %v5920_v61   ;;  %v8363_v61 = vld [vmem:[#allocation49_spill] sm:$0xff]  ;;  %v1143_v51 = vmul.f32 1.442695, %v1094_v43  ;;  %3771 = vpow2.f32 %v1141_v20  ;;  %v5974_v20 = vld [vmem:[%s4091_s6 + $0x58] sm:$0xff] }
 0x236   : > { %8372 = vst [vmem:[#allocation43_spill] sm:$0xff] %v5974_v20 }
 0x238   : > { %v3766_v54 = vpop.eup %3765 }
 0x239   : > { %v3768_v28 = vpop.eup %3767 }
 0x23a   : > { %1733 = vperm.xlu2 %3494, %v5931_v19  }
 0x23d   : > { %1748 = vperm.xlu1 %3496, %v5935_v38   ;;  %v8362_v38 = vld [vmem:[#allocation51_spill] sm:$0xff]  ;;  %v1515_v14 = vpop.xlane.xlu0 %1514 }
 0x23e   : > { %v1086_v19 = vsub.f32 %v8363_v61, %v8362_v38  ;;  %v1058_v38 = vld [vmem:[#allocation3 + $0x68] sm:$0xff] }
 0x23f   : > { %v1495_v8 = vpop.xlane.xlu2 %1494 }
 0x240   : > { %v1627_v0 = vadd.f32 %v1495_v8, %v1179_v46  ;;  %v1127_v10 = vmul.f32 1.442695, %v1086_v19  ;;  %v1096_v46 = vsub.f32 %v8369_v62, %v8368_v2  ;;  %v1186_v19 = vmul.f32 %v3768_v28, %v1058_v38  ;;  %v1061_v38 = vld [vmem:[#allocation3 + $0x80] sm:$0xff]  ;;  %v8374_v28 = vld [vmem:[#allocation57_spill] sm:$0xff]  ;;  %v1064_v2 = vld [vmem:[#allocation3 + $0x98] sm:$0xff] }
 0x242   : > { %1745 = vperm.xlu2 %3494, %v5945_v39   ;;  %v1631_v39 = vadd.f32 %v1515_v14, %v1183_v41  ;;  %v1520_v61 = vpop.xlane.xlu1 %1519  ;;  %1660 = vst.msk [vmem:[#allocation3 + $0x30] sm:$0xff] %vm7940_vm1, %v1627_v0  ;;  %3773 = vpow2.f32 %v1127_v10  ;;  %v8370_v0 = vld [vmem:[#allocation66_spill] sm:$0xff]  ;;  %v1147_v11 = vmul.f32 1.442695, %v1096_v46  ;;  %v8375_v10 = vld [vmem:[#allocation55_spill] sm:$0xff] }
 0x243   : > { %3775 = vpow2.f32 %v1143_v51  ;;  %v1089_v62 = vsub.f32 %v8375_v10, %v8374_v28  ;;  %v8376_v46 = vld [vmem:[#allocation74_spill] sm:$0xff] }
 0x244   : > { %1664 = vst.msk [vmem:[#allocation3 + $0x50] sm:$0xff] %vm7940_vm1, %v1631_v39  ;;  %v1059_v39 = vld [vmem:[#allocation3 + $0x70] sm:$0xff]  ;;  %3777 = vpow2.f32 %v1147_v11 }
 0x245   : > { %1757 = vperm.xlu1 %3496, %v5948_v4   ;;  %v1184_v4 = vmul.f32 %v3766_v54, %v1056_v23  ;;  %v3770_v23 = vpop.eup %3769  ;;  %v1530_v48 = vpop.xlane.xlu0 %1529  ;;  %v8371_v54 = vld [vmem:[#allocation64_spill] sm:$0xff]  ;;  %v5990_v28 = vld [vmem:[%s4091_s6 + $0x70] sm:$0xff] }
 0x246   : > { %v1634_v41 = vadd.f32 %v1530_v48, %v1186_v19  ;;  %v1187_v43 = vmul.f32 %v3770_v23, %v1059_v39  ;;  %v3772_v8 = vpop.eup %3771  ;;  %v1054_v39 = vld [vmem:[#allocation3 + $0x48] sm:$0xff]  ;;  %8380 = vst [vmem:[#allocation53_spill] sm:$0xff] %v5990_v28 }
 0x247   : > { %v1632_v14 = vadd.f32 %v1520_v61, %v1184_v4  ;;  %v1097_v4 = vsub.f32 %v8371_v54, %v8370_v0  ;;  %v5978_v61 = vld [vmem:[%s4091_s6 + $0x78] sm:$0xff]  ;;  %v1133_v0 = vmul.f32 1.442695, %v1089_v62 }
 0x248   : > { %1667 = vst.msk [vmem:[#allocation3 + $0x68] sm:$0xff] %vm7940_vm1, %v1634_v41  ;;  %v3774_v19 = vpop.eup %3773  ;;  %v8377_v54 = vld [vmem:[#allocation71_spill] sm:$0xff]  ;;  %v1189_v41 = vmul.f32 %v3772_v8, %v1061_v38  ;;  %v5994_v38 = vld [vmem:[%s4091_s6 + $0x90] sm:$0xff] }
 0x249   : > { %1665 = vst.msk [vmem:[#allocation3 + $0x58] sm:$0xff] %vm7940_vm1, %v1632_v14  ;;  %v1149_v48 = vmul.f32 1.442695, %v1097_v4  ;;  %v1099_v23 = vsub.f32 %v8377_v54, %v8376_v46  ;;  %v8378_v4 = vld [vmem:[#allocation72_spill] sm:$0xff] }
 0x24a   : > { %1754 = vperm.xlu2 %3494, %v5959_v21   ;;  %8373 = vst [vmem:[#allocation46_spill] sm:$0xff] %v5978_v61  ;;  %v1535_v14 = vpop.xlane.xlu1 %1534  ;;  %v1062_v21 = vld [vmem:[#allocation3 + $0x88] sm:$0xff] }
 0x24b   : > { %v1635_v51 = vadd.f32 %v1535_v14, %v1187_v43  ;;  %3779 = vpow2.f32 %v1149_v48  ;;  %v8379_v14 = vld [vmem:[#allocation70_spill] sm:$0xff]  ;;  %v1153_v29 = vmul.f32 1.442695, %v1099_v23  ;;  %8381 = vst [vmem:[#allocation52_spill] sm:$0xff] %v5994_v38  ;;  %v8382_v48 = vld [vmem:[#allocation63_spill] sm:$0xff]  ;;  %v8383_v23 = vld [vmem:[#allocation61_spill] sm:$0xff] }
 0x24c   : > { %v1100_v11 = vsub.f32 %v8379_v14, %v8378_v4  ;;  %3781 = vpow2.f32 %v1133_v0 }
 0x24d   : > { %1766 = vperm.xlu1 %3496, %v5963_v37   ;;  %1668 = vst.msk [vmem:[#allocation3 + $0x70] sm:$0xff] %vm7940_vm1, %v1635_v51  ;;  %v3776_v37 = vpop.eup %3775  ;;  %3783 = vpow2.f32 %v1153_v29 }
 0x24e   : > { %v1545_v10 = vpop.xlane.xlu0 %1544  ;;  %v3778_v8 = vpop.eup %3777 }
 0x24f   : > { %v1637_v43 = vadd.f32 %v1545_v10, %v1189_v41  ;;  %v1192_v0 = vmul.f32 %v3778_v8, %v1064_v2  ;;  %v1065_v10 = vld [vmem:[#allocation3 + $0xa0] sm:$0xff]  ;;  %v1067_v8 = vld [vmem:[#allocation3 + $0xb0] sm:$0xff] }
 0x251   : > { %1670 = vst.msk [vmem:[#allocation3 + $0x80] sm:$0xff] %vm7940_vm1, %v1637_v43  ;;  %v3780_v41 = vpop.eup %3779 }
 0x252   : > { %1763 = vperm.xlu2 %3494, %v5974_v20   ;;  %v1182_v20 = vmul.f32 %v3774_v19, %v1054_v39  ;;  %v1155_v19 = vmul.f32 1.442695, %v1100_v11  ;;  %v3782_v29 = vpop.eup %3781  ;;  %v8387_v11 = vld [vmem:[#allocation78_spill] sm:$0xff] }
 0x253   : > { %v1510_v54 = vpop.xlane.xlu2 %1509  ;;  %v1550_v51 = vpop.xlane.xlu1 %1549 }
 0x254   : > { %v1630_v46 = vadd.f32 %v1510_v54, %v1182_v20  ;;  %v1092_v20 = vsub.f32 %v8383_v23, %v8382_v48  ;;  %3785 = vpow2.f32 %v1155_v19  ;;  %v8388_v54 = vld [vmem:[#allocation76_spill] sm:$0xff] }
 0x255   : > { %1775 = vperm.xlu1 %3496, %v5978_v61   ;;  %v1190_v61 = vmul.f32 %v3776_v37, %v1062_v21  ;;  %v8384_v37 = vld [vmem:[#allocation80_spill] sm:$0xff]  ;;  %v8385_v21 = vld [vmem:[#allocation77_spill] sm:$0xff] }
 0x256   : > { %1663 = vst.msk [vmem:[#allocation3 + $0x48] sm:$0xff] %vm7940_vm1, %v1630_v46  ;;  %v1102_v39 = vsub.f32 %v8385_v21, %v8384_v37  ;;  %v6005_v46 = vld [vmem:[%s4091_s6 + $0x88] sm:$0xff]  ;;  %v1193_v21 = vmul.f32 %v3780_v41, %v1065_v10 }
 0x257   : > { %v1638_v62 = vadd.f32 %v1550_v51, %v1190_v61  ;;  %v1560_v43 = vpop.xlane.xlu0 %1559  ;;  %v1139_v61 = vmul.f32 1.442695, %v1092_v20  ;;  %8386 = vst [vmem:[#allocation59_spill] sm:$0xff] %v6005_v46  ;;  %v1103_v51 = vsub.f32 %v8388_v54, %v8387_v11  ;;  %v8390_v20 = vld [vmem:[#allocation69_spill] sm:$0xff]  ;;  %v1068_v54 = vld [vmem:[#allocation3 + $0xb8] sm:$0xff] }
 0x258   : > { %v1640_v14 = vadd.f32 %v1560_v43, %v1192_v0  ;;  %v1159_v23 = vmul.f32 1.442695, %v1102_v39  ;;  %v8391_v0 = vld [vmem:[#allocation67_spill] sm:$0xff] }
 0x259   : > { %1671 = vst.msk [vmem:[#allocation3 + $0x88] sm:$0xff] %vm7940_vm1, %v1638_v62  ;;  %v1057_v62 = vld [vmem:[#allocation3 + $0x60] sm:$0xff]  ;;  %3787 = vpow2.f32 %v1139_v61  ;;  %v1095_v43 = vsub.f32 %v8391_v0, %v8390_v20  ;;  %v1161_v4 = vmul.f32 1.442695, %v1103_v51  ;;  %v8393_v0 = vld [vmem:[#allocation86_spill] sm:$0xff]  ;;  %v8394_v51 = vld [vmem:[#allocation83_spill] sm:$0xff] }
 0x25a   : > { %1772 = vperm.xlu2 %3494, %v5990_v28   ;;  %1673 = vst.msk [vmem:[#allocation3 + $0x98] sm:$0xff] %vm7940_vm1, %v1640_v14  ;;  %v6011_v28 = vld [vmem:[%s4091_s6 + $0xa8] sm:$0xff]  ;;  %3789 = vpow2.f32 %v1159_v23  ;;  %v1185_v39 = vmul.f32 %v3782_v29, %v1057_v62  ;;  %v6019_v61 = vld [vmem:[%s4091_s6 + $0xa0] sm:$0xff]  ;;  %v1105_v23 = vsub.f32 %v8394_v51, %v8393_v0  ;;  %v6036_v0 = vld [vmem:[%s4091_s6 + $0xb8] sm:$0xff] }
 0x25b   : > { %8389 = vst [vmem:[#allocation49_spill] sm:$0xff] %v6011_v28  ;;  %3791 = vpow2.f32 %v1161_v4  ;;  %v8396_v4 = vld [vmem:[#allocation75_spill] sm:$0xff] }
 0x25c   : > { %v1565_v2 = vpop.xlane.xlu1 %1564  ;;  %8392 = vst [vmem:[#allocation58_spill] sm:$0xff] %v6019_v61 }
 0x25d   : > { %1784 = vperm.xlu1 %3496, %v5994_v38   ;;  %v3784_v38 = vpop.eup %3783  ;;  %v1641_v19 = vadd.f32 %v1565_v2, %v1193_v21  ;;  %v1145_v2 = vmul.f32 1.442695, %v1095_v43  ;;  %v1070_v43 = vld [vmem:[#allocation3 + $0xc8] sm:$0xff]  ;;  %8400 = vst [vmem:[#allocation64_spill] sm:$0xff] %v6036_v0 }
 0x25e   : > { %v1195_v41 = vmul.f32 %v3784_v38, %v1067_v8  ;;  %v3786_v10 = vpop.eup %3785 }
 0x25f   : > { %1674 = vst.msk [vmem:[#allocation3 + $0xa0] sm:$0xff] %vm7940_vm1, %v1641_v19  ;;  %v1196_v29 = vmul.f32 %v3786_v10, %v1068_v54  ;;  %v3788_v62 = vpop.eup %3787  ;;  %v1060_v19 = vld [vmem:[#allocation3 + $0x78] sm:$0xff]  ;;  %3793 = vpow2.f32 %v1145_v2  ;;  %v1165_v54 = vmul.f32 1.442695, %v1105_v23 }
 0x260   : > { %v3790_v8 = vpop.eup %3789  ;;  %v1188_v51 = vmul.f32 %v3788_v62, %v1060_v19  ;;  %v1063_v62 = vld [vmem:[#allocation3 + $0x90] sm:$0xff]  ;;  %v6040_v19 = vld [vmem:[%s4091_s6 + $0xd8] sm:$0xff] }
 0x261   : > { %v1575_v11 = vpop.xlane.xlu0 %1574  ;;  %v1198_v20 = vmul.f32 %v3790_v8, %v1070_v43  ;;  %3795 = vpow2.f32 %v1165_v54  ;;  %8401 = vst [vmem:[#allocation55_spill] sm:$0xff] %v6040_v19  ;;  %v8403_v43 = vld [vmem:[#allocation79_spill] sm:$0xff] }
 0x262   : > { %1781 = vperm.xlu2 %3494, %v6005_v46   ;;  %v1643_v21 = vadd.f32 %v1575_v11, %v1195_v41 }
 0x263   : > { %v1525_v14 = vpop.xlane.xlu2 %1524 }
 0x264   : > { %v1633_v46 = vadd.f32 %v1525_v14, %v1185_v39  ;;  %1676 = vst.msk [vmem:[#allocation3 + $0xb0] sm:$0xff] %vm7940_vm1, %v1643_v21  ;;  %v8397_v39 = vld [vmem:[#allocation73_spill] sm:$0xff]  ;;  %v8398_v14 = vld [vmem:[#allocation84_spill] sm:$0xff] }
 0x265   : > { %1793 = vperm.xlu1 %3496, %v6011_v28   ;;  %v6025_v28 = vld [vmem:[%s4091_s6 + $0xc0] sm:$0xff]  ;;  %v1098_v41 = vsub.f32 %v8397_v39, %v8396_v4 }
 0x266   : > { %1666 = vst.msk [vmem:[#allocation3 + $0x60] sm:$0xff] %vm7940_vm1, %v1633_v46  ;;  %v1580_v38 = vpop.xlane.xlu1 %1579  ;;  %v8399_v46 = vld [vmem:[#allocation82_spill] sm:$0xff] }
 0x267   : > { %8395 = vst [vmem:[#allocation65_spill] sm:$0xff] %v6025_v28  ;;  %v1644_v11 = vadd.f32 %v1580_v38, %v1196_v29  ;;  %v1106_v10 = vsub.f32 %v8399_v46, %v8398_v14  ;;  %v1071_v38 = vld [vmem:[#allocation3 + $0xd0] sm:$0xff]  ;;  %v1151_v2 = vmul.f32 1.442695, %v1098_v41 }
 0x269   : > { %1677 = vst.msk [vmem:[#allocation3 + $0xb8] sm:$0xff] %vm7940_vm1, %v1644_v11  ;;  %v1167_v4 = vmul.f32 1.442695, %v1106_v10  ;;  %3797 = vpow2.f32 %v1151_v2  ;;  %v8402_v11 = vld [vmem:[#allocation81_spill] sm:$0xff] }
 0x26a   : > { %1790 = vperm.xlu2 %3494, %v6019_v61   ;;  %v3792_v61 = vpop.eup %3791  ;;  %v1066_v2 = vld [vmem:[#allocation3 + $0xa8] sm:$0xff] }
 0x26b   : > { %v3794_v23 = vpop.eup %3793  ;;  %v1199_v46 = vmul.f32 %v3792_v61, %v1071_v38  ;;  %3799 = vpow2.f32 %v1167_v4 }
 0x26c   : > { %v1540_v21 = vpop.xlane.xlu2 %1539  ;;  %v1191_v41 = vmul.f32 %v3794_v23, %v1063_v62  ;;  %v3796_v61 = vpop.eup %3795  ;;  %v1074_v23 = vld [vmem:[#allocation3 + $0xe8] sm:$0xff] }
 0x26d   : > { %1802 = vperm.xlu1 %3496, %v6025_v28   ;;  %v1636_v29 = vadd.f32 %v1540_v21, %v1188_v51  ;;  %v1073_v51 = vld [vmem:[#allocation3 + $0xe0] sm:$0xff]  ;;  %v6061_v28 = vld [vmem:[%s4091_s6 + $0xe8] sm:$0xff] }
 0x26e   : > { %v1590_v48 = vpop.xlane.xlu0 %1589  ;;  %8408 = vst [vmem:[#allocation61_spill] sm:$0xff] %v6061_v28 }
 0x26f   : > { %v1646_v39 = vadd.f32 %v1590_v48, %v1198_v20  ;;  %1669 = vst.msk [vmem:[#allocation3 + $0x78] sm:$0xff] %vm7940_vm1, %v1636_v29  ;;  %v1101_v48 = vsub.f32 %v8403_v43, %v8402_v11  ;;  %v6049_v29 = vld [vmem:[%s4091_s6 + $0xd0] sm:$0xff]  ;;  %v3798_v38 = vpop.eup %3797  ;;  %v8407_v43 = vld [vmem:[#allocation85_spill] sm:$0xff] }
 0x270   : > { %8404 = vst [vmem:[#allocation71_spill] sm:$0xff] %v6049_v29 }
 0x271   : > { %1679 = vst.msk [vmem:[#allocation3 + $0xc8] sm:$0xff] %vm7940_vm1, %v1646_v39  ;;  %v1157_v21 = vmul.f32 1.442695, %v1101_v48  ;;  %v6053_v39 = vld [vmem:[%s4091_s6 + $0xf0] sm:$0xff]  ;;  %v3800_v4 = vpop.eup %3799 }
 0x272   : > { %1799 = vperm.xlu2 %3494, %v6036_v0   ;;  %8405 = vst [vmem:[#allocation70_spill] sm:$0xff] %v6053_v39  ;;  %v1069_v0 = vld [vmem:[#allocation3 + $0xc0] sm:$0xff] }
 0x273   : > { %v1595_v8 = vpop.xlane.xlu1 %1594  ;;  %3801 = vpow2.f32 %v1157_v21 }
 0x274   : > { %v1647_v20 = vadd.f32 %v1595_v8, %v1199_v46  ;;  %v1201_v46 = vmul.f32 %v3796_v61, %v1073_v51  ;;  %v8406_v8 = vld [vmem:[#allocation87_spill] sm:$0xff] }
 0x275   : > { %1811 = vperm.xlu1 %3496, %v6040_v19   ;;  %v1555_v10 = vpop.xlane.xlu2 %1554 }
 0x276   : > { %1680 = vst.msk [vmem:[#allocation3 + $0xd0] sm:$0xff] %vm7940_vm1, %v1647_v20  ;;  %v1639_v54 = vadd.f32 %v1555_v10, %v1191_v41  ;;  %v1104_v20 = vsub.f32 %v8407_v43, %v8406_v8  ;;  %v1194_v41 = vmul.f32 %v3798_v38, %v1066_v2  ;;  %v8409_v38 = vld [vmem:[#allocation91_spill] sm:$0xff]  ;;  %v8410_v2 = vld [vmem:[#allocation89_spill] sm:$0xff]  ;;  %v7920_v8 = vmov 0.0  }
 0x278   : > { %1672 = vst.msk [vmem:[#allocation3 + $0x90] sm:$0xff] %vm7940_vm1, %v1639_v54  ;;  %v1202_v54 = vmul.f32 %v3800_v4, %v1074_v23  ;;  %v1163_v51 = vmul.f32 1.442695, %v1104_v20 }
 0x279   : > { %v3802_v21 = vpop.eup %3801 }
 0x27a   : > { %1808 = vperm.xlu2 %3494, %v6049_v29   ;;  %v1605_v62 = vpop.xlane.xlu0 %1604  ;;  %3803 = vpow2.f32 %v1163_v51  ;;  %v1197_v4 = vmul.f32 %v3802_v21, %v1069_v0 }
 0x27b   : > { %v1649_v48 = vadd.f32 %v1605_v62, %v1201_v46  ;;  %v1107_v46 = vsub.f32 %v8410_v2, %v8409_v38 }
 0x27d   : > { %1820 = vperm.xlu1 %3496, %v6053_v39   ;;  %v1570_v10 = vpop.xlane.xlu2 %1569  ;;  %1682 = vst.msk [vmem:[#allocation3 + $0xe0] sm:$0xff] %vm7940_vm1, %v1649_v48  ;;  %v1169_v43 = vmul.f32 1.442695, %v1107_v46  ;;  %v1072_v48 = vld [vmem:[#allocation3 + $0xd8] sm:$0xff]  ;;  %v8411_v39 = vld [vmem:[#allocation25_spill] sm:$0xff] }
 0x27e   : > { %v1642_v19 = vadd.f32 %v1570_v10, %v1194_v41 }
 0x27f   : > { %v1610_v61 = vpop.xlane.xlu1 %1609  ;;  %3805 = vpow2.f32 %v1169_v43 }
 0x280   : > { %v1650_v29 = vadd.f32 %v1610_v61, %v1202_v54  ;;  %1675 = vst.msk [vmem:[#allocation3 + $0xa8] sm:$0xff] %vm7940_vm1, %v1642_v19  ;;  %v3804_v20 = vpop.eup %3803  ;;  %v1075_v61 = vld [vmem:[#allocation3 + $0xf0] sm:$0xff] }
 0x281   : > { %v1200_v19 = vmul.f32 %v3804_v20, %v1072_v48  ;;  %v8414_v20 = vunpack.c.h.bf16 %v8411_v39 }
 0x282   : > { %1683 = vst.msk [vmem:[#allocation3 + $0xe8] sm:$0xff] %vm7940_vm1, %v1650_v29  ;;  %1817 = vperm.xlu2 %3494, %v6061_v28   ;;  %v1718_v29 = vlaneseq  ;;  %v8412_v28 = vunpack.c.l.bf16 %v8411_v39 }
 0x284   : > { %v1719_v51 = vand.u32 127, %v1718_v29 }
 0x285   : > { %v1585_v23 = vpop.xlane.xlu2 %1584  ;;  %v3806_v54 = vpop.eup %3805 }
 0x286   : > { %v1645_v62 = vadd.f32 %v1585_v23, %v1197_v4  ;;  %v1203_v2 = vmul.f32 %v3806_v54, %v1075_v61  ;;  %v1720_v4 = vadd.s32 128, %v1719_v51  ;;  %v1721_v23 = vadd.s32 256, %v1719_v51 }
 0x287   : > { %v1722_v61 = vadd.s32 384, %v1719_v51 }
 0x288   : > { %1678 = vst.msk [vmem:[#allocation3 + $0xc0] sm:$0xff] %vm7940_vm1, %v1645_v62  ;;  %v1724_v62 = vstv %s3283_s13 }
 0x289   : > { %v6097_v14 = vadd.s32 %v1724_v62, %v1722_v61 }
 0x28d   : > { %v1600_v41 = vpop.xlane.xlu2 %1599 }
 0x28e   : > { %v1648_v10 = vadd.f32 %v1600_v41, %v1200_v19  ;;  %v8416_v19 = vld [vmem:[#allocation27_spill] sm:$0xff] }
 0x28f   : > { %v8417_v41 = vunpack.c.l.bf16 %v8416_v19 }
 0x290   : > { %1681 = vst.msk [vmem:[#allocation3 + $0xd8] sm:$0xff] %vm7940_vm1, %v1648_v10 }
 0x295   : > { %v1615_v0 = vpop.xlane.xlu2 %1614 }
 0x296   : > { %v1651_v21 = vadd.f32 %v1615_v0, %v1203_v2  ;;  %v6086_v2 = vadd.s32 %v1724_v62, %v1719_v51  ;;  %v6088_v0 = vadd.s32 %v1724_v62, %v1720_v4 }
 0x297   : > { %v915_v46 = vpop.permute.xlu1 %914 }
 0x298   : > { %v6073_v43 = vsub.f32 %v8412_v28, %v915_v46  ;;  %v6077_v48 = vsub.f32 %v8414_v20, %v915_v46  ;;  %1684 = vst.msk [vmem:[#allocation3 + $0xf0] sm:$0xff] %vm7940_vm1, %v1651_v21  ;;  %v6082_v10 = vsub.f32 %v8417_v41, %v915_v46  ;;  %v8419_v28 = vunpack.c.h.bf16 %v8416_v19  ;;  %v8422_v19 = vld [vmem:[#allocation113_spill] sm:$0xff] }
 0x299   : > { %v6094_v20 = vadd.s32 %v1724_v62, %v1721_v23 }
 0x29a   : > { %8413 = vst [vmem:[#allocation77_spill] sm:$0xff] %v6073_v43  ;;  %v1453_v29 = vmul.f32 1.442695, %v6073_v43  ;;  %v1455_v54 = vmul.f32 1.442695, %v6077_v48  ;;  %v6092_v39 = vsub.f32 %v8419_v28, %v915_v46  ;;  %v8421_v46 = vld [vmem:[#allocation112_spill] sm:$0xff] }
 0x29b   : > { %8415 = vst [vmem:[#allocation76_spill] sm:$0xff] %v6077_v48  ;;  %v1457_v21 = vmul.f32 1.442695, %v6082_v10  ;;  %v8424_v28 = vld [vmem:[#allocation93_spill] sm:$0xff] }
 0x29c   : > { %8418 = vst [vmem:[#allocation67_spill] sm:$0xff] %v6082_v10  ;;  %3807 = vpow2.f32 %v1453_v29  ;;  %v1459_v51 = vmul.f32 1.442695, %v6092_v39 }
 0x29d   : > { %8420 = vst [vmem:[#allocation83_spill] sm:$0xff] %v6092_v39  ;;  %3809 = vpow2.f32 %v1455_v54  ;;  %v1734_v41 = vpop.permute.xlu2 %1733  ;;  %v8423_v54 = vld [vmem:[#allocation92_spill] sm:$0xff] }
 0x29e   : > { %vm1829_vm2 = vcmp.eq.s32.totalorder %v6086_v2, %v1734_v41  ;;  %vm1830_vm3 = vcmp.eq.s32.totalorder %v6088_v0, %v1734_v41  ;;  %vm1831_vm4 = vcmp.eq.s32.totalorder %v6094_v20, %v1734_v41  ;;  %3811 = vpow2.f32 %v1457_v21 }
 0x29f   : > { %v6102_v4 = vpop.permute.xlu1 %1730  ;;  %v2405_v23 = vsel %vm1829_vm2, %v8421_v46, 0.0  ;;  %v2406_v29 = vsel %vm1830_vm3, %v8422_v19, 0.0  ;;  %vm1832_vm7 = vcmp.eq.s32.totalorder %v6097_v14, %v1734_v41  ;;  %v3288_v21 = vsel %vm1829_vm2, 1.0, %v7920_v8 }
 0x2a0   : > { %vm1825_vm5 = vcmp.eq.s32.totalorder %v6086_v2, %v6102_v4  ;;  %vm1826_vm6 = vcmp.eq.s32.totalorder %v6088_v0, %v6102_v4  ;;  %v2534_v62 = vadd.f32 %v2406_v29, %v2405_v23  ;;  %v3289_v23 = vsel %vm1830_vm3, 1.0, %v7920_v8 }
 0x2a1   : > { %v2401_v61 = vsel %vm1825_vm5, %v8423_v54, 0.0  ;;  %v2402_v46 = vsel %vm1826_vm6, %v8424_v28, 0.0  ;;  %3813 = vpow2.f32 %v1459_v51  ;;  %v3290_v54 = vsel %vm1831_vm4, 1.0, %v7920_v8 }
 0x2a2   : > { %v3808_v38 = vpop.eup %3807  ;;  %v6123_v19 = vadd.f32 %v2402_v46, %v2401_v61  ;;  %v2214_v28 = vadd.f32 %v3289_v23, %v3288_v21  ;;  %vm1827_vm8 = vcmp.eq.s32.totalorder %v6094_v20, %v6102_v4  ;;  %vm1828_vm9 = vcmp.eq.s32.totalorder %v6097_v14, %v6102_v4  ;;  %v8425_v23 = vld [vmem:[#allocation121_spill] sm:$0xff] }
 0x2a3   : > { %v3810_v29 = vpop.eup %3809  ;;  %v3284_v61 = vsel %vm1825_vm5, 1.0, %v7920_v8  ;;  %v3285_v51 = vsel %vm1826_vm6, 1.0, %v7920_v8  ;;  %v3291_v46 = vsel %vm1832_vm7, 1.0, %v7920_v8  ;;  %v2407_v11 = vsel %vm1831_vm4, %v8425_v23, 0.0  ;;  %v8426_v23 = vld [vmem:[#allocation108_spill] sm:$0xff] }
 0x2a4   : > { %v2215_v21 = vadd.f32 %v3290_v54, %v2214_v28  ;;  %v2209_v37 = vadd.f32 %v3285_v51, %v3284_v61  ;;  %v3286_v10 = vsel %vm1827_vm8, 1.0, %v7920_v8  ;;  %v3287_v48 = vsel %vm1828_vm9, 1.0, %v7920_v8  ;;  %v3812_v54 = vpop.eup %3811 }
 0x2a5   : > { %v6153_v39 = vpop.permute.xlu2 %1745  ;;  %v1616_v43 = vadd.f32 %v3810_v29, %v3808_v38  ;;  %v2535_v12 = vadd.f32 %v2534_v62, %v2407_v11  ;;  %v8429_v29 = vld [vmem:[#allocation104_spill] sm:$0xff] }
 0x2a6   : > { %vm7939_vm10 = vcmp.eq.s32.totalorder %v6086_v2, %v6153_v39  ;;  %vm7933_vm11 = vcmp.eq.s32.totalorder %v6088_v0, %v6153_v39  ;;  %v2216_v28 = vadd.f32 %v3291_v46, %v2215_v21  ;;  %v2210_v51 = vadd.f32 %v3286_v10, %v2209_v37  ;;  %v8428_v37 = vld [vmem:[#allocation103_spill] sm:$0xff] }
 0x2a7   : > { %v6167_v61 = vpop.permute.xlu1 %1739  ;;  %v2421_v3 = vsel %vm7939_vm10, %v8426_v23, 0.0  ;;  %v2422_v11 = vsel %vm7933_vm11, %v8427_v49, 0.0  ;;  %v3814_v38 = vpop.eup %3813  ;;  %v1617_v8 = vadd.f32 %v3812_v54, %v1616_v43  ;;  %v8430_v49 = vmov 0.0  }
 0x2a8   : > { %vm1837_vm12 = vcmp.eq.s32.totalorder %v6086_v2, %v6167_v61  ;;  %vm1838_vm13 = vcmp.eq.s32.totalorder %v6088_v0, %v6167_v61  ;;  %v6181_v62 = vadd.f32 %v2422_v11, %v2421_v3  ;;  %2217 = vadd.xlane.f32.xlu1 %v2216_v28  ;;  %v2211_v21 = vadd.f32 %v3287_v48, %v2210_v51 }
 0x2a9   : > { %v2413_v10 = vsel %vm1837_vm12, %v8428_v37, 0.0  ;;  %v2414_v46 = vsel %vm1838_vm13, %v8429_v29, 0.0  ;;  %vm1839_vm14 = vcmp.eq.s32.totalorder %v6094_v20, %v6167_v61  ;;  %v3296_v15 = vsel %vm1837_vm12, 1.0, %v8430_v49  ;;  %v8435_v37 = vld [vmem:[#allocation110_spill] sm:$0xff]  ;;  %v8436_v29 = vld [vmem:[#allocation111_spill] sm:$0xff] }
 0x2aa   : > { %v6185_v23 = vadd.f32 %v2414_v46, %v2413_v10  ;;  %v3297_v30 = vsel %vm1838_vm13, 1.0, %v8430_v49  ;;  %v2408_v3 = vsel %vm1832_vm7, %v8431_v35, 0.0  ;;  %v1618_v28 = vadd.f32 %v3814_v38, %v1617_v8  ;;  %v8434_v8 = vld [vmem:[#allocation119_spill] sm:$0xff] }
 0x2ab   : > { %2212 = vadd.xlane.f32.xlu2 %v2211_v21  ;;  %vm1840_vm15 = vcmp.eq.s32.totalorder %v6097_v14, %v6167_v61  ;;  %v2224_v48 = vadd.f32 %v3297_v30, %v3296_v15  ;;  %v3298_v43 = vsel %vm1839_vm14, 1.0, %v8430_v49  ;;  %v6200_v54 = vadd.f32 %v2535_v12, %v2408_v3  ;;  %v8433_v30 = vld [vmem:[#allocation118_spill] sm:$0xff] }
 0x2ac   : > { %1619 = vadd.xlane.f32.xlu0 %v1618_v28  ;;  %v3299_v15 = vsel %vm1840_vm15, 1.0, %v8430_v49 }
 0x2ad   : > { %8432 = vst [vmem:[#allocation73_spill] sm:$0xff] %v6200_v54  ;;  %v6202_v51 = vpop.permute.xlu2 %1754  ;;  %v2225_v11 = vadd.f32 %v3298_v43, %v2224_v48 }
 0x2ae   : > { %vm7932_vm0 = vcmp.eq.s32.totalorder %v6086_v2, %v6202_v51  ;;  %vm7926_vm2 = vcmp.eq.s32.totalorder %v6088_v0, %v6202_v51 }
 0x2af   : > { %v6208_v35 = vpop.permute.xlu1 %1748  ;;  %v2433_v12 = vsel %vm7932_vm0, %v8433_v30, 0.0  ;;  %v2434_v41 = vsel %vm7926_vm2, %v8434_v8, 0.0  ;;  %v2226_v21 = vadd.f32 %v3299_v15, %v2225_v11 }
 0x2b0   : > { %vm1849_vm3 = vcmp.eq.s32.totalorder %v6086_v2, %v6208_v35  ;;  %vm1850_vm4 = vcmp.eq.s32.totalorder %v6088_v0, %v6208_v35  ;;  %v6226_v38 = vadd.f32 %v2434_v41, %v2433_v12  ;;  %vm1851_vm5 = vcmp.eq.s32.totalorder %v6094_v20, %v6208_v35  ;;  %v8437_v41 = vld [vmem:[#allocation127_spill] sm:$0xff] }
 0x2b1   : > { %v2425_v10 = vsel %vm1849_vm3, %v8435_v37, 0.0  ;;  %v2426_v46 = vsel %vm1850_vm4, %v8436_v29, 0.0  ;;  %v3308_v28 = vsel %vm1849_vm3, 1.0, %v8430_v49  ;;  %v3309_v48 = vsel %vm1850_vm4, 1.0, %v8430_v49 }
 0x2b2   : > { %v6230_v3 = vadd.f32 %v2426_v46, %v2425_v10  ;;  %vm1852_vm6 = vcmp.eq.s32.totalorder %v6097_v14, %v6208_v35  ;;  %v2239_v43 = vadd.f32 %v3309_v48, %v3308_v28  ;;  %v3310_v30 = vsel %vm1851_vm5, 1.0, %v8430_v49  ;;  %v8438_v10 = vld [vmem:[#allocation128_spill] sm:$0xff] }
 0x2b3   : > { %2227 = vadd.xlane.f32.xlu2 %v2226_v21  ;;  %v3311_v8 = vsel %vm1852_vm6, 1.0, %v8430_v49  ;;  %v8439_v21 = vld [vmem:[#allocation122_spill] sm:$0xff]  ;;  %v8440_v48 = vld [vmem:[#allocation124_spill] sm:$0xff] }
 0x2b4   : > { %v2240_v15 = vadd.f32 %v3310_v30, %v2239_v43 }
 0x2b5   : > { %v6242_v11 = vpop.permute.xlu2 %1763 }
 0x2b6   : > { %vm7925_vm7 = vcmp.eq.s32.totalorder %v6086_v2, %v6242_v11  ;;  %vm7924_vm12 = vcmp.eq.s32.totalorder %v6088_v0, %v6242_v11  ;;  %v2241_v30 = vadd.f32 %v3311_v8, %v2240_v15 }
 0x2b7   : > { %v6248_v12 = vpop.permute.xlu1 %1757  ;;  %v2445_v37 = vsel %vm7925_vm7, %v8437_v41, 0.0  ;;  %v2446_v29 = vsel %vm7924_vm12, %v8438_v10, 0.0 }
 0x2b8   : > { %vm1861_vm13 = vcmp.eq.s32.totalorder %v6086_v2, %v6248_v12  ;;  %vm1862_vm3 = vcmp.eq.s32.totalorder %v6088_v0, %v6248_v12  ;;  %v6266_v46 = vadd.f32 %v2446_v29, %v2445_v37  ;;  %vm1863_vm4 = vcmp.eq.s32.totalorder %v6094_v20, %v6248_v12 }
 0x2b9   : > { %v2437_v28 = vsel %vm1861_vm13, %v8439_v21, 0.0  ;;  %v2438_v43 = vsel %vm1862_vm3, %v8440_v48, 0.0  ;;  %v3320_v10 = vsel %vm1861_vm13, 1.0, %v8430_v49  ;;  %v3321_v54 = vsel %vm1862_vm3, 1.0, %v8430_v49  ;;  %v6289_v21 = vld [vmem:[%s4091_s6 + $0x10] sm:$0xff] }
 0x2ba   : > { %v6270_v41 = vadd.f32 %v2438_v43, %v2437_v28  ;;  %vm1864_vm12 = vcmp.eq.s32.totalorder %v6097_v14, %v6248_v12  ;;  %v2254_v37 = vadd.f32 %v3321_v54, %v3320_v10  ;;  %v3322_v29 = vsel %vm1863_vm4, 1.0, %v8430_v49  ;;  %8441 = vst [vmem:[#allocation82_spill] sm:$0xff] %v6289_v21  ;;  %v8442_v10 = vld [vmem:[#allocation129_spill] sm:$0xff] }
 0x2bb   : > { %2242 = vadd.xlane.f32.xlu2 %v2241_v30  ;;  %v3323_v54 = vsel %vm1864_vm12, 1.0, %v8430_v49 }
 0x2bc   : > { %v2255_v8 = vadd.f32 %v3322_v29, %v2254_v37  ;;  %v8443_v29 = vld [vmem:[#allocation130_spill] sm:$0xff] }
 0x2bd   : > { %v6282_v15 = vpop.permute.xlu2 %1772 }
 0x2be   : > { %vm7931_vm7 = vcmp.eq.s32.totalorder %v6086_v2, %v6282_v15  ;;  %vm7929_vm13 = vcmp.eq.s32.totalorder %v6088_v0, %v6282_v15  ;;  %v2256_v58 = vadd.f32 %v3323_v54, %v2255_v8 }
 0x2bf   : > { %v6291_v28 = vpop.permute.xlu1 %1766  ;;  %v2457_v48 = vsel %vm7931_vm7, %v5389_v40, 0.0  ;;  %v2458_v43 = vsel %vm7929_vm13, %v5396_v7, 0.0 }
 0x2c0   : > { %vm1873_vm3 = vcmp.eq.s32.totalorder %v6086_v2, %v6291_v28  ;;  %vm1874_vm2 = vcmp.eq.s32.totalorder %v6088_v0, %v6291_v28  ;;  %v6309_v30 = vadd.f32 %v2458_v43, %v2457_v48  ;;  %1736 = vperm.xlu0 %3495, %v6289_v21   ;;  %vm1875_vm13 = vcmp.eq.s32.totalorder %v6094_v20, %v6291_v28  ;;  %v6333_v43 = vld [vmem:[%s4091_s6 + $0x20] sm:$0xff] }
 0x2c1   : > { %v2449_v37 = vsel %vm1873_vm3, %v8442_v10, 0.0  ;;  %v2450_v45 = vsel %vm1874_vm2, %v8443_v29, 0.0  ;;  %v3332_v7 = vsel %vm1873_vm3, 1.0, %v8430_v49  ;;  %v3333_v36 = vsel %vm1874_vm2, 1.0, %v8430_v49  ;;  %8444 = vst [vmem:[#allocation79_spill] sm:$0xff] %v6333_v43 }
 0x2c2   : > { %v6314_v40 = vadd.f32 %v2450_v45, %v2449_v37  ;;  %vm1876_vm7 = vcmp.eq.s32.totalorder %v6097_v14, %v6291_v28  ;;  %v2269_v48 = vadd.f32 %v3333_v36, %v3332_v7  ;;  %v3334_v8 = vsel %vm1875_vm13, 1.0, %v8430_v49 }
 0x2c3   : > { %2257 = vadd.xlane.f32.xlu2 %v2256_v58  ;;  %v3335_v36 = vsel %vm1876_vm7, 1.0, %v8430_v49 }
 0x2c4   : > { %v2270_v45 = vadd.f32 %v3334_v8, %v2269_v48 }
 0x2c5   : > { %v6326_v54 = vpop.permute.xlu2 %1781 }
 0x2c6   : > { %vm7938_vm0 = vcmp.eq.s32.totalorder %v6086_v2, %v6326_v54  ;;  %vm7934_vm3 = vcmp.eq.s32.totalorder %v6088_v0, %v6326_v54  ;;  %v2271_v8 = vadd.f32 %v3335_v36, %v2270_v45 }
 0x2c7   : > { %v6335_v58 = vpop.permute.xlu1 %1775  ;;  %v2469_v10 = vsel %vm7938_vm0, %v5519_v44, 0.0  ;;  %v2470_v37 = vsel %vm7934_vm3, %v5526_v32, 0.0 }
 0x2c8   : > { %vm1885_vm2 = vcmp.eq.s32.totalorder %v6086_v2, %v6335_v58  ;;  %vm1886_vm11 = vcmp.eq.s32.totalorder %v6088_v0, %v6335_v58  ;;  %v6353_v29 = vadd.f32 %v2470_v37, %v2469_v10  ;;  %1742 = vperm.xlu0 %3495, %v6333_v43   ;;  %vm1887_vm3 = vcmp.eq.s32.totalorder %v6094_v20, %v6335_v58 }
 0x2c9   : > { %v2461_v7 = vsel %vm1885_vm2, %v5418_v42, 0.0  ;;  %v2462_v48 = vsel %vm1886_vm11, %v5427_v57, 0.0  ;;  %v3344_v32 = vsel %vm1885_vm2, 1.0, %v8430_v49  ;;  %v3345_v21 = vsel %vm1886_vm11, 1.0, %v8430_v49  ;;  %v6375_v57 = vld [vmem:[%s4091_s6 + $0x38] sm:$0xff] }
 0x2ca   : > { %v6358_v44 = vadd.f32 %v2462_v48, %v2461_v7  ;;  %v2284_v16 = vadd.f32 %v3345_v21, %v3344_v32  ;;  %v3346_v42 = vsel %vm1887_vm3, 1.0, %v8430_v49  ;;  %8445 = vst [vmem:[#allocation85_spill] sm:$0xff] %v6375_v57  ;;  %vm7944_vm11 = vcmp.eq.s32.totalorder %v6097_v14, %v6335_v58 }
 0x2cb   : > { %2272 = vadd.xlane.f32.xlu2 %v2271_v8 }
 0x2cc   : > { %v2285_v21 = vadd.f32 %v3346_v42, %v2284_v16 }
 0x2cd   : > { %v6364_v10 = vpop.permute.xlu2 %1790 }
 0x2ce   : > { %vm7942_vm0 = vcmp.eq.s32.totalorder %v6086_v2, %v6364_v10  ;;  %vm7941_vm2 = vcmp.eq.s32.totalorder %v6088_v0, %v6364_v10 }
 0x2cf   : > { %v6377_v45 = vpop.permute.xlu1 %1784  ;;  %v2481_v36 = vsel %vm7942_vm0, %v5594_v47, 0.0  ;;  %v2482_v37 = vsel %vm7941_vm2, %v5598_v34, 0.0  ;;  %v3347_v34 = vsel %vm7944_vm11, 1.0, %v8430_v49 }
 0x2d0   : > { %vm1897_vm10 = vcmp.eq.s32.totalorder %v6086_v2, %v6377_v45  ;;  %vm1898_vm1 = vcmp.eq.s32.totalorder %v6088_v0, %v6377_v45  ;;  %v6393_v7 = vadd.f32 %v2482_v37, %v2481_v36  ;;  %1751 = vperm.xlu0 %3495, %v6375_v57   ;;  %v2286_v42 = vadd.f32 %v3347_v34, %v2285_v21  ;;  %v8449_v57 = vld [vmem:[#allocation95_spill] sm:$0xff] }
 0x2d1   : > { %v3356_v16 = vsel %vm1897_vm10, 1.0, %v8430_v49  ;;  %v3357_v47 = vsel %vm1898_vm1, 1.0, %v8430_v49  ;;  %v2473_v48 = vsel %vm1897_vm10, %v5564_v63, 0.0  ;;  %v2474_v8 = vsel %vm1898_vm1, %v5578_v5, 0.0  ;;  %v6419_v63 = vld [vmem:[%s4091_s6 + $0x50] sm:$0xff] }
 0x2d2   : > { %v6404_v32 = vadd.f32 %v2474_v8, %v2473_v48  ;;  %vm7943_vm2 = vcmp.eq.s32.totalorder %v6094_v20, %v6377_v45  ;;  %v2299_v36 = vadd.f32 %v3357_v47, %v3356_v16  ;;  %8446 = vst [vmem:[#allocation89_spill] sm:$0xff] %v6419_v63  ;;  %vm1900_vm0 = vcmp.eq.s32.totalorder %v6097_v14, %v6377_v45 }
 0x2d3   : > { %2287 = vadd.xlane.f32.xlu2 %v2286_v42  ;;  %v3358_v5 = vsel %vm7943_vm2, 1.0, %v8430_v49  ;;  %v6462_v43 = vsel %vm1828_vm9, %v8449_v57, 0.0  ;;  %v6487_v57 = vld [vmem:[%s4091_s6 + $0x68] sm:$0xff] }
 0x2d4   : > { %v2300_v47 = vadd.f32 %v3358_v5, %v2299_v36  ;;  %8452 = vst [vmem:[#allocation27_spill] sm:$0xff] %v6487_v57 }
 0x2d5   : > { %v6408_v37 = vpop.permute.xlu2 %1799 }
 0x2d6   : > { %vm7946_vm10 = vcmp.eq.s32.totalorder %v6086_v2, %v6408_v37  ;;  %vm7945_vm1 = vcmp.eq.s32.totalorder %v6088_v0, %v6408_v37 }
 0x2d7   : > { %v6421_v21 = vpop.permute.xlu1 %1793  ;;  %v2493_v16 = vsel %vm7946_vm10, %v5658_v60, 0.0  ;;  %v2494_v48 = vsel %vm7945_vm1, %v5667_v9, 0.0  ;;  %v3359_v9 = vsel %vm1900_vm0, 1.0, %v8430_v49  ;;  %vm1847_vm10 = vcmp.eq.s32.totalorder %v6094_v20, %v6153_v39 }
 0x2d8   : > { %vm1909_vm2 = vcmp.eq.s32.totalorder %v6086_v2, %v6421_v21  ;;  %v6435_v8 = vadd.f32 %v2494_v48, %v2493_v16  ;;  %1760 = vperm.xlu0 %3495, %v6419_v63   ;;  %vm1910_vm11 = vcmp.eq.s32.totalorder %v6088_v0, %v6421_v21  ;;  %vm1911_vm1 = vcmp.eq.s32.totalorder %v6094_v20, %v6421_v21  ;;  %v8448_v63 = vld [vmem:[#allocation94_spill] sm:$0xff] }
 0x2d9   : > { %v3368_v60 = vsel %vm1909_vm2, 1.0, %v8430_v49  ;;  %v3369_v34 = vsel %vm1910_vm11, 1.0, %v8430_v49  ;;  %v2485_v42 = vsel %vm1909_vm2, %v5709_v53, 0.0  ;;  %v2486_v5 = vsel %vm1910_vm11, %v5746_v1, 0.0 }
 0x2da   : > { %v2314_v36 = vadd.f32 %v3369_v34, %v3368_v60  ;;  %v2301_v16 = vadd.f32 %v3359_v9, %v2300_v47  ;;  %v6450_v48 = vadd.f32 %v2486_v5, %v2485_v42  ;;  %v2403_v53 = vsel %vm1827_vm8, %v8448_v63, 0.0  ;;  %v8450_v60 = vld [vmem:[#allocation106_spill] sm:$0xff]  ;;  %v8451_v47 = vld [vmem:[#allocation107_spill] sm:$0xff] }
 0x2db   : > { %v6468_v1 = vsel %vm1839_vm14, %v8450_v60, 0.0  ;;  %v6474_v34 = vsel %vm1840_vm15, %v8451_v47, 0.0  ;;  %v3370_v4 = vsel %vm1911_vm1, 1.0, %v8430_v49  ;;  %vm1848_vm14 = vcmp.eq.s32.totalorder %v6097_v14, %v6153_v39  ;;  %v8453_v5 = vld [vmem:[#allocation115_spill] sm:$0xff] }
 0x2dc   : > { %8447 = vst [vmem:[#allocation25_spill] sm:$0xff] %v6450_v48  ;;  %2302 = vadd.xlane.f32.xlu2 %v2301_v16  ;;  %vm1912_vm15 = vcmp.eq.s32.totalorder %v6097_v14, %v6421_v21  ;;  %v2315_v9 = vadd.f32 %v3370_v4, %v2314_v36  ;;  %v6503_v16 = vsel %vm1847_vm10, %v8453_v5, 0.0  ;;  %v6509_v60 = vsel %vm1851_vm5, %v5473_v18, 0.0  ;;  %v8488_v21 = vld [vmem:[#allocation20_spill] sm:$0xff] }
 0x2dd   : > { %v6476_v42 = vpop.permute.xlu2 %1808  ;;  %vm7965_vm11 = vcmp.eq.s32.totalorder %v6094_v20, %v6202_v51  ;;  %v3371_v35 = vsel %vm1912_vm15, 1.0, %v8430_v49 }
 0x2de   : > { %vm7956_vm8 = vcmp.eq.s32.totalorder %v6086_v2, %v6476_v42  ;;  %vm7953_vm9 = vcmp.eq.s32.totalorder %v6088_v0, %v6476_v42  ;;  %v2316_v5 = vadd.f32 %v3371_v35, %v2315_v9  ;;  %v6564_v9 = vsel %vm1864_vm12, %v5546_v22, 0.0  ;;  %v6584_v22 = vld [vmem:[%s4091_s6 + $0x80] sm:$0xff] }
 0x2df   : > { %v6489_v63 = vpop.permute.xlu1 %1802  ;;  %v2505_v61 = vsel %vm7956_vm8, %v5736_v25, 0.0  ;;  %v6515_v25 = vsel %vm1852_vm6, %v5481_v50, 0.0  ;;  %v2506_v36 = vsel %vm7953_vm9, %v5740_v59, 0.0  ;;  %vm7964_vm6 = vcmp.eq.s32.totalorder %v6097_v14, %v6202_v51  ;;  %8458 = vst [vmem:[#allocation113_spill] sm:$0xff] %v6584_v22 }
 0x2e0   : > { %vm1921_vm2 = vcmp.eq.s32.totalorder %v6086_v2, %v6489_v63  ;;  %v6523_v47 = vadd.f32 %v2506_v36, %v2505_v61  ;;  %1769 = vperm.xlu0 %3495, %v6487_v57   ;;  %vm1922_vm5 = vcmp.eq.s32.totalorder %v6088_v0, %v6489_v63  ;;  %vm1923_vm9 = vcmp.eq.s32.totalorder %v6094_v20, %v6489_v63  ;;  %v8455_v57 = vld [vmem:[#allocation120_spill] sm:$0xff] }
 0x2e1   : > { %v3380_v18 = vsel %vm1921_vm2, 1.0, %v8430_v49  ;;  %v3381_v50 = vsel %vm1922_vm5, 1.0, %v8430_v49  ;;  %v2497_v59 = vsel %vm1921_vm2, %v5780_v6, 0.0  ;;  %v2498_v61 = vsel %vm1922_vm5, %v5816_v56, 0.0 }
 0x2e2   : > { %8454 = vst [vmem:[#allocation112_spill] sm:$0xff] %v6523_v47  ;;  %v2329_v4 = vadd.f32 %v3381_v50, %v3380_v18  ;;  %v6542_v36 = vadd.f32 %v2498_v61, %v2497_v59  ;;  %v6548_v6 = vsel %vm1848_vm14, %v8455_v57, 0.0  ;;  %v8456_v47 = vld [vmem:[#allocation135_spill] sm:$0xff]  ;;  %vm7958_vm2 = vcmp.eq.s32.totalorder %v6094_v20, %v6242_v11  ;;  %v8457_v18 = vld [vmem:[#allocation137_spill] sm:$0xff] }
 0x2e3   : > { %v2435_v48 = vsel %vm7965_vm11, %v8456_v47, 0.0  ;;  %v2439_v56 = vsel %vm1863_vm4, %v5541_v31, 0.0  ;;  %v6572_v47 = vsel %vm7964_vm6, %v8457_v18, 0.0  ;;  %v2530_v50 = vadd.f32 %v6123_v19, %v2403_v53  ;;  %v8459_v59 = vld [vmem:[#allocation147_spill] sm:$0xff] }
 0x2e4   : > { %2317 = vadd.xlane.f32.xlu2 %v2316_v5  ;;  %v3382_v31 = vsel %vm1923_vm9, 1.0, %v8430_v49  ;;  %vm7963_vm12 = vcmp.eq.s32.totalorder %v6097_v14, %v6242_v11  ;;  %vm1924_vm8 = vcmp.eq.s32.totalorder %v6097_v14, %v6489_v63  ;;  %v2447_v35 = vsel %vm7958_vm2, %v8459_v59, 0.0  ;;  %v8460_v59 = vld [vmem:[#allocation149_spill] sm:$0xff] }
 0x2e5   : > { %v6566_v57 = vpop.permute.xlu2 %1817  ;;  %v2330_v53 = vadd.f32 %v3382_v31, %v2329_v4  ;;  %v2451_v61 = vsel %vm1875_vm13, %v5681_v33, 0.0  ;;  %v6608_v5 = vsel %vm1876_vm7, %v5686_v24, 0.0  ;;  %vm7962_vm7 = vcmp.eq.s32.totalorder %v6094_v20, %v6282_v15 }
 0x2e6   : > { %vm7957_vm4 = vcmp.eq.s32.totalorder %v6086_v2, %v6566_v57  ;;  %vm7959_vm5 = vcmp.eq.s32.totalorder %v6088_v0, %v6566_v57  ;;  %v3383_v28 = vsel %vm1924_vm8, 1.0, %v8430_v49  ;;  %vm7968_vm11 = vcmp.eq.s32.totalorder %v6097_v14, %v6326_v54 }
 0x2e7   : > { %v6586_v12 = vpop.permute.xlu1 %1811  ;;  %v2517_v19 = vsel %vm7957_vm4, %v5811_v17, 0.0  ;;  %v2518_v17 = vsel %vm7959_vm5, %v5821_v52, 0.0 }
 0x2e8   : > { %vm1933_vm4 = vcmp.eq.s32.totalorder %v6086_v2, %v6586_v12  ;;  %v6616_v4 = vadd.f32 %v2518_v17, %v2517_v19  ;;  %1778 = vperm.xlu0 %3495, %v6584_v22   ;;  %vm1934_vm13 = vcmp.eq.s32.totalorder %v6088_v0, %v6586_v12  ;;  %vm1935_vm2 = vcmp.eq.s32.totalorder %v6094_v20, %v6586_v12 }
 0x2e9   : > { %v3392_v33 = vsel %vm1933_vm4, 1.0, %v8430_v49  ;;  %v3393_v24 = vsel %vm1934_vm13, 1.0, %v8430_v49  ;;  %v2509_v52 = vsel %vm1933_vm4, %v5853_v13, 0.0  ;;  %v2510_v31 = vsel %vm1934_vm13, %v5859_v26, 0.0 }
 0x2ea   : > { %v2344_v18 = vadd.f32 %v3393_v24, %v3392_v33  ;;  %v2331_v19 = vadd.f32 %v3383_v28, %v2330_v53  ;;  %v2448_v17 = vsel %vm7963_vm12, %v8460_v59, 0.0  ;;  %vm1936_vm5 = vcmp.eq.s32.totalorder %v6097_v14, %v6586_v12  ;;  %v8461_v53 = vld [vmem:[#allocation139_spill] sm:$0xff] }
 0x2eb   : > { %v3394_v13 = vsel %vm1935_vm2, 1.0, %v8430_v49  ;;  %v6643_v22 = vadd.f32 %v2510_v31, %v2509_v52  ;;  %vm1884_vm4 = vcmp.eq.s32.totalorder %v6097_v14, %v6282_v15  ;;  %v2459_v33 = vsel %vm7962_vm7, %v8461_v53, 0.0  ;;  %v6657_v59 = vld [vmem:[%s4091_s6 + $0x98] sm:$0xff] }
 0x2ec   : > { %2332 = vadd.xlane.f32.xlu2 %v2331_v19  ;;  %v2345_v26 = vadd.f32 %v3394_v13, %v2344_v18  ;;  %v6652_v24 = vadd.f32 %v2530_v50, %v6462_v43  ;;  %v2545_v28 = vadd.f32 %v6185_v23, %v6468_v1  ;;  %v2560_v31 = vadd.f32 %v6230_v3, %v6509_v60  ;;  %v8462_v1 = vld [vmem:[#allocation140_spill] sm:$0xff] }
 0x2ed   : > { %v2555_v18 = vadd.f32 %v6181_v62, %v6503_v16  ;;  %v2575_v19 = vadd.f32 %v6270_v41, %v2439_v56  ;;  %v2570_v13 = vadd.f32 %v6226_v38, %v2435_v48  ;;  %v3395_v23 = vsel %vm1936_vm5, 1.0, %v8430_v49  ;;  %v8463_v56 = vld [vmem:[#allocation151_spill] sm:$0xff] }
 0x2ee   : > { %vm7966_vm12 = vcmp.eq.s32.totalorder %v6094_v20, %v6326_v54  ;;  %v2346_v48 = vadd.f32 %v3395_v23, %v2345_v26  ;;  %v2460_v16 = vsel %vm1884_vm4, %v8462_v1, 0.0  ;;  %v6697_v50 = vadd.f32 %v2545_v28, %v6474_v34 }
 0x2ef   : > { %v6659_v52 = vpop.permute.xlu1 %1820  ;;  %v6704_v26 = vadd.f32 %v2560_v31, %v6515_v25  ;;  %v6707_v53 = vadd.f32 %v2555_v18, %v6548_v6  ;;  %v6710_v23 = vadd.f32 %v2575_v19, %v6564_v9  ;;  %v2590_v34 = vadd.f32 %v6314_v40, %v2451_v61  ;;  %v6724_v9 = vld [vmem:[%s4091_s6 + $0xb0] sm:$0xff] }
 0x2f0   : > { %vm1945_vm13 = vcmp.eq.s32.totalorder %v6086_v2, %v6659_v52  ;;  %vm1946_vm7 = vcmp.eq.s32.totalorder %v6088_v0, %v6659_v52  ;;  %vm1947_vm6 = vcmp.eq.s32.totalorder %v6094_v20, %v6659_v52  ;;  %1787 = vperm.xlu0 %3495, %v6657_v59   ;;  %v2585_v28 = vadd.f32 %v6266_v46, %v2447_v35 }
 0x2f1   : > { %v3404_v62 = vsel %vm1945_vm13, 1.0, %v8430_v49  ;;  %v3405_v38 = vsel %vm1946_vm7, 1.0, %v8430_v49  ;;  %v2521_v3 = vsel %vm1945_vm13, %v5877_v27, 0.0  ;;  %v2522_v43 = vsel %vm1946_vm7, %v5882_v55, 0.0  ;;  %8464 = vst [vmem:[#allocation92_spill] sm:$0xff] %v6724_v9 }
 0x2f2   : > { %v2359_v41 = vadd.f32 %v3405_v38, %v3404_v62  ;;  %v6688_v60 = vadd.f32 %v2522_v43, %v2521_v3  ;;  %v2471_v27 = vsel %vm7966_vm12, %v8463_v56, 0.0  ;;  %v3406_v55 = vsel %vm1947_vm6, 1.0, %v8430_v49  ;;  %v8468_v3 = vld [vmem:[#allocation142_spill] sm:$0xff]  ;;  %v8470_v43 = vld [vmem:[#allocation159_spill] sm:$0xff]  ;;  %v8473_v56 = vld [vmem:[#allocation156_spill] sm:$0xff] }
 0x2f3   : > { %v6713_v62 = vadd.f32 %v2570_v13, %v6572_v47  ;;  %v2600_v38 = vadd.f32 %v6309_v30, %v2459_v33  ;;  %vm1948_vm7 = vcmp.eq.s32.totalorder %v6097_v14, %v6659_v52  ;;  %vm7967_vm13 = vcmp.eq.s32.totalorder %v6094_v20, %v6364_v10  ;;  %v8465_v47 = vld [vmem:[#allocation152_spill] sm:$0xff] }
 0x2f4   : > { %2347 = vadd.xlane.f32.xlu2 %v2346_v48  ;;  %v2360_v25 = vadd.f32 %v3406_v55, %v2359_v41  ;;  %v2615_v6 = vadd.f32 %v6353_v29, %v2471_v27  ;;  %v2472_v40 = vsel %vm7968_vm11, %v8465_v47, 0.0  ;;  %v6731_v46 = vadd.f32 %v2590_v34, %v6608_v5  ;;  %v8466_v29 = vld [vmem:[#allocation141_spill] sm:$0xff] }
 0x2f5   : > { %v6733_v30 = vadd.f32 %v2585_v28, %v2448_v17  ;;  %v6735_v35 = vadd.f32 %v2600_v38, %v2460_v16  ;;  %vm1908_vm12 = vcmp.eq.s32.totalorder %v6097_v14, %v6364_v10  ;;  %v2463_v33 = vsel %vm1887_vm3, %v8466_v29, 0.0  ;;  %v8467_v17 = vld [vmem:[#allocation158_spill] sm:$0xff]  ;;  %v8475_v28 = vld [vmem:[#allocation8_spill] sm:$0xff] }
 0x2f6   : > { %v6739_v61 = vadd.f32 %v2615_v6, %v2472_v40  ;;  %v3407_v5 = vsel %vm1948_vm7, 1.0, %v8430_v49  ;;  %v2483_v31 = vsel %vm7967_vm13, %v8467_v17, 0.0  ;;  %v2605_v19 = vadd.f32 %v6358_v44, %v2463_v33  ;;  %v6771_v44 = vld [vmem:[%s4091_s6 + $0xc8] sm:$0xff]  ;;  %v8480_v33 = vld [vmem:[#allocation15_spill] sm:$0xff] }
 0x2f7   : > { %v2361_v18 = vadd.f32 %v3407_v5, %v2360_v25  ;;  %v2630_v13 = vadd.f32 %v6393_v7, %v2483_v31  ;;  %vm8469_vm3 = vcmp.eq.s32.totalorder %v6097_v14, %v6335_v58  ;;  %v2484_v48 = vsel %vm1908_vm12, %v8470_v43, 0.0  ;;  %8471 = vst [vmem:[#allocation93_spill] sm:$0xff] %v6771_v44  ;;  %v8472_v58 = vld [vmem:[#allocation12_spill] sm:$0xff]  ;;  %v8476_v25 = vld [vmem:[#allocation161_spill] sm:$0xff] }
 0x2f8   : > { %1796 = vperm.xlu0 %3495, %v6724_v9   ;;  %v2464_v41 = vsel %vm8469_vm3, %v8468_v3, 0.0  ;;  %vm1919_vm13 = vcmp.eq.s32.totalorder %v6094_v20, %v6408_v37  ;;  %vm1920_vm11 = vcmp.eq.s32.totalorder %v6097_v14, %v6408_v37  ;;  %vm8474_vm3 = vcmp.eq.s32.totalorder %v6094_v20, %v6377_v45  ;;  %v8479_v45 = vld [vmem:[#allocation14_spill] sm:$0xff]  ;;  %v8481_v17 = vld [vmem:[#allocation25_spill] sm:$0xff] }
 0x2f9   : > { %v6764_v1 = vadd.f32 %v2605_v19, %v2464_v41  ;;  %v6766_v16 = vadd.f32 %v2630_v13, %v2484_v48  ;;  %v2495_v7 = vsel %vm1919_vm13, %v8472_v58, 0.0  ;;  %v2475_v27 = vsel %vm8474_vm3, %v8473_v56, 0.0  ;;  %v8483_v13 = vld [vmem:[#allocation164_spill] sm:$0xff]  ;;  %v8484_v41 = vld [vmem:[#allocation18_spill] sm:$0xff] }
 0x2fa   : > { %v2620_v55 = vadd.f32 %v6404_v32, %v2475_v27  ;;  %v2645_v34 = vadd.f32 %v6435_v8, %v2495_v7  ;;  %v2476_v38 = vsel %vm1900_vm0, %v8475_v28, 0.0  ;;  %v2496_v6 = vsel %vm1920_vm11, %v8476_v25, 0.0  ;;  %v8477_v32 = vld [vmem:[#allocation73_spill] sm:$0xff]  ;;  %v6802_v8 = vld [vmem:[%s4091_s6 + $0xe0] sm:$0xff]  ;;  %v8485_v7 = vld [vmem:[#allocation90_spill] sm:$0xff] }
 0x2fb   : > { %vm1931_vm3 = vcmp.eq.s32.totalorder %v6094_v20, %v6476_v42  ;;  %8478 = vst [vmem:[#allocation121_spill] sm:$0xff] %v6802_v8  ;;  %vm1932_vm0 = vcmp.eq.s32.totalorder %v6097_v14, %v6476_v42  ;;  %v2487_v5 = vsel %vm1911_vm1, %v8480_v33, 0.0  ;;  %v2488_v3 = vsel %vm1912_vm15, %v8483_v13, 0.0  ;;  %v8486_v56 = vld [vmem:[#allocation88_spill] sm:$0xff]  ;;  %v8489_v28 = vld [vmem:[#allocation19_spill] sm:$0xff] }
 0x2fc   : > { %2362 = vadd.xlane.f32.xlu2 %v2361_v18  ;;  %v6794_v47 = vadd.f32 %v2620_v55, %v2476_v38  ;;  %v6796_v40 = vadd.f32 %v2645_v34, %v2496_v6  ;;  %v2507_v29 = vsel %vm1931_vm3, %v8479_v45, 0.0  ;;  %v2635_v31 = vadd.f32 %v8481_v17, %v2487_v5  ;;  %v8482_v18 = vld [vmem:[#allocation112_spill] sm:$0xff]  ;;  %v6834_v55 = vld [vmem:[%s4091_s6 + $0xf8] sm:$0xff]  ;;  %v8490_v45 = vld [vmem:[#allocation166_spill] sm:$0xff] }
 0x2fd   : > { %v2660_v19 = vadd.f32 %v8482_v18, %v2507_v29  ;;  %v2508_v43 = vsel %vm1932_vm0, %v8484_v41, 0.0  ;;  %vm1943_vm1 = vcmp.eq.s32.totalorder %v6094_v20, %v6566_v57  ;;  %v1108_v27 = vsub.f32 %v8486_v56, %v8485_v7  ;;  %8487 = vst [vmem:[#allocation108_spill] sm:$0xff] %v6834_v55  ;;  %v8491_v33 = vld [vmem:[#allocation23_spill] sm:$0xff]  ;;  %v8492_v18 = vld [vmem:[#allocation22_spill] sm:$0xff] }
 0x2fe   : > { %v6825_v48 = vadd.f32 %v2635_v31, %v2488_v3  ;;  %vm7969_vm15 = vcmp.eq.s32.totalorder %v6097_v14, %v6566_v57  ;;  %v2519_v34 = vsel %vm1943_vm1, %v8488_v21, 0.0  ;;  %v2499_v38 = vsel %vm1923_vm9, %v8489_v28, 0.0  ;;  %v1076_v41 = vld [vmem:[#allocation3 + $0xf8] sm:$0xff] }
 0x2ff   : > { %v6827_v58 = vadd.f32 %v2660_v19, %v2508_v43  ;;  %v2650_v25 = vadd.f32 %v6542_v36, %v2499_v38  ;;  %v2675_v6 = vadd.f32 %v6616_v4, %v2519_v34  ;;  %v2500_v29 = vsel %vm1924_vm8, %v8490_v45, 0.0  ;;  %v8493_v19 = vld [vmem:[#allocation116_spill] sm:$0xff]  ;;  %v8495_v38 = vld [vmem:[#allocation26_spill] sm:$0xff] }
 0x300   : > { %1805 = vperm.xlu0 %3495, %v6771_v44   ;;  %v2520_v5 = vsel %vm7969_vm15, %v8491_v33, 0.0  ;;  %v2511_v36 = vsel %vm1935_vm2, %v8492_v18, 0.0  ;;  %v2512_v63 = vsel %vm1936_vm5, %v8493_v19, 0.0  ;;  %v2524_v12 = vsel %vm1948_vm7, %v8495_v38, 0.0 }
 0x301   : > { %v6857_v17 = vadd.f32 %v2650_v25, %v2500_v29  ;;  %v6859_v31 = vadd.f32 %v2675_v6, %v2520_v5  ;;  %v2665_v4 = vadd.f32 %v6643_v22, %v2511_v36  ;;  %vm8496_vm8 = vcmask 7168   ;;  %v8499_v29 = vld [vmem:[#allocation100_spill] sm:$0xff]  ;;  %v8500_v5 = vld [vmem:[#allocation101_spill] sm:$0xff] }
 0x302   : > { %vm8497_vm9 = vcmp.eq.s32.totalorder %v6086_v2, %v6153_v39  ;;  %vm8498_vm7 = vcmp.eq.s32.totalorder %v6088_v0, %v6153_v39 }
 0x303   : > { %v6870_v13 = vadd.f32 %v2665_v4, %v2512_v63  ;;  %v3305_v52 = vsel %vm8498_vm7, 1.0, %v8430_v49  ;;  %vm8503_vm7 = vcmp.eq.s32.totalorder %v6086_v2, %v6202_v51 }
 0x304   : > { %2537 = vadd.xlane.f32.xlu2 %v8477_v32  ;;  %v1171_v32 = vmul.f32 1.442695, %v1108_v27  ;;  %v8494_v27 = vld [vmem:[#allocation24_spill] sm:$0xff] }
 0x305   : > { %v2523_v21 = vsel %vm1947_vm6, %v8494_v27, 0.0 }
 0x306   : > { %3815 = vpow2.f32 %v1171_v32  ;;  %v2680_v22 = vadd.f32 %v6688_v60, %v2523_v21  ;;  %v3304_v60 = vsel %vm8497_vm9, 1.0, %v8430_v49 }
 0x307   : > { %v2234_v27 = vadd.f32 %v3305_v52, %v3304_v60  ;;  %v8502_v52 = vld [vmem:[#allocation97_spill] sm:$0xff] }
 0x308   : > { %1814 = vperm.xlu0 %3495, %v6802_v8   ;;  %v6884_v25 = vadd.f32 %v2680_v22, %v2524_v12  ;;  %v3306_v22 = vsel %vm1847_vm10, 1.0, %v8430_v49  ;;  %v8501_v12 = vld [vmem:[#allocation96_spill] sm:$0xff]  ;;  %vm8504_vm10 = vcmp.eq.s32.totalorder %v6088_v0, %v6202_v51 }
 0x309   : > { %v2235_v38 = vadd.f32 %v3306_v22, %v2234_v27 }
 0x30c   : > { %v3816_v3 = vpop.eup %3815 }
 0x30d   : > { %v1204_v56 = vmul.f32 %v3816_v3, %v1076_v41 }
 0x310   : > { %1823 = vperm.xlu0 %3495, %v6834_v55  }
 0x31e   : > { %v6872_v43 = vpop.xlane.xlu2 %2212 }
 0x31f   : > { %v1620_v34 = vpop.xlane.xlu0 %1619 }
 0x320   : > { %v1652_v28 = vadd.f32 %v1620_v34, %v1204_v56 }
 0x322   : > { %1685 = vst.msk [vmem:[#allocation3 + $0xf8] sm:$0xff] %vm8496_vm8, %v1652_v28 }
 0x326   : > { %v6886_v6 = vpop.xlane.xlu2 %2227 }
 0x32e   : > { %v6888_v32 = vpop.xlane.xlu2 %2242 }
 0x332   : > { %v6890_v45 = vpop.permute.xlu0 %1736 }
 0x333   : > { %vm1833_vm6 = vcmp.eq.s32.totalorder %v6086_v2, %v6890_v45  ;;  %vm1834_vm2 = vcmp.eq.s32.totalorder %v6088_v0, %v6890_v45  ;;  %vm1835_vm5 = vcmp.eq.s32.totalorder %v6094_v20, %v6890_v45  ;;  %vm1836_vm8 = vcmp.eq.s32.totalorder %v6097_v14, %v6890_v45  ;;  %v8536_v45 = vld [vmem:[#allocation148_spill] sm:$0xff] }
 0x334   : > { %v2409_v33 = vsel %vm1833_vm6, %v8499_v29, 0.0  ;;  %v2410_v18 = vsel %vm1834_vm2, %v8500_v5, 0.0  ;;  %v3292_v36 = vsel %vm1833_vm6, 1.0, %v8430_v49  ;;  %v3293_v4 = vsel %vm1834_vm2, 1.0, %v8430_v49 }
 0x335   : > { %v6910_v19 = vadd.f32 %v2410_v18, %v2409_v33  ;;  %v2219_v3 = vadd.f32 %v3293_v4, %v3292_v36  ;;  %v3294_v41 = vsel %vm1835_vm5, 1.0, %v8430_v49  ;;  %v3295_v21 = vsel %vm1836_vm8, 1.0, %v8430_v49 }
 0x336   : > { %v6912_v63 = vpop.xlane.xlu2 %2257  ;;  %v3316_v33 = vsel %vm8503_vm7, 1.0, %v8430_v49  ;;  %v3317_v5 = vsel %vm8504_vm10, 1.0, %v8430_v49  ;;  %vm8511_vm7 = vcmp.eq.s32.totalorder %v6088_v0, %v6242_v11 }
 0x337   : > { %v2220_v56 = vadd.f32 %v3294_v41, %v2219_v3  ;;  %v8505_v41 = vld [vmem:[#allocation98_spill] sm:$0xff]  ;;  %v2249_v22 = vadd.f32 %v3317_v5, %v3316_v33  ;;  %v8509_v5 = vld [vmem:[#allocation117_spill] sm:$0xff] }
 0x338   : > { %v8508_v33 = vld [vmem:[#allocation114_spill] sm:$0xff] }
 0x339   : > { %v2221_v34 = vadd.f32 %v3295_v21, %v2220_v56 }
 0x33a   : > { %v1743_v28 = vpop.permute.xlu0 %1742 }
 0x33b   : > { %vm1841_vm9 = vcmp.eq.s32.totalorder %v6086_v2, %v1743_v28  ;;  %vm1842_vm6 = vcmp.eq.s32.totalorder %v6088_v0, %v1743_v28  ;;  %vm1843_vm2 = vcmp.eq.s32.totalorder %v6094_v20, %v1743_v28  ;;  %2222 = vadd.xlane.f32.xlu0 %v2221_v34  ;;  %vm1844_vm15 = vcmp.eq.s32.totalorder %v6097_v14, %v1743_v28  ;;  %v8506_v28 = vld [vmem:[#allocation99_spill] sm:$0xff] }
 0x33c   : > { %v2417_v60 = vsel %vm1841_vm9, %v8501_v12, 0.0  ;;  %v2418_v29 = vsel %vm1842_vm6, %v8502_v52, 0.0  ;;  %v3300_v4 = vsel %vm1841_vm9, 1.0, %v8430_v49  ;;  %v3301_v3 = vsel %vm1842_vm6, 1.0, %v8430_v49 }
 0x33d   : > { %v2549_v18 = vadd.f32 %v2418_v29, %v2417_v60  ;;  %v2419_v56 = vsel %vm1843_vm2, %v8505_v41, 0.0  ;;  %v2229_v27 = vadd.f32 %v3301_v3, %v3300_v4  ;;  %v3302_v34 = vsel %vm1843_vm2, 1.0, %v8430_v49 }
 0x33e   : > { %v6942_v36 = vpop.xlane.xlu2 %2272  ;;  %v3307_v12 = vsel %vm1848_vm14, 1.0, %v8430_v49  ;;  %v2420_v60 = vsel %vm1844_vm15, %v8506_v28, 0.0  ;;  %v3303_v8 = vsel %vm1844_vm15, 1.0, %v8430_v49  ;;  %vm8507_vm9 = vcmp.eq.s32.totalorder %v6094_v20, %v6202_v51 }
 0x33f   : > { %v2550_v21 = vadd.f32 %v2549_v18, %v2419_v56  ;;  %v2230_v52 = vadd.f32 %v3302_v34, %v2229_v27  ;;  %v2236_v29 = vadd.f32 %v3307_v12, %v2235_v38  ;;  %v3318_v18 = vsel %vm8507_vm9, 1.0, %v8430_v49 }
 0x340   : > { %v2250_v39 = vadd.f32 %v3318_v18, %v2249_v22  ;;  %vm8510_vm15 = vcmp.eq.s32.totalorder %v6086_v2, %v6242_v11  ;;  %v3329_v3 = vsel %vm8511_vm7, 1.0, %v8430_v49  ;;  %vm8513_vm9 = vcmp.eq.s32.totalorder %v6097_v14, %v6202_v51 }
 0x341   : > { %v2551_v55 = vadd.f32 %v2550_v21, %v2420_v60  ;;  %v2231_v9 = vadd.f32 %v3303_v8, %v2230_v52  ;;  %v3328_v8 = vsel %vm8510_vm15, 1.0, %v8430_v49  ;;  %v8512_v21 = vld [vmem:[#allocation133_spill] sm:$0xff]  ;;  %v3319_v60 = vsel %vm8513_vm9, 1.0, %v8430_v49  ;;  %v8514_v52 = vld [vmem:[#allocation134_spill] sm:$0xff] }
 0x342   : > { %v1752_v44 = vpop.permute.xlu0 %1751  ;;  %v2264_v28 = vadd.f32 %v3329_v3, %v3328_v8  ;;  %v8516_v8 = vld [vmem:[#allocation125_spill] sm:$0xff]  ;;  %v8517_v3 = vld [vmem:[#allocation126_spill] sm:$0xff]  ;;  %vm8518_vm7 = vcmp.eq.s32.totalorder %v6086_v2, %v6282_v15 }
 0x343   : > { %vm1853_vm6 = vcmp.eq.s32.totalorder %v6086_v2, %v1752_v44  ;;  %vm1854_vm2 = vcmp.eq.s32.totalorder %v6088_v0, %v1752_v44  ;;  %vm1855_vm14 = vcmp.eq.s32.totalorder %v6094_v20, %v1752_v44  ;;  %2237 = vadd.xlane.f32.xlu0 %v2236_v29  ;;  %2552 = vadd.xlane.f32.xlu2 %v2551_v55 }
 0x344   : > { %v2429_v38 = vsel %vm1853_vm6, %v8508_v33, 0.0  ;;  %v2430_v4 = vsel %vm1854_vm2, %v8509_v5, 0.0  ;;  %2232 = vadd.xlane.f32.xlu1 %v2231_v9  ;;  %vm1856_vm10 = vcmp.eq.s32.totalorder %v6097_v14, %v1752_v44  ;;  %v3312_v56 = vsel %vm1853_vm6, 1.0, %v8430_v49 }
 0x345   : > { %v2564_v41 = vadd.f32 %v2430_v4, %v2429_v38  ;;  %v3313_v27 = vsel %vm1854_vm2, 1.0, %v8430_v49  ;;  %v2431_v9 = vsel %vm1855_vm14, %v8512_v21, 0.0  ;;  %v3314_v12 = vsel %vm1855_vm14, 1.0, %v8430_v49 }
 0x346   : > { %v6977_v55 = vpop.xlane.xlu2 %2287  ;;  %v2244_v34 = vadd.f32 %v3313_v27, %v3312_v56  ;;  %v2432_v29 = vsel %vm1856_vm10, %v8514_v52, 0.0  ;;  %v2251_v33 = vadd.f32 %v3319_v60, %v2250_v39  ;;  %v3315_v5 = vsel %vm1856_vm10, 1.0, %v8430_v49 }
 0x347   : > { %v2565_v22 = vadd.f32 %v2564_v41, %v2431_v9  ;;  %vm8515_vm6 = vcmp.eq.s32.totalorder %v6094_v20, %v6242_v11  ;;  %v3340_v27 = vsel %vm8518_vm7, 1.0, %v8430_v49  ;;  %vm8519_vm10 = vcmp.eq.s32.totalorder %v6088_v0, %v6282_v15 }
 0x348   : > { %v2245_v18 = vadd.f32 %v3314_v12, %v2244_v34  ;;  %v3330_v44 = vsel %vm8515_vm6, 1.0, %v8430_v49  ;;  %v3341_v21 = vsel %vm8519_vm10, 1.0, %v8430_v49  ;;  %v8520_v12 = vld [vmem:[#allocation145_spill] sm:$0xff]  ;;  %vm8521_vm6 = vcmp.eq.s32.totalorder %v6097_v14, %v6242_v11 }
 0x349   : > { %v2566_v38 = vadd.f32 %v2565_v22, %v2432_v29  ;;  %v2265_v51 = vadd.f32 %v3330_v44, %v2264_v28  ;;  %vm8526_vm10 = vcmp.eq.s32.totalorder %v6086_v2, %v6326_v54 }
 0x34a   : > { %v1761_v4 = vpop.permute.xlu0 %1760  ;;  %v2246_v56 = vadd.f32 %v3315_v5, %v2245_v18  ;;  %v8522_v5 = vld [vmem:[#allocation146_spill] sm:$0xff] }
 0x34b   : > { %vm1865_vm2 = vcmp.eq.s32.totalorder %v6086_v2, %v1761_v4  ;;  %vm1866_vm14 = vcmp.eq.s32.totalorder %v6088_v0, %v1761_v4  ;;  %vm1867_vm15 = vcmp.eq.s32.totalorder %v6094_v20, %v1761_v4  ;;  %2252 = vadd.xlane.f32.xlu0 %v2251_v33  ;;  %2567 = vadd.xlane.f32.xlu2 %v2566_v38  ;;  %v3331_v38 = vsel %vm8521_vm6, 1.0, %v8430_v49 }
 0x34c   : > { %v2441_v39 = vsel %vm1865_vm2, %v8516_v8, 0.0  ;;  %v2442_v41 = vsel %vm1866_vm14, %v8517_v3, 0.0  ;;  %2247 = vadd.xlane.f32.xlu1 %v2246_v56  ;;  %vm1868_vm9 = vcmp.eq.s32.totalorder %v6097_v14, %v1761_v4  ;;  %v3324_v34 = vsel %vm1865_vm2, 1.0, %v8430_v49 }
 0x34d   : > { %v2579_v9 = vadd.f32 %v2442_v41, %v2441_v39  ;;  %v3325_v22 = vsel %vm1866_vm14, 1.0, %v8430_v49  ;;  %v2443_v28 = vsel %vm1867_vm15, %v8520_v12, 0.0  ;;  %v3326_v18 = vsel %vm1867_vm15, 1.0, %v8430_v49 }
 0x34e   : > { %v2259_v60 = vadd.f32 %v3325_v22, %v3324_v34  ;;  %v2279_v33 = vadd.f32 %v3341_v21, %v3340_v27  ;;  %v2444_v56 = vsel %vm1868_vm9, %v8522_v5, 0.0  ;;  %v2266_v8 = vadd.f32 %v3331_v38, %v2265_v51  ;;  %v8524_v27 = vld [vmem:[#allocation131_spill] sm:$0xff]  ;;  %v8525_v21 = vld [vmem:[#allocation132_spill] sm:$0xff] }
 0x34f   : > { %v7011_v52 = vpop.xlane.xlu2 %2302  ;;  %v2580_v29 = vadd.f32 %v2579_v9, %v2443_v28  ;;  %v3327_v3 = vsel %vm1868_vm9, 1.0, %v8430_v49  ;;  %vm8523_vm2 = vcmp.eq.s32.totalorder %v6094_v20, %v6282_v15  ;;  %v3352_v22 = vsel %vm8526_vm10, 1.0, %v8430_v49 }
 0x350   : > { %v2260_v44 = vadd.f32 %v3326_v18, %v2259_v60  ;;  %v3342_v4 = vsel %vm8523_vm2, 1.0, %v8430_v49  ;;  %vm8527_vm9 = vcmp.eq.s32.totalorder %v6088_v0, %v6326_v54  ;;  %v8528_v18 = vld [vmem:[#allocation136_spill] sm:$0xff]  ;;  %vm8538_vm10 = vcmp.eq.s32.totalorder %v6097_v14, %v6326_v54 }
 0x351   : > { %v2581_v39 = vadd.f32 %v2580_v29, %v2444_v56  ;;  %v2280_v11 = vadd.f32 %v3342_v4, %v2279_v33  ;;  %v3353_v12 = vsel %vm8527_vm9, 1.0, %v8430_v49 }
 0x352   : > { %v1770_v41 = vpop.permute.xlu0 %1769  ;;  %v2261_v34 = vadd.f32 %v3327_v3, %v2260_v44  ;;  %v8529_v3 = vld [vmem:[#allocation138_spill] sm:$0xff] }
 0x353   : > { %vm1877_vm14 = vcmp.eq.s32.totalorder %v6086_v2, %v1770_v41  ;;  %vm1878_vm15 = vcmp.eq.s32.totalorder %v6088_v0, %v1770_v41  ;;  %vm1879_vm7 = vcmp.eq.s32.totalorder %v6094_v20, %v1770_v41  ;;  %2267 = vadd.xlane.f32.xlu0 %v2266_v8  ;;  %2582 = vadd.xlane.f32.xlu2 %v2581_v39  ;;  %v3343_v39 = vsel %vm1884_vm4, 1.0, %v8430_v49 }
 0x354   : > { %v2453_v51 = vsel %vm1877_vm14, %v8524_v27, 0.0  ;;  %v2454_v9 = vsel %vm1878_vm15, %v8525_v21, 0.0  ;;  %2262 = vadd.xlane.f32.xlu1 %v2261_v34  ;;  %vm1880_vm6 = vcmp.eq.s32.totalorder %v6097_v14, %v1770_v41  ;;  %v3336_v60 = vsel %vm1877_vm14, 1.0, %v8430_v49  ;;  %v8530_v27 = vld [vmem:[#allocation102_spill] sm:$0xff] }
 0x355   : > { %v2594_v28 = vadd.f32 %v2454_v9, %v2453_v51  ;;  %v3337_v29 = vsel %vm1878_vm15, 1.0, %v8430_v49  ;;  %v2455_v33 = vsel %vm1879_vm7, %v8528_v18, 0.0  ;;  %v3338_v44 = vsel %vm1879_vm7, 1.0, %v8430_v49  ;;  %v8533_v18 = vld [vmem:[#allocation143_spill] sm:$0xff] }
 0x356   : > { %v2274_v38 = vadd.f32 %v3337_v29, %v3336_v60  ;;  %v2294_v8 = vadd.f32 %v3353_v12, %v3352_v22  ;;  %v2456_v34 = vsel %vm1880_vm6, %v8529_v3, 0.0  ;;  %v2411_v51 = vsel %vm1835_vm5, %v8530_v27, 0.0  ;;  %v8532_v29 = vld [vmem:[#allocation105_spill] sm:$0xff] }
 0x357   : > { %v7045_v5 = vpop.xlane.xlu2 %2317  ;;  %v2595_v56 = vadd.f32 %v2594_v28, %v2455_v33  ;;  %v2281_v21 = vadd.f32 %v3343_v39, %v2280_v11  ;;  %v3339_v22 = vsel %vm1880_vm6, 1.0, %v8430_v49  ;;  %vm8531_vm4 = vcmp.eq.s32.totalorder %v6094_v20, %v6326_v54 }
 0x358   : > { %v2275_v4 = vadd.f32 %v3338_v44, %v2274_v38  ;;  %v3354_v15 = vsel %vm8531_vm4, 1.0, %v8430_v49  ;;  %v2540_v60 = vadd.f32 %v6910_v19, %v2411_v51  ;;  %v2412_v41 = vsel %vm1836_vm8, %v8532_v29, 0.0  ;;  %v8534_v38 = vld [vmem:[#allocation144_spill] sm:$0xff] }
 0x359   : > { %v2596_v9 = vadd.f32 %v2595_v56, %v2456_v34  ;;  %v2295_v11 = vadd.f32 %v3354_v15, %v2294_v8  ;;  %vm8535_vm15 = vcmp.eq.s32.totalorder %v6086_v2, %v6364_v10  ;;  %vm8537_vm8 = vcmp.eq.s32.totalorder %v6088_v0, %v6364_v10 }
 0x35a   : > { %v1779_v12 = vpop.permute.xlu0 %1778  ;;  %v2276_v28 = vadd.f32 %v3339_v22, %v2275_v4  ;;  %v3364_v19 = vsel %vm8535_vm15, 1.0, %v8430_v49  ;;  %v3365_v4 = vsel %vm8537_vm8, 1.0, %v8430_v49  ;;  %v7092_v27 = vadd.f32 %v2540_v60, %v2412_v41 }
 0x35b   : > { %vm1889_vm2 = vcmp.eq.s32.totalorder %v6086_v2, %v1779_v12  ;;  %vm1890_vm14 = vcmp.eq.s32.totalorder %v6088_v0, %v1779_v12  ;;  %vm1891_vm5 = vcmp.eq.s32.totalorder %v6094_v20, %v1779_v12  ;;  %2282 = vadd.xlane.f32.xlu0 %v2281_v21  ;;  %2597 = vadd.xlane.f32.xlu2 %v2596_v9  ;;  %v3355_v22 = vsel %vm8538_vm10, 1.0, %v8430_v49 }
 0x35c   : > { %v2465_v33 = vsel %vm1889_vm2, %v8533_v18, 0.0  ;;  %v2466_v56 = vsel %vm1890_vm14, %v8534_v38, 0.0  ;;  %2277 = vadd.xlane.f32.xlu1 %v2276_v28  ;;  %vm1892_vm7 = vcmp.eq.s32.totalorder %v6097_v14, %v1779_v12  ;;  %v3348_v8 = vsel %vm1889_vm2, 1.0, %v8430_v49  ;;  %v8539_v28 = vld [vmem:[#allocation150_spill] sm:$0xff] }
 0x35d   : > { %v2609_v44 = vadd.f32 %v2466_v56, %v2465_v33  ;;  %v3349_v39 = vsel %vm1890_vm14, 1.0, %v8430_v49  ;;  %v2467_v3 = vsel %vm1891_vm5, %v8536_v45, 0.0  ;;  %v3350_v9 = vsel %vm1891_vm5, 1.0, %v8430_v49 }
 0x35e   : > { %v2289_v34 = vadd.f32 %v3349_v39, %v3348_v8  ;;  %v2468_v15 = vsel %vm1892_vm7, %v8539_v28, 0.0  ;;  %v2296_v18 = vadd.f32 %v3355_v22, %v2295_v11  ;;  %v3351_v41 = vsel %vm1892_vm7, 1.0, %v8430_v49  ;;  %v8540_v11 = vld [vmem:[#allocation153_spill] sm:$0xff]  ;;  %v8542_v39 = vld [vmem:[#allocation154_spill] sm:$0xff]  ;;  %v8545_v22 = vld [vmem:[#allocation155_spill] sm:$0xff] }
 0x35f   : > { %v7094_v51 = vpop.xlane.xlu2 %2332  ;;  %v2610_v21 = vadd.f32 %v2609_v44, %v2467_v3  ;;  %v2309_v33 = vadd.f32 %v3365_v4, %v3364_v19  ;;  %vm8541_vm2 = vcmp.eq.s32.totalorder %v6094_v20, %v6364_v10  ;;  %vm8543_vm5 = vcmp.eq.s32.totalorder %v6086_v2, %v6408_v37 }
 0x360   : > { %v2290_v29 = vadd.f32 %v3350_v9, %v2289_v34  ;;  %v3366_v12 = vsel %vm8541_vm2, 1.0, %v8430_v49  ;;  %v3376_v34 = vsel %vm8543_vm5, 1.0, %v8430_v49  ;;  %vm8544_vm15 = vcmp.eq.s32.totalorder %v6088_v0, %v6408_v37 }
 0x361   : > { %v2611_v60 = vadd.f32 %v2610_v21, %v2468_v15  ;;  %v2310_v3 = vadd.f32 %v3366_v12, %v2309_v33  ;;  %v3377_v4 = vsel %vm8544_vm15, 1.0, %v8430_v49  ;;  %v3378_v10 = vsel %vm1919_vm13, 1.0, %v8430_v49 }
 0x362   : > { %v1788_v38 = vpop.permute.xlu0 %1787  ;;  %v2291_v56 = vadd.f32 %v3351_v41, %v2290_v29  ;;  %v2324_v33 = vadd.f32 %v3377_v4, %v3376_v34  ;;  %v8548_v34 = vld [vmem:[#allocation160_spill] sm:$0xff]  ;;  %vm8550_vm13 = vcmp.eq.s32.totalorder %v6088_v0, %v6476_v42  ;;  %v3390_v37 = vsel %vm1931_vm3, 1.0, %v8430_v49 }
 0x363   : > { %vm1901_vm9 = vcmp.eq.s32.totalorder %v6086_v2, %v1788_v38  ;;  %vm1902_vm6 = vcmp.eq.s32.totalorder %v6088_v0, %v1788_v38  ;;  %vm1903_vm4 = vcmp.eq.s32.totalorder %v6094_v20, %v1788_v38  ;;  %2297 = vadd.xlane.f32.xlu0 %v2296_v18  ;;  %2612 = vadd.xlane.f32.xlu2 %v2611_v60  ;;  %v3367_v18 = vsel %vm1908_vm12, 1.0, %v8430_v49 }
 0x364   : > { %v3360_v54 = vsel %vm1901_vm9, 1.0, %v8430_v49  ;;  %v3361_v44 = vsel %vm1902_vm6, 1.0, %v8430_v49  ;;  %v2477_v8 = vsel %vm1901_vm9, %v8540_v11, 0.0  ;;  %2292 = vadd.xlane.f32.xlu1 %v2291_v56  ;;  %vm1904_vm14 = vcmp.eq.s32.totalorder %v6097_v14, %v1788_v38 }
 0x365   : > { %v2304_v19 = vadd.f32 %v3361_v44, %v3360_v54  ;;  %v2478_v45 = vsel %vm1902_vm6, %v8542_v39, 0.0  ;;  %v3362_v21 = vsel %vm1903_vm4, 1.0, %v8430_v49  ;;  %v2479_v28 = vsel %vm1903_vm4, %v8545_v22, 0.0  ;;  %v8546_v54 = vld [vmem:[#allocation157_spill] sm:$0xff]  ;;  %v8547_v39 = vld [vmem:[#allocation10_spill] sm:$0xff] }
 0x366   : > { %v2624_v9 = vadd.f32 %v2478_v45, %v2477_v8  ;;  %v3363_v41 = vsel %vm1904_vm14, 1.0, %v8430_v49  ;;  %v2311_v56 = vadd.f32 %v3367_v18, %v2310_v3  ;;  %v2480_v44 = vsel %vm1904_vm14, %v8546_v54, 0.0  ;;  %v8551_v18 = vld [vmem:[#allocation13_spill] sm:$0xff] }
 0x367   : > { %v7135_v15 = vpop.xlane.xlu2 %2347  ;;  %v2305_v29 = vadd.f32 %v3362_v21, %v2304_v19  ;;  %v2325_v21 = vadd.f32 %v3378_v10, %v2324_v33  ;;  %vm8549_vm9 = vcmp.eq.s32.totalorder %v6086_v2, %v6476_v42  ;;  %v3389_v22 = vsel %vm8550_vm13, 1.0, %v8430_v49 }
 0x368   : > { %v2625_v60 = vadd.f32 %v2624_v9, %v2479_v28  ;;  %v3388_v9 = vsel %vm8549_vm9, 1.0, %v8430_v49  ;;  %vm8555_vm3 = vcmp.eq.s32.totalorder %v6086_v2, %v6566_v57  ;;  %vm8556_vm5 = vcmp.eq.s32.totalorder %v6088_v0, %v6566_v57 }
 0x369   : > { %v2306_v11 = vadd.f32 %v3363_v41, %v2305_v29  ;;  %v3402_v42 = vsel %vm1943_vm1, 1.0, %v8430_v49  ;;  %vm8564_vm1 = vcmp.eq.s32.totalorder %v6097_v14, %v6566_v57 }
 0x36a   : > { %v1797_v8 = vpop.permute.xlu0 %1796  ;;  %v2626_v12 = vadd.f32 %v2625_v60, %v2480_v44 }
 0x36b   : > { %vm1913_vm7 = vcmp.eq.s32.totalorder %v6086_v2, %v1797_v8  ;;  %vm1914_vm8 = vcmp.eq.s32.totalorder %v6088_v0, %v1797_v8  ;;  %vm1915_vm12 = vcmp.eq.s32.totalorder %v6094_v20, %v1797_v8  ;;  %2312 = vadd.xlane.f32.xlu0 %v2311_v56  ;;  %vm1916_vm10 = vcmp.eq.s32.totalorder %v6097_v14, %v1797_v8 }
 0x36c   : > { %v3372_v19 = vsel %vm1913_vm7, 1.0, %v8430_v49  ;;  %v3373_v38 = vsel %vm1914_vm8, 1.0, %v8430_v49  ;;  %v2489_v45 = vsel %vm1913_vm7, %v8547_v39, 0.0  ;;  %2627 = vadd.xlane.f32.xlu2 %v2626_v12  ;;  %2307 = vadd.xlane.f32.xlu1 %v2306_v11  ;;  %v2490_v4 = vsel %vm1914_vm8, %v8548_v34, 0.0  ;;  %v2218_v12 = vpop.xlane.xlu1 %2217 }
 0x36d   : > { %v2319_v3 = vadd.f32 %v3373_v38, %v3372_v19  ;;  %v3374_v28 = vsel %vm1915_vm12, 1.0, %v8430_v49  ;;  %v2639_v29 = vadd.f32 %v2490_v4, %v2489_v45  ;;  %v2491_v60 = vsel %vm1915_vm12, %v8551_v18, 0.0  ;;  %v8552_v19 = vld [vmem:[#allocation9_spill] sm:$0xff]  ;;  %v8553_v4 = vld [vmem:[#allocation11_spill] sm:$0xff] }
 0x36e   : > { %v3379_v56 = vsel %vm1920_vm11, 1.0, %v8430_v49  ;;  %v3375_v44 = vsel %vm1916_vm10, 1.0, %v8430_v49  ;;  %v2339_v11 = vadd.f32 %v3389_v22, %v3388_v9  ;;  %v2492_v38 = vsel %vm1916_vm10, %v8552_v19, 0.0  ;;  %v8554_v22 = vld [vmem:[#allocation16_spill] sm:$0xff]  ;;  %v8558_v19 = vld [vmem:[#allocation39_spill] sm:$0xff] }
 0x36f   : > { %v7173_v41 = vpop.xlane.xlu2 %2362  ;;  %v2320_v33 = vadd.f32 %v3374_v28, %v2319_v3  ;;  %v2640_v54 = vadd.f32 %v2639_v29, %v2491_v60  ;;  %v2326_v10 = vadd.f32 %v3379_v56, %v2325_v21  ;;  %vm2690_vm2 = vcmp.gt.f32.partialorder %v2218_v12, 0.0 }
 0x370   : > { %v2340_v29 = vadd.f32 %v3390_v37, %v2339_v11  ;;  %v3400_v18 = vsel %vm8555_vm3, 1.0, %v8430_v49  ;;  %v3401_v60 = vsel %vm8556_vm5, 1.0, %v8430_v49  ;;  %v2370_v11 = vld [vmem:[#allocation4 + $0x8] sm:$0xff]  ;;  %v3391_v37 = vsel %vm1932_vm0, 1.0, %v8430_v49 }
 0x371   : > { %v2321_v39 = vadd.f32 %v3375_v44, %v2320_v33  ;;  %v2641_v3 = vadd.f32 %v2640_v54, %v2492_v38  ;;  %v8557_v54 = vld [vmem:[#allocation162_spill] sm:$0xff]  ;;  %v2722_v38 = vsel %vm2690_vm2, %v8558_v19, 0.0  ;;  %vm8560_vm8 = vcmask 7168  }
 0x372   : > { %v1806_v45 = vpop.permute.xlu0 %1805 }
 0x373   : > { %vm1925_vm11 = vcmp.eq.s32.totalorder %v6086_v2, %v1806_v45  ;;  %vm1926_vm6 = vcmp.eq.s32.totalorder %v6088_v0, %v1806_v45  ;;  %vm1927_vm4 = vcmp.eq.s32.totalorder %v6094_v20, %v1806_v45  ;;  %2327 = vadd.xlane.f32.xlu0 %v2326_v10  ;;  %vm1928_vm14 = vcmp.eq.s32.totalorder %v6097_v14, %v1806_v45 }
 0x374   : > { %v3384_v34 = vsel %vm1925_vm11, 1.0, %v8430_v49  ;;  %v3385_v8 = vsel %vm1926_vm6, 1.0, %v8430_v49  ;;  %v2501_v21 = vsel %vm1925_vm11, %v8553_v4, 0.0  ;;  %2642 = vadd.xlane.f32.xlu2 %v2641_v3  ;;  %2322 = vadd.xlane.f32.xlu1 %v2321_v39  ;;  %v2502_v28 = vsel %vm1926_vm6, %v8554_v22, 0.0  ;;  %v8559_v22 = vld [vmem:[#allocation163_spill] sm:$0xff] }
 0x375   : > { %v2334_v9 = vadd.f32 %v3385_v8, %v3384_v34  ;;  %v3386_v33 = vsel %vm1927_vm4, 1.0, %v8430_v49  ;;  %v2654_v56 = vadd.f32 %v2502_v28, %v2501_v21  ;;  %v2503_v44 = vsel %vm1927_vm4, %v8557_v54, 0.0  ;;  %vm8571_vm4 = vmmov %vm8560_vm8 }
 0x376   : > { %v3387_v8 = vsel %vm1928_vm14, 1.0, %v8430_v49  ;;  %v2354_v4 = vadd.f32 %v3401_v60, %v3400_v18  ;;  %v2341_v21 = vadd.f32 %v3391_v37, %v2340_v29  ;;  %v2504_v28 = vsel %vm1928_vm14, %v8559_v22, 0.0  ;;  %v8561_v18 = vld [vmem:[#allocation17_spill] sm:$0xff]  ;;  %vm8573_vm14 = vmmov %vm8571_vm4 }
 0x377   : > { %v2538_v10 = vpop.xlane.xlu2 %2537  ;;  %v2335_v39 = vadd.f32 %v3386_v33, %v2334_v9  ;;  %v2655_v34 = vadd.f32 %v2654_v56, %v2503_v44  ;;  %v8562_v44 = vld [vmem:[#allocation21_spill] sm:$0xff]  ;;  %vm8575_vm5 = vmmov %vm8571_vm4 }
 0x378   : > { %v2754_v3 = vadd.f32 %v2722_v38, %v2538_v10  ;;  %v2355_v10 = vadd.f32 %v3402_v42, %v2354_v4  ;;  %v8566_v42 = vld [vmem:[#allocation77_spill] sm:$0xff] }
 0x379   : > { %v2336_v12 = vadd.f32 %v3387_v8, %v2335_v39  ;;  %v2656_v33 = vadd.f32 %v2655_v34, %v2504_v28  ;;  %v8563_v39 = vld [vmem:[#allocation165_spill] sm:$0xff]  ;;  %v3403_v34 = vsel %vm8564_vm1, 1.0, %v8430_v49  ;;  %vm8581_vm1 = vmmov %vm8571_vm4 }
 0x37a   : > { %v2786_v54 = vadd.f32 %v2754_v3, %v2370_v11  ;;  %v1815_v9 = vpop.permute.xlu0 %1814  ;;  %v2356_v22 = vadd.f32 %v3403_v34, %v2355_v10  ;;  %v8565_v28 = vld [vmem:[#allocation29_spill] sm:$0xff] }
 0x37b   : > { %vm1937_vm15 = vcmp.eq.s32.totalorder %v6086_v2, %v1815_v9  ;;  %vm1938_vm7 = vcmp.eq.s32.totalorder %v6088_v0, %v1815_v9  ;;  %vm1939_vm0 = vcmp.eq.s32.totalorder %v6094_v20, %v1815_v9  ;;  %2342 = vadd.xlane.f32.xlu0 %v2341_v21  ;;  %vm1940_vm12 = vcmp.eq.s32.totalorder %v6097_v14, %v1815_v9 }
 0x37c   : > { %2818 = vst.msk [vmem:[#allocation4 + $0x8] sm:$0xff] %vm8560_vm8, %v2786_v54  ;;  %v3396_v45 = vsel %vm1937_vm15, 1.0, %v8430_v49  ;;  %v3397_v29 = vsel %vm1938_vm7, 1.0, %v8430_v49  ;;  %v2513_v60 = vsel %vm1937_vm15, %v8561_v18, 0.0  ;;  %2657 = vadd.xlane.f32.xlu2 %v2656_v33  ;;  %2337 = vadd.xlane.f32.xlu1 %v2336_v12  ;;  %v2514_v11 = vsel %vm1938_vm7, %v8562_v44, 0.0  ;;  %v8567_v18 = vld [vmem:[#allocation76_spill] sm:$0xff]  ;;  %vm8577_vm7 = vmmov %vm8571_vm4 }
 0x37d   : > { %v2349_v56 = vadd.f32 %v3397_v29, %v3396_v45  ;;  %v3398_v19 = vsel %vm1939_vm0, 1.0, %v8430_v49  ;;  %v2669_v38 = vadd.f32 %v2514_v11, %v2513_v60  ;;  %v2515_v3 = vsel %vm1939_vm0, %v8563_v39, 0.0  ;;  %vm8579_vm8 = vmmov %vm8571_vm4 }
 0x37e   : > { %v3399_v21 = vsel %vm1940_vm12, 1.0, %v8430_v49  ;;  %v2516_v12 = vsel %vm1940_vm12, %v8565_v28, 0.0  ;;  %v2379_v28 = vld [vmem:[#allocation4 + $0x50] sm:$0xff] }
 0x37f   : > { %v2350_v37 = vadd.f32 %v3398_v19, %v2349_v56  ;;  %v2670_v8 = vadd.f32 %v2669_v38, %v2515_v3  ;;  %v8569_v19 = vld [vmem:[#allocation83_spill] sm:$0xff] }
 0x381   : > { %v2351_v54 = vadd.f32 %v3399_v21, %v2350_v37  ;;  %v2671_v4 = vadd.f32 %v2670_v8, %v2516_v12  ;;  %v8572_v37 = vld [vmem:[#allocation44_spill] sm:$0xff]  ;;  %v8574_v12 = vld [vmem:[#allocation50_spill] sm:$0xff] }
 0x382   : > { %v1824_v9 = vpop.permute.xlu0 %1823 }
 0x383   : > { %vm1949_vm10 = vcmp.eq.s32.totalorder %v6086_v2, %v1824_v9  ;;  %vm1950_vm9 = vcmp.eq.s32.totalorder %v6088_v0, %v1824_v9  ;;  %vm1951_vm13 = vcmp.eq.s32.totalorder %v6094_v20, %v1824_v9  ;;  %2357 = vadd.xlane.f32.xlu0 %v2356_v22  ;;  %vm1952_vm11 = vcmp.eq.s32.totalorder %v6097_v14, %v1824_v9  ;;  %v8568_v0 = vld [vmem:[#allocation67_spill] sm:$0xff] }
 0x384   : > { %v3408_v33 = vsel %vm1949_vm10, 1.0, %v8430_v49  ;;  %v3409_v57 = vsel %vm1950_vm9, 1.0, %v8430_v49  ;;  %v2525_v45 = vsel %vm1949_vm10, %v8566_v42, 0.0  ;;  %2672 = vadd.xlane.f32.xlu2 %v2671_v4  ;;  %2352 = vadd.xlane.f32.xlu1 %v2351_v54  ;;  %v2526_v60 = vsel %vm1950_vm9, %v8567_v18, 0.0  ;;  %v8576_v42 = vld [vmem:[#allocation56_spill] sm:$0xff]  ;;  %vm8583_vm9 = vmmov %vm8581_vm1 }
 0x385   : > { %v2364_v29 = vadd.f32 %v3409_v57, %v3408_v33  ;;  %v3410_v2 = vsel %vm1951_vm13, 1.0, %v8430_v49  ;;  %v2684_v56 = vadd.f32 %v2526_v60, %v2525_v45  ;;  %v2527_v44 = vsel %vm1951_vm13, %v8568_v0, 0.0  ;;  %v2382_v57 = vld [vmem:[#allocation4 + $0x68] sm:$0xff] }
 0x386   : > { %v3411_v10 = vsel %vm1952_vm11, 1.0, %v8430_v49  ;;  %v2528_v38 = vsel %vm1952_vm11, %v8569_v19, 0.0  ;;  %v8580_v19 = vld [vmem:[#allocation68_spill] sm:$0xff]  ;;  %vm8585_vm11 = vmmov %vm8581_vm1 }
 0x387   : > { %v2365_v20 = vadd.f32 %v3410_v2, %v2364_v29  ;;  %v2685_v11 = vadd.f32 %v2684_v56, %v2527_v44  ;;  %v2385_v2 = vld [vmem:[#allocation4 + $0x80] sm:$0xff]  ;;  %v8578_v56 = vld [vmem:[#allocation62_spill] sm:$0xff] }
 0x389   : > { %v2366_v39 = vadd.f32 %v3411_v10, %v2365_v20  ;;  %v2686_v3 = vadd.f32 %v2685_v11, %v2528_v38  ;;  %v2388_v10 = vld [vmem:[#allocation4 + $0x98] sm:$0xff] }
 0x38b   : > { %2532 = vadd.xlane.f32.xlu0 %v6652_v24 }
 0x38c   : > { %2687 = vadd.xlane.f32.xlu2 %v2686_v3  ;;  %2367 = vadd.xlane.f32.xlu1 %v2366_v39 }
 0x393   : > { %2547 = vadd.xlane.f32.xlu0 %v6697_v50 }
 0x394   : > { %2542 = vadd.xlane.f32.xlu1 %v7092_v27 }
 0x39b   : > { %2562 = vadd.xlane.f32.xlu0 %v6704_v26  ;;  %v2373_v26 = vld [vmem:[#allocation4 + $0x20] sm:$0xff] }
 0x39c   : > { %2557 = vadd.xlane.f32.xlu1 %v6707_v53  ;;  %v8570_v53 = vld [vmem:[#allocation31_spill] sm:$0xff] }
 0x3a3   : > { %2577 = vadd.xlane.f32.xlu0 %v6710_v23 }
 0x3a4   : > { %2572 = vadd.xlane.f32.xlu1 %v6713_v62 }
 0x3ab   : > { %2592 = vadd.xlane.f32.xlu0 %v6731_v46 }
 0x3ac   : > { %2587 = vadd.xlane.f32.xlu1 %v6733_v30 }
 0x3ae   : > { %v7265_v14 = vpop.xlane.xlu0 %2222 }
 0x3b3   : > { %2607 = vadd.xlane.f32.xlu0 %v6764_v1  ;;  %v2376_v1 = vld [vmem:[#allocation4 + $0x38] sm:$0xff] }
 0x3b4   : > { %2602 = vadd.xlane.f32.xlu1 %v6735_v35 }
 0x3b6   : > { %v7269_v49 = vpop.xlane.xlu0 %2237  ;;  %v2553_v24 = vpop.xlane.xlu2 %2552 }
 0x3b7   : > { %v2233_v50 = vpop.xlane.xlu1 %2232 }
 0x3b8   : > { %vm2693_vm6 = vcmp.gt.f32.partialorder %v2233_v50, 0.0 }
 0x3b9   : > { %v2725_v23 = vsel %vm2693_vm6, %v8570_v53, 0.0 }
 0x3ba   : > { %v2757_v27 = vadd.f32 %v2725_v23, %v2553_v24 }
 0x3bb   : > { %2622 = vadd.xlane.f32.xlu0 %v6794_v47 }
 0x3bc   : > { %v2789_v62 = vadd.f32 %v2757_v27, %v2373_v26  ;;  %2617 = vadd.xlane.f32.xlu1 %v6739_v61  ;;  %v8582_v26 = vld [vmem:[#allocation74_spill] sm:$0xff] }
 0x3be   : > { %2821 = vst.msk [vmem:[#allocation4 + $0x20] sm:$0xff] %vm8571_vm4, %v2789_v62  ;;  %v7275_v46 = vpop.xlane.xlu0 %2252  ;;  %v2568_v30 = vpop.xlane.xlu2 %2567  ;;  %vm2689_vm4 = vcmp.gt.f32.partialorder %v6872_v43, 0.0 }
 0x3bf   : > { %v2248_v35 = vpop.xlane.xlu1 %2247 }
 0x3c0   : > { %vm2696_vm2 = vcmp.gt.f32.partialorder %v2248_v35, 0.0 }
 0x3c1   : > { %v2728_v34 = vsel %vm2696_vm2, %v8572_v37, 0.0  ;;  %v8584_v37 = vld [vmem:[#allocation80_spill] sm:$0xff]  ;;  %vm8587_vm2 = vmmov %vm8581_vm1 }
 0x3c2   : > { %v2760_v8 = vadd.f32 %v2728_v34, %v2568_v30 }
 0x3c3   : > { %2637 = vadd.xlane.f32.xlu0 %v6825_v48 }
 0x3c4   : > { %v2792_v21 = vadd.f32 %v2760_v8, %v2376_v1  ;;  %2632 = vadd.xlane.f32.xlu1 %v6766_v16  ;;  %v2394_v1 = vld [vmem:[#allocation4 + $0xc8] sm:$0xff] }
 0x3c6   : > { %2824 = vst.msk [vmem:[#allocation4 + $0x38] sm:$0xff] %vm8573_vm14, %v2792_v21  ;;  %v7281_v47 = vpop.xlane.xlu0 %2267  ;;  %v2583_v61 = vpop.xlane.xlu2 %2582 }
 0x3c7   : > { %v2263_v22 = vpop.xlane.xlu1 %2262 }
 0x3c8   : > { %vm2699_vm3 = vcmp.gt.f32.partialorder %v2263_v22, 0.0 }
 0x3c9   : > { %v2731_v54 = vsel %vm2699_vm3, %v8574_v12, 0.0  ;;  %v2397_v12 = vld [vmem:[#allocation4 + $0xe0] sm:$0xff]  ;;  %vm2692_vm3 = vcmp.gt.f32.partialorder %v6886_v6, 0.0  ;;  %v2375_v6 = vld [vmem:[#allocation4 + $0x30] sm:$0xff] }
 0x3ca   : > { %v2763_v9 = vadd.f32 %v2731_v54, %v2583_v61  ;;  %v8586_v54 = vld [vmem:[#allocation86_spill] sm:$0xff] }
 0x3cb   : > { %2652 = vadd.xlane.f32.xlu0 %v6857_v17 }
 0x3cc   : > { %v2795_v4 = vadd.f32 %v2763_v9, %v2379_v28  ;;  %2647 = vadd.xlane.f32.xlu1 %v6796_v40 }
 0x3ce   : > { %2827 = vst.msk [vmem:[#allocation4 + $0x50] sm:$0xff] %vm8575_vm5, %v2795_v4  ;;  %v7287_v48 = vpop.xlane.xlu0 %2282  ;;  %v2598_v16 = vpop.xlane.xlu2 %2597  ;;  %vm8589_vm5 = vmmov %vm8581_vm1 }
 0x3cf   : > { %v2278_v33 = vpop.xlane.xlu1 %2277 }
 0x3d0   : > { %vm2702_vm15 = vcmp.gt.f32.partialorder %v2278_v33, 0.0  ;;  %v2369_v33 = vld [vmem:[#allocation4] sm:$0xff] }
 0x3d1   : > { %v2734_v45 = vsel %vm2702_vm15, %v8576_v42, 0.0  ;;  %vm2691_vm15 = vcmp.gt.f32.partialorder %v7265_v14, 0.0  ;;  %v8594_v14 = vld [vmem:[#allocation45_spill] sm:$0xff] }
 0x3d2   : > { %v2766_v29 = vadd.f32 %v2734_v45, %v2598_v16 }
 0x3d3   : > { %2667 = vadd.xlane.f32.xlu0 %v6870_v13 }
 0x3d4   : > { %v2798_v18 = vadd.f32 %v2766_v29, %v2382_v57  ;;  %2662 = vadd.xlane.f32.xlu1 %v6827_v58  ;;  %v8588_v57 = vld [vmem:[#allocation33_spill] sm:$0xff] }
 0x3d5   : > { %v2721_v42 = vsel %vm2689_vm4, %v8588_v57, 0.0  ;;  %vm8600_vm4 = vmmov %vm8581_vm1 }
 0x3d6   : > { %2830 = vst.msk [vmem:[#allocation4 + $0x68] sm:$0xff] %vm8577_vm7, %v2798_v18  ;;  %v7293_v17 = vpop.xlane.xlu0 %2297  ;;  %v2613_v40 = vpop.xlane.xlu2 %2612  ;;  %vm8590_vm7 = vmmov %vm8581_vm1 }
 0x3d7   : > { %v2293_v60 = vpop.xlane.xlu1 %2292 }
 0x3d8   : > { %vm2705_vm0 = vcmp.gt.f32.partialorder %v2293_v60, 0.0  ;;  %v2400_v60 = vld [vmem:[#allocation4 + $0xf8] sm:$0xff] }
 0x3d9   : > { %v2737_v0 = vsel %vm2705_vm0, %v8578_v56, 0.0  ;;  %vm2695_vm0 = vcmp.gt.f32.partialorder %v6888_v32, 0.0  ;;  %v2378_v32 = vld [vmem:[#allocation4 + $0x48] sm:$0xff] }
 0x3da   : > { %v2769_v44 = vadd.f32 %v2737_v0, %v2613_v40 }
 0x3db   : > { %2682 = vadd.xlane.f32.xlu0 %v6884_v25 }
 0x3dc   : > { %v2801_v20 = vadd.f32 %v2769_v44, %v2385_v2  ;;  %2677 = vadd.xlane.f32.xlu1 %v6859_v31  ;;  %v2391_v31 = vld [vmem:[#allocation4 + $0xb0] sm:$0xff]  ;;  %v2372_v44 = vld [vmem:[#allocation4 + $0x18] sm:$0xff] }
 0x3de   : > { %2833 = vst.msk [vmem:[#allocation4 + $0x80] sm:$0xff] %vm8579_vm8, %v2801_v20  ;;  %v7299_v13 = vpop.xlane.xlu0 %2312  ;;  %v8591_v20 = vld [vmem:[#allocation38_spill] sm:$0xff]  ;;  %vm8593_vm8 = vmmov %vm8581_vm1 }
 0x3df   : > { %v2628_v58 = vpop.xlane.xlu2 %2627  ;;  %v2308_v11 = vpop.xlane.xlu1 %2307 }
 0x3e0   : > { %vm2708_vm12 = vcmp.gt.f32.partialorder %v2308_v11, 0.0 }
 0x3e1   : > { %v2740_v38 = vsel %vm2708_vm12, %v8580_v19, 0.0  ;;  %vm2694_vm12 = vcmp.gt.f32.partialorder %v7269_v49, 0.0  ;;  %v8598_v49 = vld [vmem:[#allocation51_spill] sm:$0xff] }
 0x3e2   : > { %v2772_v39 = vadd.f32 %v2740_v38, %v2628_v58  ;;  %v2724_v58 = vsel %vm2692_vm3, %v8591_v20, 0.0  ;;  %v8592_v38 = vld [vmem:[#allocation32_spill] sm:$0xff]  ;;  %vm2704_vm3 = vcmp.gt.f32.partialorder %v6977_v55, 0.0  ;;  %v2383_v20 = vld [vmem:[#allocation4 + $0x70] sm:$0xff] }
 0x3e3   : > { %v2387_v55 = vld [vmem:[#allocation4 + $0x90] sm:$0xff] }
 0x3e4   : > { %v2804_v3 = vadd.f32 %v2772_v39, %v2388_v10  ;;  %v2371_v10 = vld [vmem:[#allocation4 + $0x10] sm:$0xff]  ;;  %v2723_v39 = vsel %vm2691_vm15, %v8592_v38, 0.0  ;;  %vm2703_vm15 = vcmp.gt.f32.partialorder %v7287_v48, 0.0  ;;  %v8609_v48 = vld [vmem:[#allocation69_spill] sm:$0xff] }
 0x3e6   : > { %2836 = vst.msk [vmem:[#allocation4 + $0x98] sm:$0xff] %vm8581_vm1, %v2804_v3  ;;  %v7303_v24 = vpop.xlane.xlu0 %2327 }
 0x3e7   : > { %v2643_v25 = vpop.xlane.xlu2 %2642  ;;  %v2323_v50 = vpop.xlane.xlu1 %2322 }
 0x3e8   : > { %vm2711_vm10 = vcmp.gt.f32.partialorder %v2323_v50, 0.0 }
 0x3e9   : > { %v2743_v53 = vsel %vm2711_vm10, %v8582_v26, 0.0  ;;  %vm2698_vm10 = vcmp.gt.f32.partialorder %v6912_v63, 0.0  ;;  %v2381_v63 = vld [vmem:[#allocation4 + $0x60] sm:$0xff] }
 0x3ea   : > { %v2775_v23 = vadd.f32 %v2743_v53, %v2643_v25  ;;  %v2374_v53 = vld [vmem:[#allocation4 + $0x28] sm:$0xff] }
 0x3ec   : > { %v2807_v27 = vadd.f32 %v2775_v23, %v2391_v31  ;;  %v2727_v31 = vsel %vm2695_vm0, %v8594_v14, 0.0  ;;  %vm2707_vm0 = vcmp.gt.f32.partialorder %v7011_v52, 0.0  ;;  %v8610_v14 = vld [vmem:[#allocation60_spill] sm:$0xff]  ;;  %v2390_v52 = vld [vmem:[#allocation4 + $0xa8] sm:$0xff] }
 0x3ee   : > { %2839 = vst.msk [vmem:[#allocation4 + $0xb0] sm:$0xff] %vm8583_vm9, %v2807_v27  ;;  %v7307_v62 = vpop.xlane.xlu0 %2342  ;;  %v8595_v27 = vld [vmem:[#allocation37_spill] sm:$0xff]  ;;  %vm8596_vm9 = vmmov %vm8581_vm1 }
 0x3ef   : > { %v2658_v30 = vpop.xlane.xlu2 %2657  ;;  %v2338_v35 = vpop.xlane.xlu1 %2337 }
 0x3f0   : > { %vm2714_vm13 = vcmp.gt.f32.partialorder %v2338_v35, 0.0 }
 0x3f1   : > { %v2746_v34 = vsel %vm2714_vm13, %v8584_v37, 0.0  ;;  %vm2697_vm13 = vcmp.gt.f32.partialorder %v7275_v46, 0.0  ;;  %v8602_v46 = vld [vmem:[#allocation57_spill] sm:$0xff] }
 0x3f2   : > { %v2778_v8 = vadd.f32 %v2746_v34, %v2658_v30  ;;  %v2726_v30 = vsel %vm2694_vm12, %v8595_v27, 0.0  ;;  %vm2706_vm12 = vcmp.gt.f32.partialorder %v7293_v17, 0.0  ;;  %v8613_v17 = vld [vmem:[#allocation75_spill] sm:$0xff] }
 0x3f4   : > { %v2810_v21 = vadd.f32 %v2778_v8, %v2394_v1  ;;  %v2730_v8 = vsel %vm2698_vm10, %v8598_v49, 0.0  ;;  %vm2710_vm10 = vcmp.gt.f32.partialorder %v7045_v5, 0.0  ;;  %v2393_v5 = vld [vmem:[#allocation4 + $0xc0] sm:$0xff] }
 0x3f6   : > { %2842 = vst.msk [vmem:[#allocation4 + $0xc8] sm:$0xff] %vm8585_vm11, %v2810_v21  ;;  %v7311_v61 = vpop.xlane.xlu0 %2357  ;;  %vm8597_vm11 = vmmov %vm8581_vm1 }
 0x3f7   : > { %v2673_v22 = vpop.xlane.xlu2 %2672  ;;  %v2353_v28 = vpop.xlane.xlu1 %2352 }
 0x3f8   : > { %vm2717_vm6 = vcmp.gt.f32.partialorder %v2353_v28, 0.0 }
 0x3f9   : > { %v2749_v9 = vsel %vm2717_vm6, %v8586_v54, 0.0  ;;  %vm2701_vm6 = vcmp.gt.f32.partialorder %v6942_v36, 0.0  ;;  %v2384_v36 = vld [vmem:[#allocation4 + $0x78] sm:$0xff] }
 0x3fa   : > { %v2781_v4 = vadd.f32 %v2749_v9, %v2673_v22  ;;  %v2377_v22 = vld [vmem:[#allocation4 + $0x40] sm:$0xff]  ;;  %v2733_v57 = vsel %vm2701_vm6, %v8602_v46, 0.0  ;;  %vm2713_vm6 = vcmp.gt.f32.partialorder %v7094_v51, 0.0  ;;  %v2396_v51 = vld [vmem:[#allocation4 + $0xd8] sm:$0xff] }
 0x3fc   : > { %v2813_v16 = vadd.f32 %v2781_v4, %v2397_v12  ;;  %v8599_v12 = vld [vmem:[#allocation42_spill] sm:$0xff] }
 0x3fd   : > { %v2729_v54 = vsel %vm2697_vm13, %v8599_v12, 0.0  ;;  %vm2709_vm13 = vcmp.gt.f32.partialorder %v7299_v13, 0.0  ;;  %v8617_v13 = vld [vmem:[#allocation81_spill] sm:$0xff] }
 0x3fe   : > { %2845 = vst.msk [vmem:[#allocation4 + $0xe0] sm:$0xff] %vm8587_vm2, %v2813_v16  ;;  %v2533_v45 = vpop.xlane.xlu0 %2532  ;;  %vm2700_vm2 = vcmp.gt.f32.partialorder %v7281_v47, 0.0  ;;  %v8606_v47 = vld [vmem:[#allocation63_spill] sm:$0xff] }
 0x3ff   : > { %v2368_v29 = vpop.xlane.xlu1 %2367  ;;  %v2753_v18 = vadd.f32 %v2721_v42, %v2533_v45  ;;  %v2688_v40 = vpop.xlane.xlu2 %2687  ;;  %v2380_v45 = vld [vmem:[#allocation4 + $0x58] sm:$0xff] }
 0x400   : > { %vm2720_vm14 = vcmp.gt.f32.partialorder %v2368_v29, 0.0 }
 0x401   : > { %v2752_v2 = vsel %vm2720_vm14, %v8485_v7, 0.0  ;;  %v2785_v56 = vadd.f32 %v2753_v18, %v2369_v33  ;;  %vm8601_vm14 = vmmov %vm8581_vm1  ;;  %v8603_v18 = vld [vmem:[#allocation48_spill] sm:$0xff] }
 0x402   : > { %v2784_v0 = vadd.f32 %v2752_v2, %v2688_v40  ;;  %v2732_v40 = vsel %vm2700_vm2, %v8603_v18, 0.0  ;;  %vm2712_vm2 = vcmp.gt.f32.partialorder %v7303_v24, 0.0  ;;  %v8621_v24 = vld [vmem:[#allocation87_spill] sm:$0xff] }
 0x403   : > { %2817 = vst.msk [vmem:[#allocation4] sm:$0xff] %vm8589_vm5, %v2785_v56  ;;  %vm8604_vm5 = vmmov %vm8581_vm1 }
 0x404   : > { %v2816_v43 = vadd.f32 %v2784_v0, %v2400_v60 }
 0x406   : > { %2848 = vst.msk [vmem:[#allocation4 + $0xf8] sm:$0xff] %vm8590_vm7, %v2816_v43  ;;  %v2548_v11 = vpop.xlane.xlu0 %2547  ;;  %vm8605_vm7 = vmmov %vm8581_vm1  ;;  %v2736_v43 = vsel %vm2704_vm3, %v8606_v47, 0.0  ;;  %vm2716_vm3 = vcmp.gt.f32.partialorder %v7135_v15, 0.0  ;;  %v2399_v15 = vld [vmem:[#allocation4 + $0xf0] sm:$0xff] }
 0x407   : > { %v2543_v19 = vpop.xlane.xlu1 %2542  ;;  %v2756_v7 = vadd.f32 %v2724_v58, %v2548_v11  ;;  %v8607_v11 = vld [vmem:[#allocation54_spill] sm:$0xff] }
 0x408   : > { %v2755_v3 = vadd.f32 %v2723_v39, %v2543_v19 }
 0x409   : > { %v2788_v25 = vadd.f32 %v2756_v7, %v2372_v44 }
 0x40a   : > { %v2787_v50 = vadd.f32 %v2755_v3, %v2371_v10  ;;  %v2735_v10 = vsel %vm2703_vm15, %v8607_v11, 0.0  ;;  %v2739_v3 = vsel %vm2707_vm0, %v8609_v48, 0.0  ;;  %vm2715_vm15 = vcmp.gt.f32.partialorder %v7307_v62, 0.0  ;;  %v8624_v62 = vld [vmem:[#allocation91_spill] sm:$0xff] }
 0x40b   : > { %2820 = vst.msk [vmem:[#allocation4 + $0x18] sm:$0xff] %vm8593_vm8, %v2788_v25  ;;  %vm8608_vm8 = vmmov %vm8581_vm1  ;;  %vm2719_vm0 = vcmp.gt.f32.partialorder %v7173_v41, 0.0 }
 0x40c   : > { %2819 = vst.msk [vmem:[#allocation4 + $0x10] sm:$0xff] %vm8581_vm1, %v2787_v50  ;;  %v2386_v50 = vld [vmem:[#allocation4 + $0x88] sm:$0xff]  ;;  %v2751_v47 = vsel %vm2719_vm0, %v8624_v62, 0.0 }
 0x40e   : > { %v2563_v26 = vpop.xlane.xlu0 %2562 }
 0x40f   : > { %v2558_v23 = vpop.xlane.xlu1 %2557  ;;  %v2759_v35 = vadd.f32 %v2727_v31, %v2563_v26  ;;  %v2738_v31 = vsel %vm2706_vm12, %v8610_v14, 0.0  ;;  %vm2718_vm12 = vcmp.gt.f32.partialorder %v7311_v61, 0.0 }
 0x410   : > { %v2758_v1 = vadd.f32 %v2726_v30, %v2558_v23  ;;  %v2742_v30 = vsel %vm2710_vm10, %v8613_v17, 0.0  ;;  %vm8626_vm10 = vmmov %vm8581_vm1 }
 0x411   : > { %v2791_v37 = vadd.f32 %v2759_v35, %v2375_v6 }
 0x412   : > { %v2790_v34 = vadd.f32 %v2758_v1, %v2374_v53  ;;  %v2389_v1 = vld [vmem:[#allocation4 + $0xa0] sm:$0xff] }
 0x413   : > { %2823 = vst.msk [vmem:[#allocation4 + $0x30] sm:$0xff] %vm8596_vm9, %v2791_v37  ;;  %vm8611_vm9 = vmmov %vm8581_vm1 }
 0x414   : > { %2822 = vst.msk [vmem:[#allocation4 + $0x28] sm:$0xff] %vm8597_vm11, %v2790_v34  ;;  %vm8612_vm11 = vmmov %vm8581_vm1  ;;  %v8614_v34 = vld [vmem:[#allocation66_spill] sm:$0xff] }
 0x416   : > { %v2578_v21 = vpop.xlane.xlu0 %2577 }
 0x417   : > { %v2573_v28 = vpop.xlane.xlu1 %2572  ;;  %v2762_v9 = vadd.f32 %v2730_v8, %v2578_v21 }
 0x418   : > { %v2761_v4 = vadd.f32 %v2729_v54, %v2573_v28  ;;  %v2745_v28 = vsel %vm2713_vm6, %v8617_v13, 0.0  ;;  %v2392_v54 = vld [vmem:[#allocation4 + $0xb8] sm:$0xff] }
 0x419   : > { %v2794_v16 = vadd.f32 %v2762_v9, %v2378_v32  ;;  %v2741_v32 = vsel %vm2709_vm13, %v8614_v34, 0.0 }
 0x41a   : > { %v2793_v33 = vadd.f32 %v2761_v4, %v2377_v22  ;;  %v8618_v4 = vld [vmem:[#allocation72_spill] sm:$0xff] }
 0x41b   : > { %2826 = vst.msk [vmem:[#allocation4 + $0x48] sm:$0xff] %vm8600_vm4, %v2794_v16  ;;  %vm8615_vm4 = vmmov %vm8581_vm1  ;;  %v2744_v16 = vsel %vm2712_vm2, %v8618_v4, 0.0 }
 0x41c   : > { %2825 = vst.msk [vmem:[#allocation4 + $0x40] sm:$0xff] %vm8601_vm14, %v2793_v33  ;;  %vm8616_vm14 = vmmov %vm8581_vm1 }
 0x41e   : > { %v2593_v42 = vpop.xlane.xlu0 %2592 }
 0x41f   : > { %v2588_v29 = vpop.xlane.xlu1 %2587  ;;  %v2765_v60 = vadd.f32 %v2733_v57, %v2593_v42  ;;  %v2748_v42 = vsel %vm2716_vm3, %v8621_v24, 0.0 }
 0x420   : > { %v2764_v2 = vadd.f32 %v2732_v40, %v2588_v29  ;;  %v2395_v29 = vld [vmem:[#allocation4 + $0xd0] sm:$0xff] }
 0x421   : > { %v2797_v56 = vadd.f32 %v2765_v60, %v2381_v63  ;;  %v8622_v40 = vld [vmem:[#allocation78_spill] sm:$0xff] }
 0x422   : > { %v2796_v0 = vadd.f32 %v2764_v2, %v2380_v45  ;;  %v2747_v60 = vsel %vm2715_vm15, %v8622_v40, 0.0 }
 0x423   : > { %2829 = vst.msk [vmem:[#allocation4 + $0x60] sm:$0xff] %vm8604_vm5, %v2797_v56  ;;  %vm8619_vm5 = vmmov %vm8581_vm1 }
 0x424   : > { %2828 = vst.msk [vmem:[#allocation4 + $0x58] sm:$0xff] %vm8605_vm7, %v2796_v0  ;;  %vm8620_vm7 = vmmov %vm8581_vm1 }
 0x426   : > { %v2608_v44 = vpop.xlane.xlu0 %2607 }
 0x427   : > { %v2603_v58 = vpop.xlane.xlu1 %2602  ;;  %v2768_v19 = vadd.f32 %v2736_v43, %v2608_v44  ;;  %v2398_v44 = vld [vmem:[#allocation4 + $0xe8] sm:$0xff] }
 0x428   : > { %v2767_v38 = vadd.f32 %v2735_v10, %v2603_v58  ;;  %v8625_v58 = vld [vmem:[#allocation84_spill] sm:$0xff] }
 0x429   : > { %v2800_v39 = vadd.f32 %v2768_v19, %v2384_v36  ;;  %v2750_v11 = vsel %vm2718_vm12, %v8625_v58, 0.0 }
 0x42a   : > { %v2799_v7 = vadd.f32 %v2767_v38, %v2383_v20 }
 0x42b   : > { %2832 = vst.msk [vmem:[#allocation4 + $0x78] sm:$0xff] %vm8608_vm8, %v2800_v39  ;;  %vm8623_vm8 = vmmov %vm8581_vm1 }
 0x42c   : > { %2831 = vst.msk [vmem:[#allocation4 + $0x70] sm:$0xff] %vm8581_vm1, %v2799_v7 }
 0x42e   : > { %v2623_v25 = vpop.xlane.xlu0 %2622 }
 0x42f   : > { %v2618_v6 = vpop.xlane.xlu1 %2617  ;;  %v2771_v26 = vadd.f32 %v2739_v3, %v2623_v25 }
 0x430   : > { %v2770_v53 = vadd.f32 %v2738_v31, %v2618_v6 }
 0x431   : > { %v2803_v23 = vadd.f32 %v2771_v26, %v2387_v55 }
 0x432   : > { %v2802_v27 = vadd.f32 %v2770_v53, %v2386_v50 }
 0x433   : > { %2835 = vst.msk [vmem:[#allocation4 + $0x90] sm:$0xff] %vm8611_vm9, %v2803_v23  ;;  %vm8627_vm9 = vmmov %vm8581_vm1 }
 0x434   : > { %2834 = vst.msk [vmem:[#allocation4 + $0x88] sm:$0xff] %vm8612_vm11, %v2802_v27 }
 0x436   : > { %v2638_v35 = vpop.xlane.xlu0 %2637 }
 0x437   : > { %v2633_v37 = vpop.xlane.xlu1 %2632  ;;  %v2774_v49 = vadd.f32 %v2742_v30, %v2638_v35 }
 0x438   : > { %v2773_v8 = vadd.f32 %v2741_v32, %v2633_v37 }
 0x439   : > { %v2806_v21 = vadd.f32 %v2774_v49, %v2390_v52 }
 0x43a   : > { %v2805_v22 = vadd.f32 %v2773_v8, %v2389_v1 }
 0x43b   : > { %2838 = vst.msk [vmem:[#allocation4 + $0xa8] sm:$0xff] %vm8615_vm4, %v2806_v21 }
 0x43c   : > { %2837 = vst.msk [vmem:[#allocation4 + $0xa0] sm:$0xff] %vm8616_vm14, %v2805_v22 }
 0x43e   : > { %v2653_v12 = vpop.xlane.xlu0 %2652 }
 0x43f   : > { %v2648_v9 = vpop.xlane.xlu1 %2647  ;;  %v2777_v33 = vadd.f32 %v2745_v28, %v2653_v12 }
 0x440   : > { %v2776_v63 = vadd.f32 %v2744_v16, %v2648_v9 }
 0x441   : > { %v2809_v46 = vadd.f32 %v2777_v33, %v2393_v5 }
 0x442   : > { %v2808_v57 = vadd.f32 %v2776_v63, %v2392_v54 }
 0x443   : > { %2841 = vst.msk [vmem:[#allocation4 + $0xc0] sm:$0xff] %vm8619_vm5, %v2809_v46 }
 0x444   : > { %2840 = vst.msk [vmem:[#allocation4 + $0xb8] sm:$0xff] %vm8620_vm7, %v2808_v57 }
 0x446   : > { %v2668_v45 = vpop.xlane.xlu0 %2667 }
 0x447   : > { %v2663_v18 = vpop.xlane.xlu1 %2662  ;;  %v2780_v2 = vadd.f32 %v2748_v42, %v2668_v45 }
 0x448   : > { %v2779_v56 = vadd.f32 %v2747_v60, %v2663_v18 }
 0x449   : > { %v2812_v0 = vadd.f32 %v2780_v2, %v2396_v51 }
 0x44a   : > { %v2811_v36 = vadd.f32 %v2779_v56, %v2395_v29 }
 0x44b   : > { %2844 = vst.msk [vmem:[#allocation4 + $0xd8] sm:$0xff] %vm8623_vm8, %v2812_v0 }
 0x44c   : > { %2843 = vst.msk [vmem:[#allocation4 + $0xd0] sm:$0xff] %vm8581_vm1, %v2811_v36 }
 0x44e   : > { %v2683_v43 = vpop.xlane.xlu0 %2682 }
 0x44f   : > { %v2678_v20 = vpop.xlane.xlu1 %2677  ;;  %v2783_v10 = vadd.f32 %v2751_v47, %v2683_v43 }
 0x450   : > { %v2782_v19 = vadd.f32 %v2750_v11, %v2678_v20  ;;  %2852 = sbr.rel (%p3412_p2) target bundleno = 1172 (0x494), region = 40 }
 0x451   : > { %v2815_v38 = vadd.f32 %v2783_v10, %v2399_v15 }
 0x452   : > { %v2814_v39 = vadd.f32 %v2782_v19, %v2398_v44 }
 0x453   : > { %2847 = vst.msk [vmem:[#allocation4 + $0xf0] sm:$0xff] %vm8626_vm10, %v2815_v38 }
 0x454   : > { %2846 = vst.msk [vmem:[#allocation4 + $0xe8] sm:$0xff] %vm8627_vm9, %v2814_v39 }
 0x455   : > { %v2885_v41 = vld [vmem:[#allocation3] sm:$0xff]  ;;  %v2886_v61 = vld [vmem:[#allocation3 + $0x8] sm:$0xff]  ;;  %v2887_v7 = vld [vmem:[#allocation3 + $0x10] sm:$0xff]  ;;  %vm8640_vm12 = vcmask 7168  }
 0x456   : > { %3817 = vlog2.f32 %v2885_v41  ;;  %v2888_v55 = vld [vmem:[#allocation3 + $0x18] sm:$0xff]  ;;  %v2889_v48 = vld [vmem:[#allocation3 + $0x20] sm:$0xff]  ;;  %v2890_v3 = vld [vmem:[#allocation3 + $0x28] sm:$0xff] }
 0x457   : > { %3819 = vlog2.f32 %v2886_v61  ;;  %v2891_v25 = vld [vmem:[#allocation3 + $0x30] sm:$0xff]  ;;  %v2853_v6 = vld [vmem:[#allocation2] sm:$0xff]  ;;  %v2892_v23 = vld [vmem:[#allocation3 + $0x38] sm:$0xff] }
 0x458   : > { %3821 = vlog2.f32 %v2887_v7  ;;  %v3013_v14 = vld [vmem:[#allocation4] sm:$0xff]  ;;  %v8628_v31 = vld [vmem:[#allocation30_spill] sm:$0xff]  ;;  %v2854_v17 = vld [vmem:[#allocation2 + $0x8] sm:$0xff] }
 0x459   : > { %3823 = vlog2.f32 %v2888_v55  ;;  %vm3077_vm13 = vcmp.ne.s32.totalorder %v8628_v31, 4294967196  ;;  %v8629_v26 = vld [vmem:[#allocation34_spill] sm:$0xff]  ;;  %v8631_v30 = vld [vmem:[#allocation28_spill] sm:$0xff]  ;;  %v8632_v35 = vld [vmem:[#allocation79_spill] sm:$0xff] }
 0x45a   : > { %3825 = vlog2.f32 %v2889_v48  ;;  %vm3078_vm11 = vcmp.ne.s32.totalorder %v8629_v26, 4294967196  ;;  %v8630_v53 = vld [vmem:[#allocation82_spill] sm:$0xff]  ;;  %vm3080_vm4 = vcmp.ne.s32.totalorder %v8631_v30, 4294967196  ;;  %vm3081_vm2 = vcmp.ne.s32.totalorder %v8632_v35, 4294967196  ;;  %v2893_v1 = vld [vmem:[#allocation3 + $0x40] sm:$0xff]  ;;  %v8633_v49 = vld [vmem:[#allocation35_spill] sm:$0xff] }
 0x45b   : > { %3827 = vlog2.f32 %v2890_v3  ;;  %vm3079_vm6 = vcmp.ne.s32.totalorder %v8630_v53, 4294967196  ;;  %v2855_v32 = vld [vmem:[#allocation2 + $0x10] sm:$0xff]  ;;  %vm3082_vm14 = vcmp.ne.s32.totalorder %v8633_v49, 4294967196  ;;  %v8634_v8 = vld [vmem:[#allocation36_spill] sm:$0xff]  ;;  %v2894_v21 = vld [vmem:[#allocation3 + $0x48] sm:$0xff] }
 0x45c   : > { %v3818_v50 = vpop.eup %3817  ;;  %3829 = vlog2.f32 %v2891_v25  ;;  %vm3083_vm3 = vcmp.ne.s32.totalorder %v8634_v8, 4294967196  ;;  %v3014_v13 = vld [vmem:[#allocation4 + $0x8] sm:$0xff]  ;;  %v2856_v12 = vld [vmem:[#allocation2 + $0x18] sm:$0xff]  ;;  %v2895_v9 = vld [vmem:[#allocation3 + $0x50] sm:$0xff] }
 0x45d   : > { %v3820_v27 = vpop.eup %3819  ;;  %v2918_v52 = vmul.f32 0.6931472, %v3818_v50  ;;  %3831 = vlog2.f32 %v2892_v23  ;;  %v8635_v54 = vld [vmem:[#allocation85_spill] sm:$0xff]  ;;  %v3015_v33 = vld [vmem:[#allocation4 + $0x10] sm:$0xff]  ;;  %v2857_v46 = vld [vmem:[#allocation2 + $0x20] sm:$0xff] }
 0x45e   : > { %v3822_v37 = vpop.eup %3821  ;;  %v2920_v34 = vmul.f32 0.6931472, %v3820_v27  ;;  %3833 = vlog2.f32 %v2893_v1  ;;  %vm3084_vm5 = vcmp.ne.s32.totalorder %v8635_v54, 4294967196  ;;  %v8636_v57 = vld [vmem:[#allocation40_spill] sm:$0xff]  ;;  %v2896_v51 = vld [vmem:[#allocation3 + $0x58] sm:$0xff]  ;;  %v2858_v40 = vld [vmem:[#allocation2 + $0x28] sm:$0xff] }
 0x45f   : > { %v3824_v22 = vpop.eup %3823  ;;  %v2981_v5 = vadd.f32 %v2918_v52, %v2853_v6  ;;  %v2922_v28 = vmul.f32 0.6931472, %v3822_v37  ;;  %3835 = vlog2.f32 %v2894_v21  ;;  %vm3085_vm15 = vcmp.ne.s32.totalorder %v8636_v57, 4294967196  ;;  %v3016_v29 = vld [vmem:[#allocation4 + $0x18] sm:$0xff]  ;;  %v8637_v60 = vld [vmem:[#allocation41_spill] sm:$0xff]  ;;  %v2897_v2 = vld [vmem:[#allocation3 + $0x60] sm:$0xff] }
 0x460   : > { %v3826_v4 = vpop.eup %3825  ;;  %v2982_v16 = vadd.f32 %v2920_v34, %v2854_v17  ;;  %v2924_v63 = vmul.f32 0.6931472, %v3824_v22  ;;  %3837 = vlog2.f32 %v2895_v9  ;;  %vm3086_vm7 = vcmp.ne.s32.totalorder %v8637_v60, 4294967196  ;;  %v3017_v15 = vld [vmem:[#allocation4 + $0x20] sm:$0xff]  ;;  %v3018_v47 = vld [vmem:[#allocation4 + $0x28] sm:$0xff]  ;;  %v2859_v43 = vld [vmem:[#allocation2 + $0x30] sm:$0xff] }
 0x461   : > { %v3828_v24 = vpop.eup %3827  ;;  %v3045_v42 = vsub.f32 %v2981_v5, %v3013_v14  ;;  %v2983_v45 = vadd.f32 %v2922_v28, %v2855_v32  ;;  %v2926_v18 = vmul.f32 0.6931472, %v3826_v4  ;;  %3839 = vlog2.f32 %v2896_v51  ;;  %v8638_v44 = vld [vmem:[#allocation89_spill] sm:$0xff]  ;;  %v3019_v38 = vld [vmem:[#allocation4 + $0x30] sm:$0xff]  ;;  %v2860_v39 = vld [vmem:[#allocation2 + $0x38] sm:$0xff] }
 0x462   : > { %v3830_v56 = vpop.eup %3829  ;;  %v3046_v0 = vsub.f32 %v2982_v16, %v3014_v13  ;;  %v2984_v36 = vadd.f32 %v2924_v63, %v2856_v12  ;;  %v2928_v62 = vmul.f32 0.6931472, %v3828_v24  ;;  %vm3087_vm0 = vcmp.ne.s32.totalorder %v8638_v44, 4294967196  ;;  %v3020_v41 = vld [vmem:[#allocation4 + $0x38] sm:$0xff]  ;;  %v2861_v50 = vld [vmem:[#allocation2 + $0x40] sm:$0xff]  ;;  %vm8641_vm1 = vmmov %vm8640_vm12 }
 0x463   : > { %3841 = vlog2.f32 %v2897_v2  ;;  %v3832_v20 = vpop.eup %3831  ;;  %v3109_v58 = vsel %vm3077_vm13, %v3045_v42, 0.0  ;;  %v3047_v11 = vsub.f32 %v2983_v45, %v3015_v33  ;;  %v2985_v10 = vadd.f32 %v2926_v18, %v2857_v46  ;;  %v8639_v61 = vld [vmem:[#allocation43_spill] sm:$0xff]  ;;  %v3021_v6 = vld [vmem:[#allocation4 + $0x40] sm:$0xff]  ;;  %v2862_v17 = vld [vmem:[#allocation2 + $0x48] sm:$0xff] }
 0x464   : > { %v2930_v19 = vmul.f32 0.6931472, %v3830_v56  ;;  %vm3088_vm8 = vcmp.ne.s32.totalorder %v8639_v61, 4294967196  ;;  %v3834_v7 = vpop.eup %3833  ;;  %3141 = vst.msk [vmem:[%s4096_s9] sm:$0xff] %vm8640_vm12, %v3109_v58  ;;  %v3110_v55 = vsel %vm3078_vm11, %v3046_v0, 0.0  ;;  %v3048_v48 = vsub.f32 %v2984_v36, %v3016_v29  ;;  %v3022_v1 = vld [vmem:[#allocation4 + $0x48] sm:$0xff]  ;;  %vm8642_vm10 = vmmov %vm8641_vm1 }
 0x465   : > { %v2986_v3 = vadd.f32 %v2928_v62, %v2858_v40  ;;  %v2932_v25 = vmul.f32 0.6931472, %v3832_v20  ;;  %v3836_v14 = vpop.eup %3835  ;;  %3142 = vst.msk [vmem:[%s4096_s9 + $0x8] sm:$0xff] %vm8641_vm1, %v3110_v55  ;;  %v3111_v31 = vsel %vm3079_vm6, %v3047_v11, 0.0  ;;  %v3049_v23 = vsub.f32 %v2985_v10, %v3017_v15  ;;  %v2863_v22 = vld [vmem:[#allocation2 + $0x50] sm:$0xff]  ;;  %vm8643_vm9 = vmmov %vm8641_vm1  ;;  %v2864_v4 = vld [vmem:[#allocation2 + $0x58] sm:$0xff] }
 0x466   : > { %v2987_v27 = vadd.f32 %v2930_v19, %v2859_v43  ;;  %v2934_v52 = vmul.f32 0.6931472, %v3834_v7  ;;  %v3838_v26 = vpop.eup %3837  ;;  %3143 = vst.msk [vmem:[%s4096_s9 + $0x10] sm:$0xff] %vm8642_vm10, %v3111_v31  ;;  %v3112_v37 = vsel %vm3080_vm4, %v3048_v48, 0.0  ;;  %v2936_v21 = vmul.f32 0.6931472, %v3836_v14  ;;  %vm8644_vm13 = vmmov %vm8641_vm1 }
 0x467   : > { %v3050_v34 = vsub.f32 %v2986_v3, %v3018_v47  ;;  %v2988_v32 = vadd.f32 %v2932_v25, %v2860_v39  ;;  %v3023_v5 = vld [vmem:[#allocation4 + $0x50] sm:$0xff]  ;;  %v3840_v53 = vpop.eup %3839  ;;  %3144 = vst.msk [vmem:[%s4096_s9 + $0x18] sm:$0xff] %vm8643_vm9, %v3112_v37  ;;  %v3113_v13 = vsel %vm3081_vm2, %v3049_v23, 0.0  ;;  %v2938_v9 = vmul.f32 0.6931472, %v3838_v26  ;;  %v2898_v16 = vld [vmem:[#allocation3 + $0x68] sm:$0xff]  ;;  %vm8645_vm11 = vmmov %vm8641_vm1 }
 0x468   : > { %v3051_v28 = vsub.f32 %v2987_v27, %v3019_v38  ;;  %v2989_v12 = vadd.f32 %v2934_v52, %v2861_v50  ;;  %3145 = vst.msk [vmem:[%s4096_s9 + $0x20] sm:$0xff] %vm8644_vm13, %v3113_v13  ;;  %v2990_v46 = vadd.f32 %v2936_v21, %v2862_v17  ;;  %v2940_v51 = vmul.f32 0.6931472, %v3840_v53  ;;  %v2865_v24 = vld [vmem:[#allocation2 + $0x60] sm:$0xff]  ;;  %v2899_v42 = vld [vmem:[#allocation3 + $0x70] sm:$0xff]  ;;  %v3024_v18 = vld [vmem:[#allocation4 + $0x58] sm:$0xff] }
 0x469   : > { %v3842_v30 = vpop.eup %3841  ;;  %v3114_v33 = vsel %vm3082_vm14, %v3050_v34, 0.0  ;;  %v3052_v63 = vsub.f32 %v2988_v32, %v3020_v41  ;;  %v2991_v29 = vadd.f32 %v2938_v9, %v2863_v22  ;;  %v2900_v2 = vld [vmem:[#allocation3 + $0x78] sm:$0xff]  ;;  %vm8646_vm6 = vmmov %vm8641_vm1  ;;  %v3025_v36 = vld [vmem:[#allocation4 + $0x60] sm:$0xff]  ;;  %3843 = vlog2.f32 %v2898_v16 }
 0x46a   : > { %3146 = vst.msk [vmem:[%s4096_s9 + $0x28] sm:$0xff] %vm8645_vm11, %v3114_v33  ;;  %v3115_v35 = vsel %vm3083_vm3, %v3051_v28, 0.0  ;;  %v3053_v45 = vsub.f32 %v2989_v12, %v3021_v6  ;;  %v2942_v40 = vmul.f32 0.6931472, %v3842_v30  ;;  %v3054_v56 = vsub.f32 %v2990_v46, %v3022_v1  ;;  %v2901_v15 = vld [vmem:[#allocation3 + $0x80] sm:$0xff]  ;;  %vm8647_vm4 = vmmov %vm8641_vm1  ;;  %v2902_v43 = vld [vmem:[#allocation3 + $0x88] sm:$0xff] }
 0x46b   : > { %3147 = vst.msk [vmem:[%s4096_s9 + $0x30] sm:$0xff] %vm8646_vm6, %v3115_v35  ;;  %v3116_v49 = vsel %vm3084_vm5, %v3052_v63, 0.0  ;;  %v2992_v0 = vadd.f32 %v2940_v51, %v2864_v4  ;;  %v3055_v62 = vsub.f32 %v2991_v29, %v3023_v5  ;;  %3845 = vlog2.f32 %v2899_v42  ;;  %vm8648_vm2 = vmmov %vm8641_vm1  ;;  %v8649_v58 = vld [vmem:[#allocation47_spill] sm:$0xff]  ;;  %v2903_v11 = vld [vmem:[#allocation3 + $0x90] sm:$0xff] }
 0x46c   : > { %3148 = vst.msk [vmem:[%s4096_s9 + $0x38] sm:$0xff] %vm8647_vm4, %v3116_v49  ;;  %v3117_v8 = vsel %vm3085_vm15, %v3053_v45, 0.0  ;;  %v2993_v47 = vadd.f32 %v2942_v40, %v2865_v24  ;;  %v3118_v54 = vsel %vm3086_vm7, %v3054_v56, 0.0  ;;  %vm3089_vm14 = vcmp.ne.s32.totalorder %v8649_v58, 4294967196  ;;  %vm8650_vm3 = vmmov %vm8641_vm1  ;;  %v2904_v19 = vld [vmem:[#allocation3 + $0x98] sm:$0xff]  ;;  %v2905_v38 = vld [vmem:[#allocation3 + $0xa0] sm:$0xff] }
 0x46d   : > { %3149 = vst.msk [vmem:[%s4096_s9 + $0x40] sm:$0xff] %vm8648_vm2, %v3117_v8  ;;  %v3056_v20 = vsub.f32 %v2992_v0, %v3024_v18  ;;  %3847 = vlog2.f32 %v2900_v2  ;;  %v3119_v57 = vsel %vm3087_vm0, %v3055_v62, 0.0  ;;  %vm8651_vm5 = vmmov %vm8641_vm1  ;;  %v8653_v41 = vld [vmem:[#allocation27_spill] sm:$0xff]  ;;  %v2906_v7 = vld [vmem:[#allocation3 + $0xa8] sm:$0xff]  ;;  %vm3096_vm13 = vcmp.ne.s32.totalorder %v6657_v59, 4294967196 }
 0x46e   : > { %3150 = vst.msk [vmem:[%s4096_s9 + $0x48] sm:$0xff] %vm8650_vm3, %v3118_v54  ;;  %v3057_v10 = vsub.f32 %v2993_v47, %v3025_v36  ;;  %3849 = vlog2.f32 %v2901_v15  ;;  %vm8652_vm15 = vmmov %vm8641_vm1  ;;  %vm3090_vm7 = vcmp.ne.s32.totalorder %v8653_v41, 4294967196  ;;  %v2866_v44 = vld [vmem:[#allocation2 + $0x68] sm:$0xff]  ;;  %v8656_v3 = vld [vmem:[#allocation46_spill] sm:$0xff] }
 0x46f   : > { %3151 = vst.msk [vmem:[%s4096_s9 + $0x50] sm:$0xff] %vm8651_vm5, %v3119_v57  ;;  %v3120_v60 = vsel %vm3088_vm8, %v3056_v20, 0.0  ;;  %3851 = vlog2.f32 %v2902_v43  ;;  %v3844_v55 = vpop.eup %3843  ;;  %vm8654_vm12 = vmmov %vm8641_vm1  ;;  %v8655_v48 = vld [vmem:[#allocation53_spill] sm:$0xff]  ;;  %vm3092_vm1 = vcmp.ne.s32.totalorder %v8656_v3, 4294967196  ;;  %v2907_v61 = vld [vmem:[#allocation3 + $0xb0] sm:$0xff] }
 0x470   : > { %3152 = vst.msk [vmem:[%s4096_s9 + $0x58] sm:$0xff] %vm8652_vm15, %v3120_v60  ;;  %v3121_v39 = vsel %vm3089_vm14, %v3057_v10, 0.0  ;;  %3853 = vlog2.f32 %v2903_v11  ;;  %vm3091_vm0 = vcmp.ne.s32.totalorder %v8655_v48, 4294967196  ;;  %v8657_v25 = vld [vmem:[#allocation113_spill] sm:$0xff]  ;;  %v2944_v6 = vmul.f32 0.6931472, %v3844_v55  ;;  %vm8665_vm5 = vmmov %vm8650_vm3 }
 0x471   : > { %3153 = vst.msk [vmem:[%s4096_s9 + $0x60] sm:$0xff] %vm8654_vm12, %v3121_v39  ;;  %vm3093_vm10 = vcmp.ne.s32.totalorder %v8657_v25, 4294967196  ;;  %3855 = vlog2.f32 %v2904_v19  ;;  %v3846_v50 = vpop.eup %3845  ;;  %v2867_v14 = vld [vmem:[#allocation2 + $0x70] sm:$0xff]  ;;  %v8658_v31 = vld [vmem:[#allocation59_spill] sm:$0xff]  ;;  %v8659_v23 = vld [vmem:[#allocation52_spill] sm:$0xff] }
 0x472   : > { %vm3094_vm8 = vcmp.ne.s32.totalorder %v8658_v31, 4294967196  ;;  %vm3095_vm9 = vcmp.ne.s32.totalorder %v8659_v23, 4294967196  ;;  %3857 = vlog2.f32 %v2905_v38  ;;  %v2908_v27 = vld [vmem:[#allocation3 + $0xb8] sm:$0xff]  ;;  %v3026_v17 = vld [vmem:[#allocation4 + $0x68] sm:$0xff]  ;;  %v2946_v1 = vmul.f32 0.6931472, %v3846_v50  ;;  %vm8666_vm15 = vmmov %vm8650_vm3 }
 0x473   : > { %v3848_v52 = vpop.eup %3847  ;;  %v2868_v26 = vld [vmem:[#allocation2 + $0x78] sm:$0xff]  ;;  %3859 = vlog2.f32 %v2906_v7  ;;  %v2909_v37 = vld [vmem:[#allocation3 + $0xc0] sm:$0xff]  ;;  %v2994_v32 = vadd.f32 %v2944_v6, %v2866_v44  ;;  %v3027_v21 = vld [vmem:[#allocation4 + $0x70] sm:$0xff] }
 0x474   : > { %v3850_v34 = vpop.eup %3849  ;;  %v2948_v22 = vmul.f32 0.6931472, %v3848_v52  ;;  %v2869_v5 = vld [vmem:[#allocation2 + $0x80] sm:$0xff]  ;;  %v8660_v53 = vld [vmem:[#allocation58_spill] sm:$0xff]  ;;  %3861 = vlog2.f32 %v2907_v61  ;;  %v2910_v13 = vld [vmem:[#allocation3 + $0xc8] sm:$0xff]  ;;  %v2995_v12 = vadd.f32 %v2946_v1, %v2867_v14 }
 0x475   : > { %vm3097_vm11 = vcmp.ne.s32.totalorder %v8660_v53, 4294967196  ;;  %v3852_v28 = vpop.eup %3851  ;;  %v3028_v9 = vld [vmem:[#allocation4 + $0x78] sm:$0xff]  ;;  %v2950_v4 = vmul.f32 0.6931472, %v3850_v34  ;;  %v2870_v16 = vld [vmem:[#allocation2 + $0x88] sm:$0xff]  ;;  %3863 = vlog2.f32 %v2908_v27  ;;  %v3058_v63 = vsub.f32 %v2994_v32, %v3026_v17  ;;  %v3029_v51 = vld [vmem:[#allocation4 + $0x80] sm:$0xff] }
 0x476   : > { %v8661_v30 = vld [vmem:[#allocation49_spill] sm:$0xff]  ;;  %v3854_v33 = vpop.eup %3853  ;;  %v2996_v46 = vadd.f32 %v2948_v22, %v2868_v26  ;;  %v2952_v24 = vmul.f32 0.6931472, %v3852_v28  ;;  %v2871_v42 = vld [vmem:[#allocation2 + $0x90] sm:$0xff]  ;;  %v8662_v35 = vld [vmem:[#allocation92_spill] sm:$0xff]  ;;  %3865 = vlog2.f32 %v2909_v37  ;;  %v3059_v29 = vsub.f32 %v2995_v12, %v3027_v21 }
 0x477   : > { %vm3098_vm6 = vcmp.ne.s32.totalorder %v8661_v30, 4294967196  ;;  %vm3099_vm4 = vcmp.ne.s32.totalorder %v8662_v35, 4294967196  ;;  %v3856_v45 = vpop.eup %3855  ;;  %v2997_v18 = vadd.f32 %v2950_v4, %v2869_v5  ;;  %v3030_v40 = vld [vmem:[#allocation4 + $0x88] sm:$0xff]  ;;  %v2954_v2 = vmul.f32 0.6931472, %v3854_v33  ;;  %v3031_v49 = vld [vmem:[#allocation4 + $0x90] sm:$0xff]  ;;  %vm8668_vm12 = vmmov %vm8650_vm3 }
 0x478   : > { %v2872_v56 = vld [vmem:[#allocation2 + $0x98] sm:$0xff]  ;;  %v8663_v0 = vld [vmem:[#allocation64_spill] sm:$0xff]  ;;  %3867 = vlog2.f32 %v2910_v13  ;;  %v3858_v36 = vpop.eup %3857  ;;  %v3122_v15 = vsel %vm3090_vm7, %v3058_v63, 0.0  ;;  %v3060_v8 = vsub.f32 %v2996_v46, %v3028_v9  ;;  %v2998_v62 = vadd.f32 %v2952_v24, %v2870_v16  ;;  %v8664_v58 = vld [vmem:[#allocation65_spill] sm:$0xff] }
 0x479   : > { %vm3100_vm2 = vcmp.ne.s32.totalorder %v8663_v0, 4294967196  ;;  %v2956_v47 = vmul.f32 0.6931472, %v3856_v45  ;;  %v3032_v43 = vld [vmem:[#allocation4 + $0x98] sm:$0xff]  ;;  %v2873_v54 = vld [vmem:[#allocation2 + $0xa0] sm:$0xff]  ;;  %vm3101_vm14 = vcmp.ne.s32.totalorder %v8664_v58, 4294967196  ;;  %v3860_v11 = vpop.eup %3859  ;;  %v3061_v10 = vsub.f32 %v2997_v18, %v3029_v51  ;;  %vm8667_vm7 = vmmov %vm8650_vm3 }
 0x47a   : > { %v3033_v20 = vld [vmem:[#allocation4 + $0xa0] sm:$0xff]  ;;  %3154 = vst.msk [vmem:[%s4096_s9 + $0x68] sm:$0xff] %vm8650_vm3, %v3122_v15  ;;  %v3123_v57 = vsel %vm3091_vm0, %v3059_v29, 0.0  ;;  %v2999_v19 = vadd.f32 %v2954_v2, %v2871_v42  ;;  %v2958_v60 = vmul.f32 0.6931472, %v3858_v36  ;;  %v2874_v38 = vld [vmem:[#allocation2 + $0xa8] sm:$0xff]  ;;  %v3862_v41 = vpop.eup %3861  ;;  %v3062_v55 = vsub.f32 %v2998_v62, %v3030_v40  ;;  %vm8669_vm0 = vmmov %vm8650_vm3 }
 0x47b   : > { %v3034_v39 = vld [vmem:[#allocation4 + $0xa8] sm:$0xff]  ;;  %3155 = vst.msk [vmem:[%s4096_s9 + $0x70] sm:$0xff] %vm8665_vm5, %v3123_v57  ;;  %v3124_v7 = vsel %vm3092_vm1, %v3060_v8, 0.0  ;;  %v3000_v44 = vadd.f32 %v2956_v47, %v2872_v56  ;;  %v2960_v61 = vmul.f32 0.6931472, %v3860_v11  ;;  %v2875_v50 = vld [vmem:[#allocation2 + $0xb0] sm:$0xff]  ;;  %v3864_v48 = vpop.eup %3863  ;;  %vm8670_vm1 = vmmov %vm8669_vm0 }
 0x47c   : > { %v3035_v6 = vld [vmem:[#allocation4 + $0xb0] sm:$0xff]  ;;  %3156 = vst.msk [vmem:[%s4096_s9 + $0x78] sm:$0xff] %vm8666_vm15, %v3124_v7  ;;  %v3125_v14 = vsel %vm3093_vm10, %v3061_v10, 0.0  ;;  %v3063_v27 = vsub.f32 %v2999_v19, %v3031_v49  ;;  %v3001_v52 = vadd.f32 %v2958_v60, %v2873_v54  ;;  %v2962_v17 = vmul.f32 0.6931472, %v3862_v41  ;;  %v2876_v1 = vld [vmem:[#allocation2 + $0xb8] sm:$0xff]  ;;  %v3866_v3 = vpop.eup %3865  ;;  %vm8671_vm10 = vmmov %vm8669_vm0 }
 0x47d   : > { %v3036_v26 = vld [vmem:[#allocation4 + $0xb8] sm:$0xff]  ;;  %3157 = vst.msk [vmem:[%s4096_s9 + $0x80] sm:$0xff] %vm8667_vm7, %v3125_v14  ;;  %v3126_v37 = vsel %vm3094_vm8, %v3062_v55, 0.0  ;;  %v3064_v34 = vsub.f32 %v3000_v44, %v3032_v43  ;;  %v3002_v32 = vadd.f32 %v2960_v61, %v2874_v38  ;;  %v2964_v21 = vmul.f32 0.6931472, %v3864_v48  ;;  %v2877_v22 = vld [vmem:[#allocation2 + $0xc0] sm:$0xff]  ;;  %vm8672_vm8 = vmmov %vm8669_vm0 }
 0x47e   : > { %v2911_v5 = vld [vmem:[#allocation3 + $0xd0] sm:$0xff]  ;;  %v3868_v25 = vpop.eup %3867  ;;  %3158 = vst.msk [vmem:[%s4096_s9 + $0x88] sm:$0xff] %vm8668_vm12, %v3126_v37  ;;  %v3127_v13 = vsel %vm3095_vm9, %v3063_v27, 0.0  ;;  %v3065_v28 = vsub.f32 %v3001_v52, %v3033_v20  ;;  %v3003_v12 = vadd.f32 %v2962_v17, %v2875_v50  ;;  %v2966_v9 = vmul.f32 0.6931472, %v3866_v3  ;;  %v2878_v4 = vld [vmem:[#allocation2 + $0xc8] sm:$0xff]  ;;  %vm8682_vm15 = vmmov %vm8669_vm0 }
 0x47f   : > { %v2912_v16 = vld [vmem:[#allocation3 + $0xd8] sm:$0xff]  ;;  %3159 = vst.msk [vmem:[%s4096_s9 + $0x90] sm:$0xff] %vm8669_vm0, %v3127_v13  ;;  %v3128_v31 = vsel %vm3096_vm13, %v3064_v34, 0.0  ;;  %v3066_v33 = vsub.f32 %v3002_v32, %v3034_v39  ;;  %v3004_v63 = vadd.f32 %v2964_v21, %v2876_v1  ;;  %v3037_v46 = vld [vmem:[#allocation4 + $0xc0] sm:$0xff]  ;;  %v2968_v51 = vmul.f32 0.6931472, %v3868_v25  ;;  %vm8674_vm13 = vmmov %vm8669_vm0 }
 0x480   : > { %v2913_v24 = vld [vmem:[#allocation3 + $0xe0] sm:$0xff]  ;;  %3160 = vst.msk [vmem:[%s4096_s9 + $0x98] sm:$0xff] %vm8670_vm1, %v3128_v31  ;;  %v3129_v23 = vsel %vm3097_vm11, %v3065_v28, 0.0  ;;  %v3067_v42 = vsub.f32 %v3003_v12, %v3035_v6  ;;  %v3005_v45 = vadd.f32 %v2966_v9, %v2877_v22  ;;  %v3038_v29 = vld [vmem:[#allocation4 + $0xc8] sm:$0xff]  ;;  %3869 = vlog2.f32 %v2911_v5  ;;  %v2915_v49 = vld [vmem:[#allocation3 + $0xf0] sm:$0xff] }
 0x481   : > { %v2914_v18 = vld [vmem:[#allocation3 + $0xe8] sm:$0xff]  ;;  %3161 = vst.msk [vmem:[%s4096_s9 + $0xa0] sm:$0xff] %vm8671_vm10, %v3129_v23  ;;  %v3130_v59 = vsel %vm3098_vm6, %v3066_v33, 0.0  ;;  %v3068_v40 = vsub.f32 %v3004_v63, %v3036_v26  ;;  %v3006_v2 = vadd.f32 %v2968_v51, %v2878_v4  ;;  %3871 = vlog2.f32 %v2912_v16  ;;  %v2916_v15 = vld [vmem:[#allocation3 + $0xf8] sm:$0xff]  ;;  %vm8675_vm11 = vmmov %vm8669_vm0 }
 0x482   : > { %3162 = vst.msk [vmem:[%s4096_s9 + $0xa8] sm:$0xff] %vm8672_vm8, %v3130_v59  ;;  %v3131_v53 = vsel %vm3099_vm4, %v3067_v42, 0.0  ;;  %v3069_v56 = vsub.f32 %v3005_v45, %v3037_v46  ;;  %v8673_v36 = vld [vmem:[#allocation93_spill] sm:$0xff]  ;;  %3873 = vlog2.f32 %v2913_v24  ;;  %vm8676_vm6 = vmmov %vm8669_vm0  ;;  %v2879_v43 = vld [vmem:[#allocation2 + $0xd0] sm:$0xff] }
 0x483   : > { %vm3102_vm9 = vcmp.ne.s32.totalorder %v8673_v36, 4294967196  ;;  %3163 = vst.msk [vmem:[%s4096_s9 + $0xb0] sm:$0xff] %vm8674_vm13, %v3131_v53  ;;  %v3132_v30 = vsel %vm3100_vm2, %v3068_v40, 0.0  ;;  %v3070_v8 = vsub.f32 %v3006_v2, %v3038_v29  ;;  %3875 = vlog2.f32 %v2914_v18  ;;  %vm8677_vm4 = vmmov %vm8669_vm0  ;;  %v2880_v0 = vld [vmem:[#allocation2 + $0xd8] sm:$0xff]  ;;  %v3039_v57 = vld [vmem:[#allocation4 + $0xd0] sm:$0xff] }
 0x484   : > { %3164 = vst.msk [vmem:[%s4096_s9 + $0xb8] sm:$0xff] %vm8675_vm11, %v3132_v30  ;;  %v3133_v62 = vsel %vm3101_vm14, %v3069_v56, 0.0  ;;  %3877 = vlog2.f32 %v2915_v49  ;;  %v2881_v19 = vld [vmem:[#allocation2 + $0xe0] sm:$0xff]  ;;  %v3040_v58 = vld [vmem:[#allocation4 + $0xd8] sm:$0xff]  ;;  %v2882_v41 = vld [vmem:[#allocation2 + $0xe8] sm:$0xff] }
 0x485   : > { %3165 = vst.msk [vmem:[%s4096_s9 + $0xc0] sm:$0xff] %vm8676_vm6, %v3133_v62  ;;  %v3134_v35 = vsel %vm3102_vm9, %v3070_v8, 0.0  ;;  %3879 = vlog2.f32 %v2916_v15  ;;  %v8678_v55 = vld [vmem:[#allocation71_spill] sm:$0xff]  ;;  %v3041_v61 = vld [vmem:[#allocation4 + $0xe0] sm:$0xff]  ;;  %v2883_v6 = vld [vmem:[#allocation2 + $0xf0] sm:$0xff] }
 0x486   : > { %v3870_v47 = vpop.eup %3869  ;;  %3166 = vst.msk [vmem:[%s4096_s9 + $0xc8] sm:$0xff] %vm8677_vm4, %v3134_v35  ;;  %vm3103_vm2 = vcmp.ne.s32.totalorder %v8678_v55, 4294967196  ;;  %v8679_v27 = vld [vmem:[#allocation55_spill] sm:$0xff]  ;;  %v3042_v17 = vld [vmem:[#allocation4 + $0xe8] sm:$0xff]  ;;  %v3043_v32 = vld [vmem:[#allocation4 + $0xf0] sm:$0xff] }
 0x487   : > { %v3872_v54 = vpop.eup %3871  ;;  %v2970_v20 = vmul.f32 0.6931472, %v3870_v47  ;;  %vm3104_vm14 = vcmp.ne.s32.totalorder %v8679_v27, 4294967196  ;;  %v2884_v26 = vld [vmem:[#allocation2 + $0xf8] sm:$0xff]  ;;  %v8680_v37 = vld [vmem:[#allocation121_spill] sm:$0xff]  ;;  %v8683_v4 = vld [vmem:[#allocation70_spill] sm:$0xff] }
 0x488   : > { %v3874_v11 = vpop.eup %3873  ;;  %v2972_v10 = vmul.f32 0.6931472, %v3872_v54  ;;  %vm3105_vm3 = vcmp.ne.s32.totalorder %v8680_v37, 4294967196  ;;  %v8681_v25 = vld [vmem:[#allocation61_spill] sm:$0xff]  ;;  %v3044_v28 = vld [vmem:[#allocation4 + $0xf8] sm:$0xff]  ;;  %vm3107_vm7 = vcmp.ne.s32.totalorder %v8683_v4, 4294967196  ;;  %vm8684_vm12 = vmmov %vm8669_vm0 }
 0x489   : > { %v3876_v60 = vpop.eup %3875  ;;  %v3007_v38 = vadd.f32 %v2970_v20, %v2879_v43  ;;  %v2974_v39 = vmul.f32 0.6931472, %v3874_v11  ;;  %vm3106_vm5 = vcmp.ne.s32.totalorder %v8681_v25, 4294967196  ;;  %v8685_v63 = vld [vmem:[#allocation108_spill] sm:$0xff]  ;;  %vm8686_vm10 = vmmov %vm8670_vm1 }
 0x48a   : > { %v3878_v7 = vpop.eup %3877  ;;  %v3008_v44 = vadd.f32 %v2972_v10, %v2880_v0  ;;  %v2976_v50 = vmul.f32 0.6931472, %v3876_v60  ;;  %vm3108_vm0 = vcmp.ne.s32.totalorder %v8685_v63, 4294967196  ;;  %vm8687_vm8 = vmmov %vm8670_vm1 }
 0x48b   : > { %v3880_v48 = vpop.eup %3879  ;;  %v3071_v14 = vsub.f32 %v3007_v38, %v3039_v57  ;;  %v3009_v52 = vadd.f32 %v2974_v39, %v2881_v19  ;;  %v2978_v1 = vmul.f32 0.6931472, %v3878_v7  ;;  %vm8688_vm9 = vmmov %vm8670_vm1 }
 0x48c   : > { %v3072_v3 = vsub.f32 %v3008_v44, %v3040_v58  ;;  %v3010_v34 = vadd.f32 %v2976_v50, %v2882_v41  ;;  %v2980_v21 = vmul.f32 0.6931472, %v3880_v48 }
 0x48d   : > { %v3135_v22 = vsel %vm3103_vm2, %v3071_v14, 0.0  ;;  %v3073_v5 = vsub.f32 %v3009_v52, %v3041_v61  ;;  %v3011_v13 = vadd.f32 %v2978_v1, %v2883_v6 }
 0x48e   : > { %3167 = vst.msk [vmem:[%s4096_s9 + $0xd0] sm:$0xff] %vm8682_vm15, %v3135_v22  ;;  %v3136_v12 = vsel %vm3104_vm14, %v3072_v3, 0.0  ;;  %v3074_v9 = vsub.f32 %v3010_v34, %v3042_v17  ;;  %v3012_v16 = vadd.f32 %v2980_v21, %v2884_v26 }
 0x48f   : > { %3168 = vst.msk [vmem:[%s4096_s9 + $0xd8] sm:$0xff] %vm8684_vm12, %v3136_v12  ;;  %v3137_v31 = vsel %vm3105_vm3, %v3073_v5, 0.0  ;;  %v3075_v33 = vsub.f32 %v3011_v13, %v3043_v32 }
 0x490   : > { %3169 = vst.msk [vmem:[%s4096_s9 + $0xe0] sm:$0xff] %vm8670_vm1, %v3137_v31  ;;  %v3138_v46 = vsel %vm3106_vm5, %v3074_v9, 0.0  ;;  %v3076_v51 = vsub.f32 %v3012_v16, %v3044_v28 }
 0x491   : > { %3170 = vst.msk [vmem:[%s4096_s9 + $0xe8] sm:$0xff] %vm8686_vm10, %v3138_v46  ;;  %v3139_v24 = vsel %vm3107_vm7, %v3075_v33, 0.0 }
 0x492   : > { %3171 = vst.msk [vmem:[%s4096_s9 + $0xf0] sm:$0xff] %vm8687_vm8, %v3139_v24  ;;  %v3140_v23 = vsel %vm3108_vm0, %v3076_v51, 0.0 }
 0x493   : > { %3172 = vst.msk [vmem:[%s4096_s9 + $0xf8] sm:$0xff] %vm8688_vm9, %v3140_v23 }
 0x494 PF: > { %s15_s16 = sadd.s32 1, %s3977_s16   ;;  %s8689_s9 = smov %s3953_s10 }
 0x495   : > { %p12_p3 = scmp.ge.s32.totalorder %s15_s16, 6   ;;  %s8690_s10 = smov %s3957_s11 }
 0x496   : > { %s8691_s11 = smov %s4068_s29  ;;  %s8692_s12 = smov %s3969_s14 }
 0x497   : > { %s8693_s13 = smov %s3973_s15  ;;  %s8694_s14 = smov %s8697_s18 }
 0x498   : > { %s8695_s15 = smov %s8701_s19  ;;  %14 = sbr.rel (!%p12_p3) target bundleno = 5 (0x5), region = 79 }
 0x49d   :  { %3195 = vsyncpa [#allocation6], 1 }
 0x49e   :  { %3197 = vsyncpa [#allocation6 + $0x1], 1 }

</bundles_post_ra>
